<compile_context>
chip_gen: v6e
topology: v6e:2x2x1
jax: 0.10.0
libtpu: 0.0.40
codegen_flags: <defaults>
</compile_context>

<pallas_src>
import math
from functools import partial

import jax
import jax.numpy as jnp
from jax.experimental import pallas as pl
from jax.experimental.pallas import tpu as pltpu

EPS = 1e-5  # torch.nn.InstanceNorm2d default eps


# ---------------------------------------------------------------------------
# Fused Block kernel: one grid step per image.
# ---------------------------------------------------------------------------
def _block_kernel(x_ref, w_in_ref, w_out_ref, bias_ref, perm_ref, o_ref, *,
                  heads, H, W):
    """Fused Block forward for one image.

    x_ref    : (1, C, H*W) NCHW slab of this image (h-major pixels)
    w_in_ref : (C, 10C)  bf16  [ mlp_w1 (4C) | v_wqkv (3C) | h_wqkv (3C) ]
    w_out_ref: (6C, C)   bf16  [ mlp_w2 (4C rows) ; v_wo (C) ; h_wo (C) ]
    bias_ref : (1, 12C)  f32   [ b1 | v_bqkv | h_bqkv | v_bo+h_bo | b2 ]
    perm_ref : (P, P)    f32   h-major -> w-major pixel permutation matrix
    o_ref    : (1, C, H*W) output slab
    """
    C = x_ref.shape[1]
    d = C // heads
    mxu = jnp.bfloat16                        # MXU operand dtype (f32 accum)

    # ---- load, channels-last view (cheap 2-D transpose in VMEM) ----------
    xv = x_ref[0].T.astype(jnp.float32)       # (P, C), h-major pixel rows
    perm = perm_ref[...]                      # (P, P)

    # ---- InstanceNorm #1 (per-channel over pixels, biased variance) ------
    mean = jnp.mean(xv, axis=0, keepdims=True)
    var = jnp.mean(jnp.square(xv - mean), axis=0, keepdims=True)
    ctx = (xv - mean) * jax.lax.rsqrt(var + EPS)

    # ---- merged QKV projection for BOTH attention directions -------------
    w_qkv = w_in_ref[:, 4 * C:10 * C]         # (C, 6C) bf16, q-scale folded
    b_qkv = bias_ref[:, 4 * C:10 * C]         # (1, 6C) f32
    qkv_all = jnp.dot(ctx.astype(mxu), w_qkv,
                      preferred_element_type=jnp.float32) + b_qkv   # (P, 6C)

    qkv_v = qkv_all[:, :3 * C]                                 # h-major rows
    qkv_h = jnp.dot(perm, qkv_all[:, 3 * C:],                  # w-major rows
                    preferred_element_type=jnp.float32)

    def attend(qkv, B, S):
        """Multi-head self-attention over B sequences of length S."""
        qkv3 = qkv.reshape(B, S, 3 * C)
        outs = []
        # Static unroll over heads; every iteration is batched over all B
        # sequences (rows/columns) of the image.
        for h in range(heads):
            q = qkv3[:, :, h * d:(h + 1) * d].astype(mxu)
            k = qkv3[:, :, C + h * d:C + (h + 1) * d].astype(mxu)
            v = qkv3[:, :, 2 * C + h * d:2 * C + (h + 1) * d].astype(mxu)
            s = jnp.einsum('bqd,bkd->bqk', q, k,
                           preferred_element_type=jnp.float32)   # (B, S, S)
            s = s - jnp.max(s, axis=-1, keepdims=True)
            p = jnp.exp(s)
            p = p * pl.reciprocal(jnp.sum(p, axis=-1, keepdims=True),
                                  approx=True)
            outs.append(jnp.einsum('bqk,bkd->bqd', p.astype(mxu), v,
                                   preferred_element_type=jnp.float32))
        return jnp.concatenate(outs, axis=-1).reshape(B * S, C)

    ctx_v = attend(qkv_v, H, W)               # (P, C), h-major rows
    ctx_h = attend(qkv_h, W, H)               # (P, C), w-major rows
    ctx_h = jnp.dot(perm.T, ctx_h,            # back to h-major order
                    preferred_element_type=jnp.float32)

    # ---- merged output projection (fuses the v+h branch add) + residual --
    w_o = w_out_ref[4 * C:6 * C, :]           # (2C, C) = [v_wo ; h_wo]
    b_o = bias_ref[:, 10 * C:11 * C]          # (1, C)  = v_bo + h_bo
    attn = jnp.dot(jnp.concatenate([ctx_v, ctx_h], axis=-1).astype(mxu),
                   w_o, preferred_element_type=jnp.float32) + b_o
    y1 = attn + xv                            # residual #1

    # ---- InstanceNorm #2 + 1x1-conv MLP + residual #2 ---------------------
    mean2 = jnp.mean(y1, axis=0, keepdims=True)
    var2 = jnp.mean(jnp.square(y1 - mean2), axis=0, keepdims=True)
    ctx2 = (y1 - mean2) * jax.lax.rsqrt(var2 + EPS)

    h1 = jnp.dot(ctx2.astype(mxu), w_in_ref[:, :4 * C],
                 preferred_element_type=jnp.float32) + bias_ref[:, :4 * C]
    h1 = jnp.maximum(h1, 0.0)
    y2 = jnp.dot(h1.astype(mxu), w_out_ref[:4 * C, :],
                 preferred_element_type=jnp.float32) + bias_ref[:, 11 * C:]
    out = y2 + y1

    o_ref[0] = out.T.astype(o_ref.dtype)      # (C, P)


# ---------------------------------------------------------------------------
# Block forward (Pallas-backed). Input/output are NCHW like the PyTorch module.
# ---------------------------------------------------------------------------
def block_forward(images_nchw, params, heads):
    N, C, H, W = images_nchw.shape
    P = H * W
    d = C // heads
    scale = 1.0 / math.sqrt(d)

    # ---- pack parameters into a few slabs (trace-time, tiny) --------------
    def fold_q_scale(wqkv, bqkv):
        # torch MHA scales q (after in_proj incl. bias) by 1/sqrt(d); fold it.
        w = jnp.concatenate([wqkv[:, :C] * scale, wqkv[:, C:]], axis=1)
        b = jnp.concatenate([bqkv[:, :C] * scale, bqkv[:, C:]], axis=1)
        return w, b

    v_wqkv, v_bqkv = fold_q_scale(params["v_wqkv"], params["v_bqkv"])
    h_wqkv, h_bqkv = fold_q_scale(params["h_wqkv"], params["h_bqkv"])

    w_in = jnp.concatenate([params["w1"], v_wqkv, h_wqkv],
                           axis=1).astype(jnp.bfloat16)              # (C, 10C)
    w_out = jnp.concatenate([params["w2"], params["v_wo"], params["h_wo"]],
                            axis=0).astype(jnp.bfloat16)             # (6C, C)
    bias = jnp.concatenate(
        [params["b1"], v_bqkv, h_bqkv,
         params["v_bo"] + params["h_bo"], params["b2"]],
        axis=1).astype(jnp.float32)                                  # (1, 12C)

    # h-major -> w-major pixel permutation (applied as a row matmul in VMEM).
    a = jnp.arange(P)                         # w-major destination index
    src = (a % H) * W + a // H                # matching h-major source index
    perm = jax.nn.one_hot(src, P, dtype=jnp.float32)                 # (P, P)

    x = images_nchw.reshape(N, C, P)          # free row-major reshape
    full = lambda i: (0, 0)

    out = pl.pallas_call(
        partial(_block_kernel, heads=heads, H=H, W=W),
        out_shape=jax.ShapeDtypeStruct((N, C, P), images_nchw.dtype),
        grid=(N,),
        in_specs=[
            pl.BlockSpec((1, C, P), lambda i: (i, 0, 0)),
            pl.BlockSpec((C, 10 * C), full),
            pl.BlockSpec((6 * C, C), full),
            pl.BlockSpec((1, 12 * C), full),
            pl.BlockSpec((P, P), full),
        ],
        out_specs=pl.BlockSpec((1, C, P), lambda i: (i, 0, 0)),
        compiler_params=pltpu.CompilerParams(
            dimension_semantics=("parallel",),
            vmem_limit_bytes=32 * 1024 * 1024),
    )(x, w_in, w_out, bias, perm)

    return out.reshape(N, C, H, W)


# ---------------------------------------------------------------------------
# Pure-JAX reference (mirrors the PyTorch module math) for verification.
# ---------------------------------------------------------------------------
def _mha_ref(x, wqkv, bqkv, wo, bo, heads):
    B, S, C = x.shape
    d = C // heads
    qkv = x @ wqkv + bqkv
    q, k, v = jnp.split(qkv, 3, axis=-1)
    sh = lambda t: t.reshape(B, S, heads, d).transpose(0, 2, 1, 3)
    q, k, v = sh(q), sh(k), sh(v)
    s = jnp.einsum("bhqd,bhkd->bhqk", q, k) / math.sqrt(d)
    p = jax.nn.softmax(s, axis=-1)
    ctx = jnp.einsum("bhqk,bhkd->bhqd", p, v).transpose(0, 2, 1, 3).reshape(B, S, C)
    return ctx @ wo + bo


def _inorm_ref(x_nhwc):
    mean = jnp.mean(x_nhwc, axis=(1, 2), keepdims=True)
    var = jnp.mean(jnp.square(x_nhwc - mean), axis=(1, 2), keepdims=True)
    return (x_nhwc - mean) / jnp.sqrt(var + EPS)


def block_ref(images_nchw, params, heads):
    x = jnp.transpose(images_nchw, (0, 2, 3, 1))
    N, H, W, C = x.shape
    ctx = _inorm_ref(x)
    v_ctx = _mha_ref(ctx.reshape(N * H, W, C), params["v_wqkv"], params["v_bqkv"],
                     params["v_wo"], params["v_bo"], heads).reshape(N, H, W, C)
    h_in = jnp.transpose(ctx, (0, 2, 1, 3)).reshape(N * W, H, C)
    h_ctx = _mha_ref(h_in, params["h_wqkv"], params["h_bqkv"],
                     params["h_wo"], params["h_bo"], heads).reshape(N, W, H, C)
    h_ctx = jnp.transpose(h_ctx, (0, 2, 1, 3))
    x = v_ctx + h_ctx + x
    ctx = _inorm_ref(x)
    hdn = jnp.maximum(ctx.reshape(-1, C) @ params["w1"] + params["b1"], 0.0)
    y = (hdn @ params["w2"] + params["b2"]).reshape(N, H, W, C)
    x = y + x
    return jnp.transpose(x, (0, 3, 1, 2))


# ---------------------------------------------------------------------------
if __name__ == "__main__":
    N, C, H, W = 2, 32, 8, 8          # hidden_size = 32
    heads = 4                          # head_dim = 8

    key = jax.random.PRNGKey(0)
    keys = jax.random.split(key, 13)

    def init(k, shape, fan_in):
        return jax.random.normal(k, shape, jnp.float32) / math.sqrt(fan_in)

    # Synthetic parameters (shapes follow nn.MultiheadAttention in_proj/out_proj
    # and the two 1x1 Conv2d layers, stored pre-transposed for right-multiply).
    params = {
        "v_wqkv": init(keys[0], (C, 3 * C), C),
        "v_bqkv": init(keys[1], (1, 3 * C), C),
        "v_wo":   init(keys[2], (C, C), C),
        "v_bo":   init(keys[3], (1, C), C),
        "h_wqkv": init(keys[4], (C, 3 * C), C),
        "h_bqkv": init(keys[5], (1, 3 * C), C),
        "h_wo":   init(keys[6], (C, C), C),
        "h_bo":   init(keys[7], (1, C), C),
        "w1":     init(keys[8], (C, 4 * C), C),
        "b1":     init(keys[9], (1, 4 * C), C),
        "w2":     init(keys[10], (4 * C, C), 4 * C),
        "b2":     init(keys[11], (1, C), 4 * C),
    }
    images = jax.random.normal(keys[12], (N, C, H, W), jnp.float32)

    out = jax.jit(partial(block_forward, heads=heads))(images, params)
    out = jax.block_until_ready(out)

    with jax.default_matmul_precision("highest"):
        ref = jax.block_until_ready(block_ref(images, params, heads))

    assert out.shape == (N, C, H, W), out.shape
    # Relative L2 error (bf16 MXU operands + approx reciprocal => ~<1%).
    rel = float(jnp.sqrt(jnp.sum((out - ref) ** 2) / jnp.sum(ref ** 2)))
    if not rel < 3e-2:
        raise AssertionError(f"Pallas output mismatch, relative L2 err = {rel}")

    print("KERNEL_OK")
</pallas_src>

<mosaic_0001>
module attributes {stable_mosaic.version = 11 : i64} {
  func.func @_block_kernel(%arg0: i32, %arg1: memref<1x32x64xf32, #tpu.memory_space<vmem>>, %arg2: memref<32x320xbf16, #tpu.memory_space<vmem>>, %arg3: memref<192x32xbf16, #tpu.memory_space<vmem>>, %arg4: memref<1x384xf32, #tpu.memory_space<vmem>>, %arg5: memref<64x64xf32, #tpu.memory_space<vmem>>, %arg6: memref<1x32x64xf32, #tpu.memory_space<vmem>>) attributes {dimension_semantics = [#tpu.dimension_semantics<parallel>], iteration_bounds = array<i64: 2>, scalar_prefetch = 0 : i64, scratch_operands = 0 : i64, tpu.core_type = #tpu.core_type<tc>, window_params = [{transform_indices = @transform_0, window_bounds = array<i64: 1, 32, 64>}, {pipeline_mode = #tpu.pipeline_mode<synchronous>, transform_indices = @transform_1, window_bounds = array<i64: 32, 320>}, {pipeline_mode = #tpu.pipeline_mode<synchronous>, transform_indices = @transform_2, window_bounds = array<i64: 192, 32>}, {pipeline_mode = #tpu.pipeline_mode<synchronous>, transform_indices = @transform_3, window_bounds = array<i64: 1, 384>}, {pipeline_mode = #tpu.pipeline_mode<synchronous>, transform_indices = @transform_4, window_bounds = array<i64: 64, 64>}, {transform_indices = @transform_5, window_bounds = array<i64: 1, 32, 64>}]} {
    %c0 = arith.constant 0 : index
    %c0_0 = arith.constant 0 : index
    %c0_1 = arith.constant 0 : index
    %0 = vector.load %arg1[%c0, %c0_0, %c0_1] : memref<1x32x64xf32, #tpu.memory_space<vmem>>, vector<1x32x64xf32>
    %1 = vector.shape_cast %0 : vector<1x32x64xf32> to vector<32x64xf32>
    %2 = tpu.transpose %1, [1, 0] : vector<32x64xf32> -> vector<64x32xf32>
    %c0_2 = arith.constant 0 : index
    %c0_3 = arith.constant 0 : index
    %3 = vector.load %arg5[%c0_2, %c0_3] : memref<64x64xf32, #tpu.memory_space<vmem>>, vector<64x64xf32>
    %cst = arith.constant dense<0.000000e+00> : vector<32xf32>
    %4 = vector.multi_reduction <add>, %2, %cst [0] : vector<64x32xf32> to vector<32xf32>
    %5 = vector.shape_cast %4 : vector<32xf32> to vector<1x32xf32>
    %cst_4 = arith.constant 6.400000e+01 : f32
    %6 = vector.broadcast %cst_4 : f32 to vector<1x32xf32>
    %7 = arith.divf %5, %6 : vector<1x32xf32>
    %8 = vector.broadcast %7 : vector<1x32xf32> to vector<64x32xf32>
    %9 = arith.subf %2, %8 : vector<64x32xf32>
    %10 = arith.mulf %9, %9 : vector<64x32xf32>
    %cst_5 = arith.constant dense<0.000000e+00> : vector<32xf32>
    %11 = vector.multi_reduction <add>, %10, %cst_5 [0] : vector<64x32xf32> to vector<32xf32>
    %12 = vector.shape_cast %11 : vector<32xf32> to vector<1x32xf32>
    %cst_6 = arith.constant 6.400000e+01 : f32
    %13 = vector.broadcast %cst_6 : f32 to vector<1x32xf32>
    %14 = arith.divf %12, %13 : vector<1x32xf32>
    %15 = vector.broadcast %7 : vector<1x32xf32> to vector<64x32xf32>
    %16 = arith.subf %2, %15 : vector<64x32xf32>
    %cst_7 = arith.constant 9.99999974E-6 : f32
    %17 = vector.broadcast %cst_7 : f32 to vector<1x32xf32>
    %18 = arith.addf %14, %17 : vector<1x32xf32>
    %19 = math.rsqrt %18 : vector<1x32xf32>
    %20 = vector.broadcast %19 : vector<1x32xf32> to vector<64x32xf32>
    %21 = arith.mulf %16, %20 : vector<64x32xf32>
    %c0_8 = arith.constant 0 : index
    %c128 = arith.constant 128 : index
    %22 = vector.load %arg2[%c0_8, %c128] : memref<32x320xbf16, #tpu.memory_space<vmem>>, vector<32x192xbf16>
    %c0_9 = arith.constant 0 : index
    %c128_10 = arith.constant 128 : index
    %23 = vector.load %arg4[%c0_9, %c128_10] : memref<1x384xf32, #tpu.memory_space<vmem>>, vector<1x192xf32>
    %24 = arith.truncf %21 : vector<64x32xf32> to vector<64x32xbf16>
    %cst_11 = arith.constant dense<0.000000e+00> : vector<64x192xf32>
    %25 = tpu.matmul %24, %22, %cst_11 {dimension_numbers = #tpu.dot_dimension_numbers<[1], [0], [0], [1], [0, 0, 1, 1], [], []>} : vector<64x32xbf16>, vector<32x192xbf16>, vector<64x192xf32> -> vector<64x192xf32>
    %26 = vector.broadcast %23 : vector<1x192xf32> to vector<64x192xf32>
    %27 = arith.addf %25, %26 : vector<64x192xf32>
    %28 = vector.extract_strided_slice %27 {offsets = [0, 0], sizes = [64, 96], strides = [1, 1]} : vector<64x192xf32> to vector<64x96xf32>
    %29 = vector.extract_strided_slice %27 {offsets = [0, 96], sizes = [64, 96], strides = [1, 1]} : vector<64x192xf32> to vector<64x96xf32>
    %cst_12 = arith.constant dense<0.000000e+00> : vector<64x96xf32>
    %30 = tpu.matmul %3, %29, %cst_12 {dimension_numbers = #tpu.dot_dimension_numbers<[1], [0], [0], [1], [0, 0, 1, 1], [], []>} : vector<64x64xf32>, vector<64x96xf32>, vector<64x96xf32> -> vector<64x96xf32>
    %31 = vector.shape_cast %28 : vector<64x96xf32> to vector<8x8x96xf32>
    %32 = vector.extract_strided_slice %31 {offsets = [0, 0, 0], sizes = [8, 8, 8], strides = [1, 1, 1]} : vector<8x8x96xf32> to vector<8x8x8xf32>
    %33 = arith.truncf %32 : vector<8x8x8xf32> to vector<8x8x8xbf16>
    %34 = vector.extract_strided_slice %31 {offsets = [0, 0, 32], sizes = [8, 8, 8], strides = [1, 1, 1]} : vector<8x8x96xf32> to vector<8x8x8xf32>
    %35 = arith.truncf %34 : vector<8x8x8xf32> to vector<8x8x8xbf16>
    %36 = vector.extract_strided_slice %31 {offsets = [0, 0, 64], sizes = [8, 8, 8], strides = [1, 1, 1]} : vector<8x8x96xf32> to vector<8x8x8xf32>
    %37 = arith.truncf %36 : vector<8x8x8xf32> to vector<8x8x8xbf16>
    "tpu.trace_start"() <{level = 10 : i32, message = "bqd,bkd->bqk"}> : () -> ()
    %cst_13 = arith.constant dense<0.000000e+00> : vector<8x8x8xf32>
    %38 = tpu.matmul %33, %35, %cst_13 {dimension_numbers = #tpu.dot_dimension_numbers<[2], [2], [1], [1], [0, 0, 0, 1, 1, 1], [0], [0]>} : vector<8x8x8xbf16>, vector<8x8x8xbf16>, vector<8x8x8xf32> -> vector<8x8x8xf32>
    "tpu.trace_stop"() : () -> ()
    %cst_14 = arith.constant dense<0xFF800000> : vector<8x8xf32>
    %39 = vector.multi_reduction <maximumf>, %38, %cst_14 [2] : vector<8x8x8xf32> to vector<8x8xf32>
    %40 = vector.shape_cast %39 : vector<8x8xf32> to vector<8x8x1xf32>
    %41 = vector.broadcast %40 : vector<8x8x1xf32> to vector<8x8x8xf32>
    %42 = arith.subf %38, %41 : vector<8x8x8xf32>
    %43 = math.exp %42 : vector<8x8x8xf32>
    %cst_15 = arith.constant dense<0.000000e+00> : vector<8x8xf32>
    %44 = vector.multi_reduction <add>, %43, %cst_15 [2] : vector<8x8x8xf32> to vector<8x8xf32>
    %45 = vector.shape_cast %44 : vector<8x8xf32> to vector<8x8x1xf32>
    %46 = tpu.reciprocal %45 {approx = true} : vector<8x8x1xf32> -> vector<8x8x1xf32>
    %47 = vector.broadcast %46 : vector<8x8x1xf32> to vector<8x8x8xf32>
    %48 = arith.mulf %43, %47 : vector<8x8x8xf32>
    %49 = arith.truncf %48 : vector<8x8x8xf32> to vector<8x8x8xbf16>
    "tpu.trace_start"() <{level = 10 : i32, message = "bqk,bkd->bqd"}> : () -> ()
    %cst_16 = arith.constant dense<0.000000e+00> : vector<8x8x8xf32>
    %50 = tpu.matmul %49, %37, %cst_16 {dimension_numbers = #tpu.dot_dimension_numbers<[2], [1], [1], [2], [0, 0, 0, 1, 1, 2], [0], [0]>} : vector<8x8x8xbf16>, vector<8x8x8xbf16>, vector<8x8x8xf32> -> vector<8x8x8xf32>
    "tpu.trace_stop"() : () -> ()
    %51 = vector.extract_strided_slice %31 {offsets = [0, 0, 8], sizes = [8, 8, 8], strides = [1, 1, 1]} : vector<8x8x96xf32> to vector<8x8x8xf32>
    %52 = arith.truncf %51 : vector<8x8x8xf32> to vector<8x8x8xbf16>
    %53 = vector.extract_strided_slice %31 {offsets = [0, 0, 40], sizes = [8, 8, 8], strides = [1, 1, 1]} : vector<8x8x96xf32> to vector<8x8x8xf32>
    %54 = arith.truncf %53 : vector<8x8x8xf32> to vector<8x8x8xbf16>
    %55 = vector.extract_strided_slice %31 {offsets = [0, 0, 72], sizes = [8, 8, 8], strides = [1, 1, 1]} : vector<8x8x96xf32> to vector<8x8x8xf32>
    %56 = arith.truncf %55 : vector<8x8x8xf32> to vector<8x8x8xbf16>
    "tpu.trace_start"() <{level = 10 : i32, message = "bqd,bkd->bqk"}> : () -> ()
    %cst_17 = arith.constant dense<0.000000e+00> : vector<8x8x8xf32>
    %57 = tpu.matmul %52, %54, %cst_17 {dimension_numbers = #tpu.dot_dimension_numbers<[2], [2], [1], [1], [0, 0, 0, 1, 1, 1], [0], [0]>} : vector<8x8x8xbf16>, vector<8x8x8xbf16>, vector<8x8x8xf32> -> vector<8x8x8xf32>
    "tpu.trace_stop"() : () -> ()
    %cst_18 = arith.constant dense<0xFF800000> : vector<8x8xf32>
    %58 = vector.multi_reduction <maximumf>, %57, %cst_18 [2] : vector<8x8x8xf32> to vector<8x8xf32>
    %59 = vector.shape_cast %58 : vector<8x8xf32> to vector<8x8x1xf32>
    %60 = vector.broadcast %59 : vector<8x8x1xf32> to vector<8x8x8xf32>
    %61 = arith.subf %57, %60 : vector<8x8x8xf32>
    %62 = math.exp %61 : vector<8x8x8xf32>
    %cst_19 = arith.constant dense<0.000000e+00> : vector<8x8xf32>
    %63 = vector.multi_reduction <add>, %62, %cst_19 [2] : vector<8x8x8xf32> to vector<8x8xf32>
    %64 = vector.shape_cast %63 : vector<8x8xf32> to vector<8x8x1xf32>
    %65 = tpu.reciprocal %64 {approx = true} : vector<8x8x1xf32> -> vector<8x8x1xf32>
    %66 = vector.broadcast %65 : vector<8x8x1xf32> to vector<8x8x8xf32>
    %67 = arith.mulf %62, %66 : vector<8x8x8xf32>
    %68 = arith.truncf %67 : vector<8x8x8xf32> to vector<8x8x8xbf16>
    "tpu.trace_start"() <{level = 10 : i32, message = "bqk,bkd->bqd"}> : () -> ()
    %cst_20 = arith.constant dense<0.000000e+00> : vector<8x8x8xf32>
    %69 = tpu.matmul %68, %56, %cst_20 {dimension_numbers = #tpu.dot_dimension_numbers<[2], [1], [1], [2], [0, 0, 0, 1, 1, 2], [0], [0]>} : vector<8x8x8xbf16>, vector<8x8x8xbf16>, vector<8x8x8xf32> -> vector<8x8x8xf32>
    "tpu.trace_stop"() : () -> ()
    %70 = vector.extract_strided_slice %31 {offsets = [0, 0, 16], sizes = [8, 8, 8], strides = [1, 1, 1]} : vector<8x8x96xf32> to vector<8x8x8xf32>
    %71 = arith.truncf %70 : vector<8x8x8xf32> to vector<8x8x8xbf16>
    %72 = vector.extract_strided_slice %31 {offsets = [0, 0, 48], sizes = [8, 8, 8], strides = [1, 1, 1]} : vector<8x8x96xf32> to vector<8x8x8xf32>
    %73 = arith.truncf %72 : vector<8x8x8xf32> to vector<8x8x8xbf16>
    %74 = vector.extract_strided_slice %31 {offsets = [0, 0, 80], sizes = [8, 8, 8], strides = [1, 1, 1]} : vector<8x8x96xf32> to vector<8x8x8xf32>
    %75 = arith.truncf %74 : vector<8x8x8xf32> to vector<8x8x8xbf16>
    "tpu.trace_start"() <{level = 10 : i32, message = "bqd,bkd->bqk"}> : () -> ()
    %cst_21 = arith.constant dense<0.000000e+00> : vector<8x8x8xf32>
    %76 = tpu.matmul %71, %73, %cst_21 {dimension_numbers = #tpu.dot_dimension_numbers<[2], [2], [1], [1], [0, 0, 0, 1, 1, 1], [0], [0]>} : vector<8x8x8xbf16>, vector<8x8x8xbf16>, vector<8x8x8xf32> -> vector<8x8x8xf32>
    "tpu.trace_stop"() : () -> ()
    %cst_22 = arith.constant dense<0xFF800000> : vector<8x8xf32>
    %77 = vector.multi_reduction <maximumf>, %76, %cst_22 [2] : vector<8x8x8xf32> to vector<8x8xf32>
    %78 = vector.shape_cast %77 : vector<8x8xf32> to vector<8x8x1xf32>
    %79 = vector.broadcast %78 : vector<8x8x1xf32> to vector<8x8x8xf32>
    %80 = arith.subf %76, %79 : vector<8x8x8xf32>
    %81 = math.exp %80 : vector<8x8x8xf32>
    %cst_23 = arith.constant dense<0.000000e+00> : vector<8x8xf32>
    %82 = vector.multi_reduction <add>, %81, %cst_23 [2] : vector<8x8x8xf32> to vector<8x8xf32>
    %83 = vector.shape_cast %82 : vector<8x8xf32> to vector<8x8x1xf32>
    %84 = tpu.reciprocal %83 {approx = true} : vector<8x8x1xf32> -> vector<8x8x1xf32>
    %85 = vector.broadcast %84 : vector<8x8x1xf32> to vector<8x8x8xf32>
    %86 = arith.mulf %81, %85 : vector<8x8x8xf32>
    %87 = arith.truncf %86 : vector<8x8x8xf32> to vector<8x8x8xbf16>
    "tpu.trace_start"() <{level = 10 : i32, message = "bqk,bkd->bqd"}> : () -> ()
    %cst_24 = arith.constant dense<0.000000e+00> : vector<8x8x8xf32>
    %88 = tpu.matmul %87, %75, %cst_24 {dimension_numbers = #tpu.dot_dimension_numbers<[2], [1], [1], [2], [0, 0, 0, 1, 1, 2], [0], [0]>} : vector<8x8x8xbf16>, vector<8x8x8xbf16>, vector<8x8x8xf32> -> vector<8x8x8xf32>
    "tpu.trace_stop"() : () -> ()
    %89 = vector.extract_strided_slice %31 {offsets = [0, 0, 24], sizes = [8, 8, 8], strides = [1, 1, 1]} : vector<8x8x96xf32> to vector<8x8x8xf32>
    %90 = arith.truncf %89 : vector<8x8x8xf32> to vector<8x8x8xbf16>
    %91 = vector.extract_strided_slice %31 {offsets = [0, 0, 56], sizes = [8, 8, 8], strides = [1, 1, 1]} : vector<8x8x96xf32> to vector<8x8x8xf32>
    %92 = arith.truncf %91 : vector<8x8x8xf32> to vector<8x8x8xbf16>
    %93 = vector.extract_strided_slice %31 {offsets = [0, 0, 88], sizes = [8, 8, 8], strides = [1, 1, 1]} : vector<8x8x96xf32> to vector<8x8x8xf32>
    %94 = arith.truncf %93 : vector<8x8x8xf32> to vector<8x8x8xbf16>
    "tpu.trace_start"() <{level = 10 : i32, message = "bqd,bkd->bqk"}> : () -> ()
    %cst_25 = arith.constant dense<0.000000e+00> : vector<8x8x8xf32>
    %95 = tpu.matmul %90, %92, %cst_25 {dimension_numbers = #tpu.dot_dimension_numbers<[2], [2], [1], [1], [0, 0, 0, 1, 1, 1], [0], [0]>} : vector<8x8x8xbf16>, vector<8x8x8xbf16>, vector<8x8x8xf32> -> vector<8x8x8xf32>
    "tpu.trace_stop"() : () -> ()
    %cst_26 = arith.constant dense<0xFF800000> : vector<8x8xf32>
    %96 = vector.multi_reduction <maximumf>, %95, %cst_26 [2] : vector<8x8x8xf32> to vector<8x8xf32>
    %97 = vector.shape_cast %96 : vector<8x8xf32> to vector<8x8x1xf32>
    %98 = vector.broadcast %97 : vector<8x8x1xf32> to vector<8x8x8xf32>
    %99 = arith.subf %95, %98 : vector<8x8x8xf32>
    %100 = math.exp %99 : vector<8x8x8xf32>
    %cst_27 = arith.constant dense<0.000000e+00> : vector<8x8xf32>
    %101 = vector.multi_reduction <add>, %100, %cst_27 [2] : vector<8x8x8xf32> to vector<8x8xf32>
    %102 = vector.shape_cast %101 : vector<8x8xf32> to vector<8x8x1xf32>
    %103 = tpu.reciprocal %102 {approx = true} : vector<8x8x1xf32> -> vector<8x8x1xf32>
    %104 = vector.broadcast %103 : vector<8x8x1xf32> to vector<8x8x8xf32>
    %105 = arith.mulf %100, %104 : vector<8x8x8xf32>
    %106 = arith.truncf %105 : vector<8x8x8xf32> to vector<8x8x8xbf16>
    "tpu.trace_start"() <{level = 10 : i32, message = "bqk,bkd->bqd"}> : () -> ()
    %cst_28 = arith.constant dense<0.000000e+00> : vector<8x8x8xf32>
    %107 = tpu.matmul %106, %94, %cst_28 {dimension_numbers = #tpu.dot_dimension_numbers<[2], [1], [1], [2], [0, 0, 0, 1, 1, 2], [0], [0]>} : vector<8x8x8xbf16>, vector<8x8x8xbf16>, vector<8x8x8xf32> -> vector<8x8x8xf32>
    "tpu.trace_stop"() : () -> ()
    %108 = tpu.concatenate %50, %69, %88, %107 in 2 : vector<8x8x8xf32>, vector<8x8x8xf32>, vector<8x8x8xf32>, vector<8x8x8xf32> -> vector<8x8x32xf32>
    %109 = vector.shape_cast %108 : vector<8x8x32xf32> to vector<64x32xf32>
    %110 = vector.shape_cast %30 : vector<64x96xf32> to vector<8x8x96xf32>
    %111 = vector.extract_strided_slice %110 {offsets = [0, 0, 0], sizes = [8, 8, 8], strides = [1, 1, 1]} : vector<8x8x96xf32> to vector<8x8x8xf32>
    %112 = arith.truncf %111 : vector<8x8x8xf32> to vector<8x8x8xbf16>
    %113 = vector.extract_strided_slice %110 {offsets = [0, 0, 32], sizes = [8, 8, 8], strides = [1, 1, 1]} : vector<8x8x96xf32> to vector<8x8x8xf32>
    %114 = arith.truncf %113 : vector<8x8x8xf32> to vector<8x8x8xbf16>
    %115 = vector.extract_strided_slice %110 {offsets = [0, 0, 64], sizes = [8, 8, 8], strides = [1, 1, 1]} : vector<8x8x96xf32> to vector<8x8x8xf32>
    %116 = arith.truncf %115 : vector<8x8x8xf32> to vector<8x8x8xbf16>
    "tpu.trace_start"() <{level = 10 : i32, message = "bqd,bkd->bqk"}> : () -> ()
    %cst_29 = arith.constant dense<0.000000e+00> : vector<8x8x8xf32>
    %117 = tpu.matmul %112, %114, %cst_29 {dimension_numbers = #tpu.dot_dimension_numbers<[2], [2], [1], [1], [0, 0, 0, 1, 1, 1], [0], [0]>} : vector<8x8x8xbf16>, vector<8x8x8xbf16>, vector<8x8x8xf32> -> vector<8x8x8xf32>
    "tpu.trace_stop"() : () -> ()
    %cst_30 = arith.constant dense<0xFF800000> : vector<8x8xf32>
    %118 = vector.multi_reduction <maximumf>, %117, %cst_30 [2] : vector<8x8x8xf32> to vector<8x8xf32>
    %119 = vector.shape_cast %118 : vector<8x8xf32> to vector<8x8x1xf32>
    %120 = vector.broadcast %119 : vector<8x8x1xf32> to vector<8x8x8xf32>
    %121 = arith.subf %117, %120 : vector<8x8x8xf32>
    %122 = math.exp %121 : vector<8x8x8xf32>
    %cst_31 = arith.constant dense<0.000000e+00> : vector<8x8xf32>
    %123 = vector.multi_reduction <add>, %122, %cst_31 [2] : vector<8x8x8xf32> to vector<8x8xf32>
    %124 = vector.shape_cast %123 : vector<8x8xf32> to vector<8x8x1xf32>
    %125 = tpu.reciprocal %124 {approx = true} : vector<8x8x1xf32> -> vector<8x8x1xf32>
    %126 = vector.broadcast %125 : vector<8x8x1xf32> to vector<8x8x8xf32>
    %127 = arith.mulf %122, %126 : vector<8x8x8xf32>
    %128 = arith.truncf %127 : vector<8x8x8xf32> to vector<8x8x8xbf16>
    "tpu.trace_start"() <{level = 10 : i32, message = "bqk,bkd->bqd"}> : () -> ()
    %cst_32 = arith.constant dense<0.000000e+00> : vector<8x8x8xf32>
    %129 = tpu.matmul %128, %116, %cst_32 {dimension_numbers = #tpu.dot_dimension_numbers<[2], [1], [1], [2], [0, 0, 0, 1, 1, 2], [0], [0]>} : vector<8x8x8xbf16>, vector<8x8x8xbf16>, vector<8x8x8xf32> -> vector<8x8x8xf32>
    "tpu.trace_stop"() : () -> ()
    %130 = vector.extract_strided_slice %110 {offsets = [0, 0, 8], sizes = [8, 8, 8], strides = [1, 1, 1]} : vector<8x8x96xf32> to vector<8x8x8xf32>
    %131 = arith.truncf %130 : vector<8x8x8xf32> to vector<8x8x8xbf16>
    %132 = vector.extract_strided_slice %110 {offsets = [0, 0, 40], sizes = [8, 8, 8], strides = [1, 1, 1]} : vector<8x8x96xf32> to vector<8x8x8xf32>
    %133 = arith.truncf %132 : vector<8x8x8xf32> to vector<8x8x8xbf16>
    %134 = vector.extract_strided_slice %110 {offsets = [0, 0, 72], sizes = [8, 8, 8], strides = [1, 1, 1]} : vector<8x8x96xf32> to vector<8x8x8xf32>
    %135 = arith.truncf %134 : vector<8x8x8xf32> to vector<8x8x8xbf16>
    "tpu.trace_start"() <{level = 10 : i32, message = "bqd,bkd->bqk"}> : () -> ()
    %cst_33 = arith.constant dense<0.000000e+00> : vector<8x8x8xf32>
    %136 = tpu.matmul %131, %133, %cst_33 {dimension_numbers = #tpu.dot_dimension_numbers<[2], [2], [1], [1], [0, 0, 0, 1, 1, 1], [0], [0]>} : vector<8x8x8xbf16>, vector<8x8x8xbf16>, vector<8x8x8xf32> -> vector<8x8x8xf32>
    "tpu.trace_stop"() : () -> ()
    %cst_34 = arith.constant dense<0xFF800000> : vector<8x8xf32>
    %137 = vector.multi_reduction <maximumf>, %136, %cst_34 [2] : vector<8x8x8xf32> to vector<8x8xf32>
    %138 = vector.shape_cast %137 : vector<8x8xf32> to vector<8x8x1xf32>
    %139 = vector.broadcast %138 : vector<8x8x1xf32> to vector<8x8x8xf32>
    %140 = arith.subf %136, %139 : vector<8x8x8xf32>
    %141 = math.exp %140 : vector<8x8x8xf32>
    %cst_35 = arith.constant dense<0.000000e+00> : vector<8x8xf32>
    %142 = vector.multi_reduction <add>, %141, %cst_35 [2] : vector<8x8x8xf32> to vector<8x8xf32>
    %143 = vector.shape_cast %142 : vector<8x8xf32> to vector<8x8x1xf32>
    %144 = tpu.reciprocal %143 {approx = true} : vector<8x8x1xf32> -> vector<8x8x1xf32>
    %145 = vector.broadcast %144 : vector<8x8x1xf32> to vector<8x8x8xf32>
    %146 = arith.mulf %141, %145 : vector<8x8x8xf32>
    %147 = arith.truncf %146 : vector<8x8x8xf32> to vector<8x8x8xbf16>
    "tpu.trace_start"() <{level = 10 : i32, message = "bqk,bkd->bqd"}> : () -> ()
    %cst_36 = arith.constant dense<0.000000e+00> : vector<8x8x8xf32>
    %148 = tpu.matmul %147, %135, %cst_36 {dimension_numbers = #tpu.dot_dimension_numbers<[2], [1], [1], [2], [0, 0, 0, 1, 1, 2], [0], [0]>} : vector<8x8x8xbf16>, vector<8x8x8xbf16>, vector<8x8x8xf32> -> vector<8x8x8xf32>
    "tpu.trace_stop"() : () -> ()
    %149 = vector.extract_strided_slice %110 {offsets = [0, 0, 16], sizes = [8, 8, 8], strides = [1, 1, 1]} : vector<8x8x96xf32> to vector<8x8x8xf32>
    %150 = arith.truncf %149 : vector<8x8x8xf32> to vector<8x8x8xbf16>
    %151 = vector.extract_strided_slice %110 {offsets = [0, 0, 48], sizes = [8, 8, 8], strides = [1, 1, 1]} : vector<8x8x96xf32> to vector<8x8x8xf32>
    %152 = arith.truncf %151 : vector<8x8x8xf32> to vector<8x8x8xbf16>
    %153 = vector.extract_strided_slice %110 {offsets = [0, 0, 80], sizes = [8, 8, 8], strides = [1, 1, 1]} : vector<8x8x96xf32> to vector<8x8x8xf32>
    %154 = arith.truncf %153 : vector<8x8x8xf32> to vector<8x8x8xbf16>
    "tpu.trace_start"() <{level = 10 : i32, message = "bqd,bkd->bqk"}> : () -> ()
    %cst_37 = arith.constant dense<0.000000e+00> : vector<8x8x8xf32>
    %155 = tpu.matmul %150, %152, %cst_37 {dimension_numbers = #tpu.dot_dimension_numbers<[2], [2], [1], [1], [0, 0, 0, 1, 1, 1], [0], [0]>} : vector<8x8x8xbf16>, vector<8x8x8xbf16>, vector<8x8x8xf32> -> vector<8x8x8xf32>
    "tpu.trace_stop"() : () -> ()
    %cst_38 = arith.constant dense<0xFF800000> : vector<8x8xf32>
    %156 = vector.multi_reduction <maximumf>, %155, %cst_38 [2] : vector<8x8x8xf32> to vector<8x8xf32>
    %157 = vector.shape_cast %156 : vector<8x8xf32> to vector<8x8x1xf32>
    %158 = vector.broadcast %157 : vector<8x8x1xf32> to vector<8x8x8xf32>
    %159 = arith.subf %155, %158 : vector<8x8x8xf32>
    %160 = math.exp %159 : vector<8x8x8xf32>
    %cst_39 = arith.constant dense<0.000000e+00> : vector<8x8xf32>
    %161 = vector.multi_reduction <add>, %160, %cst_39 [2] : vector<8x8x8xf32> to vector<8x8xf32>
    %162 = vector.shape_cast %161 : vector<8x8xf32> to vector<8x8x1xf32>
    %163 = tpu.reciprocal %162 {approx = true} : vector<8x8x1xf32> -> vector<8x8x1xf32>
    %164 = vector.broadcast %163 : vector<8x8x1xf32> to vector<8x8x8xf32>
    %165 = arith.mulf %160, %164 : vector<8x8x8xf32>
    %166 = arith.truncf %165 : vector<8x8x8xf32> to vector<8x8x8xbf16>
    "tpu.trace_start"() <{level = 10 : i32, message = "bqk,bkd->bqd"}> : () -> ()
    %cst_40 = arith.constant dense<0.000000e+00> : vector<8x8x8xf32>
    %167 = tpu.matmul %166, %154, %cst_40 {dimension_numbers = #tpu.dot_dimension_numbers<[2], [1], [1], [2], [0, 0, 0, 1, 1, 2], [0], [0]>} : vector<8x8x8xbf16>, vector<8x8x8xbf16>, vector<8x8x8xf32> -> vector<8x8x8xf32>
    "tpu.trace_stop"() : () -> ()
    %168 = vector.extract_strided_slice %110 {offsets = [0, 0, 24], sizes = [8, 8, 8], strides = [1, 1, 1]} : vector<8x8x96xf32> to vector<8x8x8xf32>
    %169 = arith.truncf %168 : vector<8x8x8xf32> to vector<8x8x8xbf16>
    %170 = vector.extract_strided_slice %110 {offsets = [0, 0, 56], sizes = [8, 8, 8], strides = [1, 1, 1]} : vector<8x8x96xf32> to vector<8x8x8xf32>
    %171 = arith.truncf %170 : vector<8x8x8xf32> to vector<8x8x8xbf16>
    %172 = vector.extract_strided_slice %110 {offsets = [0, 0, 88], sizes = [8, 8, 8], strides = [1, 1, 1]} : vector<8x8x96xf32> to vector<8x8x8xf32>
    %173 = arith.truncf %172 : vector<8x8x8xf32> to vector<8x8x8xbf16>
    "tpu.trace_start"() <{level = 10 : i32, message = "bqd,bkd->bqk"}> : () -> ()
    %cst_41 = arith.constant dense<0.000000e+00> : vector<8x8x8xf32>
    %174 = tpu.matmul %169, %171, %cst_41 {dimension_numbers = #tpu.dot_dimension_numbers<[2], [2], [1], [1], [0, 0, 0, 1, 1, 1], [0], [0]>} : vector<8x8x8xbf16>, vector<8x8x8xbf16>, vector<8x8x8xf32> -> vector<8x8x8xf32>
    "tpu.trace_stop"() : () -> ()
    %cst_42 = arith.constant dense<0xFF800000> : vector<8x8xf32>
    %175 = vector.multi_reduction <maximumf>, %174, %cst_42 [2] : vector<8x8x8xf32> to vector<8x8xf32>
    %176 = vector.shape_cast %175 : vector<8x8xf32> to vector<8x8x1xf32>
    %177 = vector.broadcast %176 : vector<8x8x1xf32> to vector<8x8x8xf32>
    %178 = arith.subf %174, %177 : vector<8x8x8xf32>
    %179 = math.exp %178 : vector<8x8x8xf32>
    %cst_43 = arith.constant dense<0.000000e+00> : vector<8x8xf32>
    %180 = vector.multi_reduction <add>, %179, %cst_43 [2] : vector<8x8x8xf32> to vector<8x8xf32>
    %181 = vector.shape_cast %180 : vector<8x8xf32> to vector<8x8x1xf32>
    %182 = tpu.reciprocal %181 {approx = true} : vector<8x8x1xf32> -> vector<8x8x1xf32>
    %183 = vector.broadcast %182 : vector<8x8x1xf32> to vector<8x8x8xf32>
    %184 = arith.mulf %179, %183 : vector<8x8x8xf32>
    %185 = arith.truncf %184 : vector<8x8x8xf32> to vector<8x8x8xbf16>
    "tpu.trace_start"() <{level = 10 : i32, message = "bqk,bkd->bqd"}> : () -> ()
    %cst_44 = arith.constant dense<0.000000e+00> : vector<8x8x8xf32>
    %186 = tpu.matmul %185, %173, %cst_44 {dimension_numbers = #tpu.dot_dimension_numbers<[2], [1], [1], [2], [0, 0, 0, 1, 1, 2], [0], [0]>} : vector<8x8x8xbf16>, vector<8x8x8xbf16>, vector<8x8x8xf32> -> vector<8x8x8xf32>
    "tpu.trace_stop"() : () -> ()
    %187 = tpu.concatenate %129, %148, %167, %186 in 2 : vector<8x8x8xf32>, vector<8x8x8xf32>, vector<8x8x8xf32>, vector<8x8x8xf32> -> vector<8x8x32xf32>
    %188 = vector.shape_cast %187 : vector<8x8x32xf32> to vector<64x32xf32>
    %189 = tpu.transpose %3, [1, 0] : vector<64x64xf32> -> vector<64x64xf32>
    %cst_45 = arith.constant dense<0.000000e+00> : vector<64x32xf32>
    %190 = tpu.matmul %189, %188, %cst_45 {dimension_numbers = #tpu.dot_dimension_numbers<[1], [0], [0], [1], [0, 0, 1, 1], [], []>} : vector<64x64xf32>, vector<64x32xf32>, vector<64x32xf32> -> vector<64x32xf32>
    %c128_46 = arith.constant 128 : index
    %c0_47 = arith.constant 0 : index
    %191 = vector.load %arg3[%c128_46, %c0_47] : memref<192x32xbf16, #tpu.memory_space<vmem>>, vector<64x32xbf16>
    %c0_48 = arith.constant 0 : index
    %c320 = arith.constant 320 : index
    %192 = vector.load %arg4[%c0_48, %c320] : memref<1x384xf32, #tpu.memory_space<vmem>>, vector<1x32xf32>
    %193 = tpu.concatenate %109, %190 in 1 : vector<64x32xf32>, vector<64x32xf32> -> vector<64x64xf32>
    %194 = arith.truncf %193 : vector<64x64xf32> to vector<64x64xbf16>
    %cst_49 = arith.constant dense<0.000000e+00> : vector<64x32xf32>
    %195 = tpu.matmul %194, %191, %cst_49 {dimension_numbers = #tpu.dot_dimension_numbers<[1], [0], [0], [1], [0, 0, 1, 1], [], []>} : vector<64x64xbf16>, vector<64x32xbf16>, vector<64x32xf32> -> vector<64x32xf32>
    %196 = vector.broadcast %192 : vector<1x32xf32> to vector<64x32xf32>
    %197 = arith.addf %195, %196 : vector<64x32xf32>
    %198 = arith.addf %197, %2 : vector<64x32xf32>
    %cst_50 = arith.constant dense<0.000000e+00> : vector<32xf32>
    %199 = vector.multi_reduction <add>, %198, %cst_50 [0] : vector<64x32xf32> to vector<32xf32>
    %200 = vector.shape_cast %199 : vector<32xf32> to vector<1x32xf32>
    %cst_51 = arith.constant 6.400000e+01 : f32
    %201 = vector.broadcast %cst_51 : f32 to vector<1x32xf32>
    %202 = arith.divf %200, %201 : vector<1x32xf32>
    %203 = vector.broadcast %202 : vector<1x32xf32> to vector<64x32xf32>
    %204 = arith.subf %198, %203 : vector<64x32xf32>
    %205 = arith.mulf %204, %204 : vector<64x32xf32>
    %cst_52 = arith.constant dense<0.000000e+00> : vector<32xf32>
    %206 = vector.multi_reduction <add>, %205, %cst_52 [0] : vector<64x32xf32> to vector<32xf32>
    %207 = vector.shape_cast %206 : vector<32xf32> to vector<1x32xf32>
    %cst_53 = arith.constant 6.400000e+01 : f32
    %208 = vector.broadcast %cst_53 : f32 to vector<1x32xf32>
    %209 = arith.divf %207, %208 : vector<1x32xf32>
    %210 = vector.broadcast %202 : vector<1x32xf32> to vector<64x32xf32>
    %211 = arith.subf %198, %210 : vector<64x32xf32>
    %cst_54 = arith.constant 9.99999974E-6 : f32
    %212 = vector.broadcast %cst_54 : f32 to vector<1x32xf32>
    %213 = arith.addf %209, %212 : vector<1x32xf32>
    %214 = math.rsqrt %213 : vector<1x32xf32>
    %215 = vector.broadcast %214 : vector<1x32xf32> to vector<64x32xf32>
    %216 = arith.mulf %211, %215 : vector<64x32xf32>
    %217 = arith.truncf %216 : vector<64x32xf32> to vector<64x32xbf16>
    %c0_55 = arith.constant 0 : index
    %c0_56 = arith.constant 0 : index
    %218 = vector.load %arg2[%c0_55, %c0_56] : memref<32x320xbf16, #tpu.memory_space<vmem>>, vector<32x128xbf16>
    %cst_57 = arith.constant dense<0.000000e+00> : vector<64x128xf32>
    %219 = tpu.matmul %217, %218, %cst_57 {dimension_numbers = #tpu.dot_dimension_numbers<[1], [0], [0], [1], [0, 0, 1, 1], [], []>} : vector<64x32xbf16>, vector<32x128xbf16>, vector<64x128xf32> -> vector<64x128xf32>
    %c0_58 = arith.constant 0 : index
    %c0_59 = arith.constant 0 : index
    %220 = vector.load %arg4[%c0_58, %c0_59] : memref<1x384xf32, #tpu.memory_space<vmem>>, vector<1x128xf32>
    %221 = vector.broadcast %220 : vector<1x128xf32> to vector<64x128xf32>
    %222 = arith.addf %219, %221 : vector<64x128xf32>
    %cst_60 = arith.constant 0.000000e+00 : f32
    %223 = vector.broadcast %cst_60 : f32 to vector<64x128xf32>
    %224 = arith.maximumf %222, %223 : vector<64x128xf32>
    %225 = arith.truncf %224 : vector<64x128xf32> to vector<64x128xbf16>
    %c0_61 = arith.constant 0 : index
    %c0_62 = arith.constant 0 : index
    %226 = vector.load %arg3[%c0_61, %c0_62] : memref<192x32xbf16, #tpu.memory_space<vmem>>, vector<128x32xbf16>
    %cst_63 = arith.constant dense<0.000000e+00> : vector<64x32xf32>
    %227 = tpu.matmul %225, %226, %cst_63 {dimension_numbers = #tpu.dot_dimension_numbers<[1], [0], [0], [1], [0, 0, 1, 1], [], []>} : vector<64x128xbf16>, vector<128x32xbf16>, vector<64x32xf32> -> vector<64x32xf32>
    %c0_64 = arith.constant 0 : index
    %c352 = arith.constant 352 : index
    %228 = vector.load %arg4[%c0_64, %c352] : memref<1x384xf32, #tpu.memory_space<vmem>>, vector<1x32xf32>
    %229 = vector.broadcast %228 : vector<1x32xf32> to vector<64x32xf32>
    %230 = arith.addf %227, %229 : vector<64x32xf32>
    %231 = arith.addf %230, %198 : vector<64x32xf32>
    %232 = tpu.transpose %231, [1, 0] : vector<64x32xf32> -> vector<32x64xf32>
    %c0_65 = arith.constant 0 : index
    %c0_66 = arith.constant 0 : index
    %c0_67 = arith.constant 0 : index
    %233 = vector.load %arg6[%c0_65, %c0_66, %c0_67] : memref<1x32x64xf32, #tpu.memory_space<vmem>>, vector<1x32x64xf32>
    %234 = vector.shape_cast %233 : vector<1x32x64xf32> to vector<32x64xf32>
    %235 = vector.shape_cast %232 : vector<32x64xf32> to vector<1x32x64xf32>
    tpu.vector_store %arg6[%c0_65, %c0_66, %c0_67], %235 {strides = array<i32>} : memref<1x32x64xf32, #tpu.memory_space<vmem>>, vector<1x32x64xf32>,
    return
  }
  func.func @transform_0(%arg0: i32) -> (i32, i32, i32) {
    %c0_i32 = arith.constant 0 : i32
    %c0_i32_0 = arith.constant 0 : i32
    %c0_i32_1 = arith.constant 0 : i32
    return %arg0, %c0_i32, %c0_i32_0 : i32, i32, i32
  }
  func.func @transform_1(%arg0: i32) -> (i32, i32) {
    %c0_i32 = arith.constant 0 : i32
    %c0_i32_0 = arith.constant 0 : i32
    %c0_i32_1 = arith.constant 0 : i32
    return %c0_i32, %c0_i32_0 : i32, i32
  }
  func.func @transform_2(%arg0: i32) -> (i32, i32) {
    %c0_i32 = arith.constant 0 : i32
    %c0_i32_0 = arith.constant 0 : i32
    %c0_i32_1 = arith.constant 0 : i32
    return %c0_i32, %c0_i32_0 : i32, i32
  }
  func.func @transform_3(%arg0: i32) -> (i32, i32) {
    %c0_i32 = arith.constant 0 : i32
    %c0_i32_0 = arith.constant 0 : i32
    %c0_i32_1 = arith.constant 0 : i32
    return %c0_i32, %c0_i32_0 : i32, i32
  }
  func.func @transform_4(%arg0: i32) -> (i32, i32) {
    %c0_i32 = arith.constant 0 : i32
    %c0_i32_0 = arith.constant 0 : i32
    %c0_i32_1 = arith.constant 0 : i32
    return %c0_i32, %c0_i32_0 : i32, i32
  }
  func.func @transform_5(%arg0: i32) -> (i32, i32, i32) {
    %c0_i32 = arith.constant 0 : i32
    %c0_i32_0 = arith.constant 0 : i32
    %c0_i32_1 = arith.constant 0 : i32
    return %arg0, %c0_i32, %c0_i32_0 : i32, i32, i32
  }
}

</mosaic_0001>

<bundles_post_ra>
// kernel: block_forward.1
= control target key start
LH: loop header
LB: loop body
LE: loop exit
PB: predicated region body
PF: predicated region fallthrough
CT: control target
= control target key end

     0   :  { %s10526_s18 = smov 0   ;;  %s12741_s0 = inlined_call_operand.vmem [shape: f32[2,32,64], index: 0, kind: input, shape index: {}]   ;;  %s12742_s1 = inlined_call_operand.vmem [shape: bf16[32,320], index: 1, kind: input, shape index: {}]   ;;  %s12743_s2 = inlined_call_operand.vmem [shape: bf16[192,32], index: 2, kind: input, shape index: {}]   ;;  %s12744_s3 = inlined_call_operand.vmem [shape: f32[1,384], index: 3, kind: input, shape index: {}]   ;;  %s12745_s4 = inlined_call_operand.vmem [shape: f32[64,64], index: 4, kind: input, shape index: {}]   ;;  %s12746_s5 = inlined_call_operand.vmem [shape: f32[2,32,64], index: 5, kind: output, shape index: {}]  }
   0x1 LB: > { %s8693_s19 = sadd.s32 4294967295, %s10476_s18   ;;  %p8697_p0 = scmp.ge.s32.totalorder %s10476_s18, 1  ;;  %s10476_s18 = sphi %s10526_s18, %s15_s18  }
   0x2   : > { %p187_p1 = scmp.lt.s32.totalorder %s10476_s18, 3 }
   0x4   : > { %p188_p2 = pnand %p8697_p0, %p187_p1 }
   0x6   : > { %191 = sbr.rel (%p188_p2) target bundleno = 7026 (0x1b72), region = 40 }
   0xb   : > { %p215_p3 = scmp.lt.s32.totalorder %s8693_s19, 1  ;;  %v10182_v4 = vld [vmem:[%s12742_s1 + $0x20] ss:$12 sps:$4 sm:$0xff]   ;;  %v10184_v5 = vld [vmem:[%s12742_s1 + $0x1c] ss:$12 sps:$4 sm:$0xff]   ;;  %v10478_v8 = vmov 0  }
   0xc   : > { %406 = vmatprep.subr.bf16.mxu0 %v10182_v4  ;;  %10072 = vmatprep.subr.bf16.mxu1 %v10182_v4  ;;  %v10185_v6 = vld [vmem:[%s12742_s1 + $0x8] ss:$12 sps:$4 sm:$0xff]   ;;  %v10187_v7 = vld [vmem:[%s12742_s1 + $0x4] ss:$12 sps:$4 sm:$0xff]   ;;  %vm270_vm0 = vcmask 261120   ;;  %s10479_s9 = smov 32  }
   0xd   : > { %s12826_s19 = smov (!%p215_p3, %s8693_s19), 1  ;;  %407 = vmatpush1.bf16.msra.mxu0 %v10184_v5  ;;  %10074 = vmatpush1.bf16.msra.mxu1 %v10184_v5  ;;  %s10480_s10 = smov 96   ;;  %vm531_vm1 = vcmask 523264   ;;  %vm10483_vm2 = vmmov 0   ;;  %vm672_vm3 = vcmask 64512   ;;  %vm1163_vm4 = vcmask 1043456  }
   0xe   : > { %s8880_s20 = sshll.u32 %s12826_s19, 5  ;;  %426 = vmatprep.mubr.bf16.mxu0 %v10478_v8  ;;  %446 = vmatprep.mubr.bf16.mxu1 %v10478_v8  ;;  %s10481_s11 = smov 64   ;;  %vm4287_vm5 = vcmask 130048   ;;  %vm4296_vm6 = vcmask 195584  }
   0xf   : > { %s219_s23 = scalar_lea.vmem %s12741_s0, %s8880_s20  ;;  %408 = vmatprep.subr.bf16.mxu0 %v10185_v6  ;;  %10073 = vmatprep.subr.bf16.mxu1 %v10185_v6  ;;  %s10484_s6 = smov 88  }
  0x10   : > { %v226_v0 = vld [vmem:[%s219_s23] sm:$0xff]  ;;  %v227_v1 = vld [vmem:[%s219_s23 + $0x8] sm:$0xff]  ;;  %v228_v2 = vld [vmem:[%s219_s23 + $0x10] sm:$0xff]  ;;  %s10485_s7 = smov 120   ;;  %s10486_s8 = smov 56  }
  0x11   : > { %230 = vxpose.xlu0.b32.start [1/4] (short) (narrow) %v226_v0, 64  ;;  %v229_v3 = vld [vmem:[%s219_s23 + $0x18] sm:$0xff]  ;;  %409 = vmatpush1.bf16.msra.mxu0 %v10187_v7  ;;  %s10487_s12 = smov 80   ;;  %s10488_s13 = smov 112  }
  0x12   : > { %10075 = vmatpush1.bf16.msra.mxu1 %v10187_v7  ;;  %s10489_s14 = smov 48   ;;  %s10490_s15 = smov 72  }
  0x13   : > { %s10491_s16 = smov 104   ;;  %s10492_s17 = smov 40  }
  0x14   : > { %s10494_s21 = smov 16   ;;  %s10495_s22 = smov 24  }
  0x15   : > { %231 = vxpose.xlu0.b32.cont [2/4] (short) (narrow) %v227_v1, 64 }
  0x19   : > { %232 = vxpose.xlu0.b32.cont [3/4] (short) (narrow) %v228_v2, 64 }
  0x1d   : > { %233 = vxpose.xlu0.b32.end [4/4] (short) (narrow) %v229_v3, 64 }
  0x8d   : > { %v10556_v9 = vpop.trf.xlu0 }
  0x8e   : > { %12759 = vst [vmem:[#allocation2_spill] sm:$0xff] %v10556_v9  ;;  %v271_v15 = vsel %vm270_vm0, %v10556_v9, 0.0 }
  0x91   : > { %v10558_v10 = vpop.trf.xlu0 }
  0x92   : > { %12760 = vst [vmem:[#allocation3_spill] sm:$0xff] %v10558_v10  ;;  %v272_v13 = vsel %vm270_vm0, %v10558_v10, 0.0 }
  0x93   : > { %v273_v17 = vadd.f32 %v272_v13, %v271_v15 }
  0x95   : > { %v10560_v11 = vpop.trf.xlu0 }
  0x96   : > { %12761 = vst [vmem:[#allocation4_spill] sm:$0xff] %v10560_v11  ;;  %v274_v16 = vsel %vm270_vm0, %v10560_v11, 0.0 }
  0x97   : > { %v275_v19 = vadd.f32 %v274_v16, %v273_v17 }
  0x99   : > { %v10562_v12 = vpop.trf.xlu0 }
  0x9a   : > { %12762 = vst [vmem:[#allocation5_spill] sm:$0xff] %v10562_v12  ;;  %v276_v18 = vsel %vm270_vm0, %v10562_v12, 0.0 }
  0x9b   : > { %v277_v22 = vadd.f32 %v276_v18, %v275_v19 }
  0x9d   : > { %v10566_v14 = vpop.trf.xlu0 }
  0x9e   : > { %12763 = vst [vmem:[#allocation6_spill] sm:$0xff] %v10566_v14  ;;  %v278_v21 = vsel %vm270_vm0, %v10566_v14, 0.0 }
  0x9f   : > { %v279_v24 = vadd.f32 %v278_v21, %v277_v22 }
  0xa1   : > { %v10574_v20 = vpop.trf.xlu0 }
  0xa2   : > { %12764 = vst [vmem:[#allocation7_spill] sm:$0xff] %v10574_v20  ;;  %v280_v23 = vsel %vm270_vm0, %v10574_v20, 0.0 }
  0xa3   : > { %v281_v27 = vadd.f32 %v280_v23, %v279_v24 }
  0xa5   : > { %v10580_v25 = vpop.trf.xlu0 }
  0xa6   : > { %12765 = vst [vmem:[#allocation8_spill] sm:$0xff] %v10580_v25  ;;  %v282_v26 = vsel %vm270_vm0, %v10580_v25, 0.0 }
  0xa7   : > { %v283_v28 = vadd.f32 %v282_v26, %v281_v27 }
  0xa9   : > { %v10584_v29 = vpop.trf.xlu0 }
  0xaa   : > { %12766 = vst [vmem:[#allocation9_spill] sm:$0xff] %v10584_v29  ;;  %v284_v30 = vsel %vm270_vm0, %v10584_v29, 0.0 }
  0xab   : > { %v285_v31 = vadd.f32 %v284_v30, %v283_v28 }
  0xad   : > { %v286_v32 = vrot.slane %v285_v31, 4 }
  0xaf   : > { %v287_v33 = vadd.f32 %v286_v32, %v285_v31 }
  0xb1   : > { %v288_v34 = vrot.slane %v287_v33, 2 }
  0xb3   : > { %v289_v35 = vadd.f32 %v288_v34, %v287_v33 }
  0xb5   : > { %v290_v36 = vrot.slane %v289_v35, 1 }
  0xb7   : > { %v291_v37 = vadd.f32 %v290_v36, %v289_v35  ;;  %v352_v36 = vlaneseq }
  0xb9   : > { %v293_v38 = vmul.f32 0.015625, %v291_v37  ;;  %v353_v37 = vshrl.u32 %v352_v36, 7 }
  0xbb   : > { %v294_v39 = vsub.f32 %v10556_v9, %v293_v38  ;;  %v295_v40 = vsub.f32 %v10558_v10, %v293_v38  ;;  %v296_v41 = vsub.f32 %v10560_v11, %v293_v38  ;;  %v297_v42 = vsub.f32 %v10562_v12, %v293_v38 }
  0xbc   : > { %v298_v43 = vsub.f32 %v10566_v14, %v293_v38  ;;  %v299_v47 = vsub.f32 %v10574_v20, %v293_v38  ;;  %v300_v52 = vsub.f32 %v10580_v25, %v293_v38  ;;  %v301_v56 = vsub.f32 %v10584_v29, %v293_v38 }
  0xbd   : > { %v302_v44 = vmul.f32 %v294_v39, %v294_v39  ;;  %v303_v45 = vmul.f32 %v295_v40, %v295_v40  ;;  %v304_v46 = vmul.f32 %v296_v41, %v296_v41  ;;  %v305_v48 = vmul.f32 %v297_v42, %v297_v42 }
  0xbe   : > { %v306_v53 = vmul.f32 %v298_v43, %v298_v43  ;;  %v307_v57 = vmul.f32 %v299_v47, %v299_v47  ;;  %v308_v60 = vmul.f32 %v300_v52, %v300_v52  ;;  %v309_v63 = vmul.f32 %v301_v56, %v301_v56 }
  0xbf   : > { %v310_v49 = vsel %vm270_vm0, %v302_v44, 0.0  ;;  %v311_v50 = vsel %vm270_vm0, %v303_v45, 0.0  ;;  %v313_v54 = vsel %vm270_vm0, %v304_v46, 0.0  ;;  %v315_v58 = vsel %vm270_vm0, %v305_v48, 0.0 }
  0xc0   : > { %v312_v51 = vadd.f32 %v311_v50, %v310_v49  ;;  %v317_v61 = vsel %vm270_vm0, %v306_v53, 0.0  ;;  %v319_v0 = vsel %vm270_vm0, %v307_v57, 0.0  ;;  %v321_v2 = vsel %vm270_vm0, %v308_v60, 0.0 }
  0xc1   : > { %v323_v4 = vsel %vm270_vm0, %v309_v63, 0.0  ;;  %v354_v38 = vsub.s32 0, %v353_v37 }
  0xc2   : > { %v314_v55 = vadd.f32 %v313_v54, %v312_v51 }
  0xc4   : > { %v316_v59 = vadd.f32 %v315_v58, %v314_v55 }
  0xc6   : > { %v318_v62 = vadd.f32 %v317_v61, %v316_v59 }
  0xc8   : > { %v320_v1 = vadd.f32 %v319_v0, %v318_v62 }
  0xca   : > { %v322_v3 = vadd.f32 %v321_v2, %v320_v1 }
  0xcc   : > { %v324_v5 = vadd.f32 %v323_v4, %v322_v3 }
  0xce   : > { %v325_v6 = vrot.slane %v324_v5, 4 }
  0xd0   : > { %v326_v7 = vadd.f32 %v325_v6, %v324_v5 }
  0xd2   : > { %v327_v13 = vrot.slane %v326_v7, 2 }
  0xd4   : > { %v328_v15 = vadd.f32 %v327_v13, %v326_v7 }
  0xd6   : > { %v329_v16 = vrot.slane %v328_v15, 1 }
  0xd8   : > { %v330_v17 = vadd.f32 %v329_v16, %v328_v15  ;;  %v262_v16 = vld [vmem:[%s12745_s4] sm:$0xff] }
  0xda   : > { %v331_v18 = vmul.f32 0.015625, %v330_v17 }
  0xdc   : > { %v332_v19 = vadd.f32 1e-05, %v331_v18  ;;  %v12747_v18 = vmov 0.0  }
  0xdd   : > { %9230 = vmatprep.subr.bf16.mxu0 %v12747_v18 }
  0xde   : > { %10202 = vrsqrt.f32 %v332_v19 }
  0xeb   : > { %v10203_v21 = vpop.eup %10202 }
  0xec   : > { %v334_v22 = vmul.f32 %v10203_v21, %v294_v39  ;;  %v335_v23 = vmul.f32 %v10203_v21, %v295_v40  ;;  %v338_v24 = vmul.f32 %v10203_v21, %v298_v43  ;;  %v339_v26 = vmul.f32 %v10203_v21, %v299_v47  ;;  %v346_v39 = vld [vmem:[%s12744_s3 + $0x1] sm:$0x3] }
  0xed   : > { %v336_v30 = vmul.f32 %v10203_v21, %v296_v41  ;;  %v337_v31 = vmul.f32 %v10203_v21, %v297_v42  ;;  %v341_v32 = vmul.f32 %v10203_v21, %v301_v56  ;;  %v340_v33 = vmul.f32 %v10203_v21, %v300_v52 }
  0xee   : > { %v347_v27 = vpack.c.bf16 %v335_v23, %v334_v22  ;;  %v349_v28 = vpack.c.bf16 %v339_v26, %v338_v24  ;;  %v355_v40 = vrot.slane %v346_v39, %v354_v38  ;;  %v358_v43 = vsub.s32 1, %v353_v37 }
  0xef   : > { %v348_v34 = vpack.c.bf16 %v337_v31, %v336_v30  ;;  %v350_v35 = vpack.c.bf16 %v341_v32, %v340_v33 }
  0xf0   : > { %8706 = vmatmul.mubr.msk.bf16.vlgmr.msra.gmra.mxu0 %vm270_vm0, %v347_v27  ;;  %8708 = vmatmul.mubr.msk.bf16.vlgmr.msra.gmra.mxu1 %vm270_vm0, %v349_v28  ;;  %v359_v44 = vrot.slane %v346_v39, %v358_v43 }
  0xf1   : > { %436 = vmatprep.mubr.bf16.mxu0 %v10478_v8  ;;  %456 = vmatprep.mubr.bf16.mxu1 %v10478_v8 }
  0xf8   : > { %8707 = vmatmul.mubr.msk.bf16.gmra.mxu0 %vm270_vm0, %v348_v34  ;;  %8709 = vmatmul.mubr.msk.bf16.gmra.mxu1 %vm270_vm0, %v350_v35 }
  0xf9   : > { %9212 = vmatprep.mubr.msk.f32.mxu1 %vm531_vm1, %v262_v16  ;;  %9232 = vmatprep.mubr.msk.bf16.mxu0 %vm10483_vm2, %v12747_v18 }
 0x1b0   : > { %v428_v8 = vpop.f32.mrf.mxu0  ;;  %v448_v41 = vpop.f32.mrf.mxu1 }
 0x1b1   : > { %v10613_v42 = vadd.f32 %v448_v41, %v355_v40  ;;  %v429_v19 = vadd.f32 %v428_v8, %v355_v40 }
 0x1b2   : > { %v430_v45 = vpop.f32.mrf.mxu0  ;;  %v450_v46 = vpop.f32.mrf.mxu1 }
 0x1b3   : > { %499 = vrot.lane.b32.xlu1 %v10613_v42, %s10479_s9  ;;  %v451_v48 = vadd.f32 %v450_v46, %v359_v44  ;;  %v431_v21 = vadd.f32 %v430_v45, %v359_v44  ;;  %v10653_v22 = vpack.c.bf16 %v429_v19, %v429_v19  ;;  %v10667_v26 = vpack.c.bf16 %v10613_v42, %v10613_v42 }
 0x1b4   : > { %v452_v47 = vpop.f32.mrf.mxu1  ;;  %v432_v50 = vpop.f32.mrf.mxu0 }
 0x1b5   : > { %v453_v49 = vadd.f32 %v452_v47, %v355_v40  ;;  %v433_v53 = vadd.f32 %v432_v50, %v355_v40 }
 0x1b6   : > { %v454_v51 = vpop.f32.mrf.mxu1  ;;  %v434_v59 = vpop.f32.mrf.mxu0 }
 0x1b7   : > { %503 = vrot.lane.b32.xlu0 %v453_v49, %s10479_s9  ;;  %501 = vrot.lane.b32.xlu1 %v451_v48, %s10479_s9  ;;  %v10619_v54 = vpack.c.bf16 %v453_v49, %v453_v49  ;;  %v455_v57 = vadd.f32 %v454_v51, %v359_v44  ;;  %v10629_v63 = vpack.c.bf16 %v433_v53, %v433_v53 }
 0x1b8   : > { %v458_v52 = vpop.f32.mrf.mxu1  ;;  %v438_v62 = vpop.f32.mrf.mxu0  ;;  %v435_v13 = vadd.f32 %v434_v59, %v359_v44 }
 0x1b9   : > { %v459_v61 = vadd.f32 %v458_v52, %v355_v40  ;;  %v439_v0 = vadd.f32 %v438_v62, %v355_v40  ;;  %v263_v52 = vld [vmem:[%s12745_s4 + $0x8] sm:$0xff] }
 0x1ba   : > { %v460_v55 = vpop.f32.mrf.mxu1  ;;  %v440_v2 = vpop.f32.mrf.mxu0  ;;  %v267_v62 = vld [vmem:[%s12745_s4 + $0x28] sm:$0xff] }
 0x1bb   : > { %916 = vrot.lane.b32.xlu0 %v10619_v54, %s10480_s10  ;;  %487 = vrot.lane.b32.xlu1 %v433_v53, %s10479_s9  ;;  %v461_v1 = vadd.f32 %v460_v55, %v359_v44  ;;  %v441_v3 = vadd.f32 %v440_v2, %v359_v44  ;;  %v10661_v24 = vpack.c.bf16 %v439_v0, %v439_v0  ;;  %v264_v53 = vld [vmem:[%s12745_s4 + $0x10] sm:$0xff] }
 0x1bc   : > { %v462_v56 = vpop.f32.mrf.mxu1  ;;  %v442_v4 = vpop.f32.mrf.mxu0  ;;  %v10671_v27 = vpack.c.bf16 %v459_v61, %v459_v61 }
 0x1bd   : > { %v463_v58 = vadd.f32 %v462_v56, %v355_v40  ;;  %v443_v5 = vadd.f32 %v442_v4, %v355_v40 }
 0x1be   : > { %v464_v6 = vpop.f32.mrf.mxu1  ;;  %v444_v15 = vpop.f32.mrf.mxu0 }
 0x1bf   : > { %v10624_v60 = vpack.c.bf16 %v463_v58, %v463_v58  ;;  %505 = vrot.lane.b32.xlu1 %v455_v57, %s10479_s9  ;;  %v465_v7 = vadd.f32 %v464_v6, %v359_v44  ;;  %v445_v17 = vadd.f32 %v444_v15, %v359_v44  ;;  %v10657_v23 = vpack.c.bf16 %v443_v5, %v443_v5  ;;  %v265_v57 = vld [vmem:[%s12745_s4 + $0x18] sm:$0xff] }
 0x1c1   : > { %1014 = vrot.lane.b32.xlu0 %v10624_v60, %s10480_s10 }
 0x1c3   : > { %507 = vrot.lane.b32.xlu1 %v459_v61, %s10479_s9 }
 0x1c5   : > { %1207 = vrot.lane.b32.xlu0 %v10629_v63, %s10481_s11 }
 0x1c7   : > { %491 = vrot.lane.b32.xlu1 %v439_v0, %s10479_s9  ;;  %v268_v0 = vld [vmem:[%s12745_s4 + $0x30] sm:$0xff] }
 0x1cb   : > { %509 = vrot.lane.b32.xlu1 %v461_v1, %s10479_s9 }
 0x1cf   : > { %493 = vrot.lane.b32.xlu1 %v441_v3, %s10479_s9  ;;  %v269_v3 = vld [vmem:[%s12745_s4 + $0x38] sm:$0xff] }
 0x1d3   : > { %511 = vrot.lane.b32.xlu1 %v463_v58, %s10479_s9  ;;  %v266_v58 = vld [vmem:[%s12745_s4 + $0x20] sm:$0xff] }
 0x1d7   : > { %495 = vrot.lane.b32.xlu1 %v443_v5, %s10479_s9 }
 0x1db   : > { %513 = vrot.lane.b32.xlu1 %v465_v7, %s10479_s9 }
 0x1df   : > { %489 = vrot.lane.b32.xlu1 %v435_v13, %s10479_s9 }
 0x1e3   : > { %497 = vrot.lane.b32.xlu1 %v445_v17, %s10479_s9 }
 0x1e7   : > { %483 = vrot.lane.b32.xlu1 %v429_v19, %s10479_s9 }
 0x1eb   : > { %485 = vrot.lane.b32.xlu1 %v431_v21, %s10479_s9 }
 0x1ef   : > { %720 = vrot.lane.b32.xlu1 %v10629_v63, %s10480_s10 }
 0x1f3   : > { %670 = vrot.lane.b32.xlu1 %v10653_v22, %s10480_s10 }
 0x1f7   : > { %818 = vrot.lane.b32.xlu1 %v10657_v23, %s10480_s10 }
 0x1fb   : > { %769 = vrot.lane.b32.xlu1 %v10661_v24, %s10480_s10 }
 0x1ff   : > { %867 = vrot.lane.b32.xlu1 %v10667_v26, %s10480_s10 }
 0x203   : > { %965 = vrot.lane.b32.xlu1 %v10671_v27, %s10480_s10 }
 0x207   : > { %1158 = vrot.lane.b32.xlu1 %v10653_v22, %s10481_s11 }
 0x20b   : > { %1255 = vrot.lane.b32.xlu1 %v10661_v24, %s10481_s11 }
 0x20f   : > { %1303 = vrot.lane.b32.xlu1 %v10657_v23, %s10481_s11 }
 0x225   : > { %v500_v28 = vpop.permute.xlu1 %499 }
 0x229   : > { %v502_v30 = vpop.permute.xlu1 %501  ;;  %v504_v8 = vpop.permute.xlu0 %503 }
 0x22a   : > { %v519_v44 = vsel %vm270_vm0, %v500_v28, %v502_v30 }
 0x22d   : > { %v488_v31 = vpop.permute.xlu1 %487  ;;  %v917_v5 = vpop.permute.xlu0 %916 }
 0x22e   : > { %v922_v7 = vsel %vm672_vm3, %v917_v5, 0 }
 0x231   : > { %v506_v32 = vpop.permute.xlu1 %505 }
 0x232   : > { %v520_v42 = vsel %vm270_vm0, %v504_v8, %v506_v32 }
 0x233   : > { %v1015_v15 = vpop.permute.xlu0 %1014 }
 0x234   : > { %v1020_v17 = vsel %vm672_vm3, %v1015_v15, 0 }
 0x235   : > { %v508_v33 = vpop.permute.xlu1 %507 }
 0x237   : > { %v1208_v21 = vpop.permute.xlu0 %1207 }
 0x238   : > { %v1213_v30 = vsel %vm1163_vm4, %v1208_v21, 0 }
 0x239   : > { %v492_v34 = vpop.permute.xlu1 %491 }
 0x23d   : > { %v510_v35 = vpop.permute.xlu1 %509 }
 0x23e   : > { %v521_v43 = vsel %vm270_vm0, %v508_v33, %v510_v35 }
 0x241   : > { %v494_v36 = vpop.permute.xlu1 %493 }
 0x242   : > { %v517_v47 = vsel %vm270_vm0, %v492_v34, %v494_v36 }
 0x245   : > { %v512_v37 = vpop.permute.xlu1 %511 }
 0x249   : > { %v496_v38 = vpop.permute.xlu1 %495 }
 0x24d   : > { %v514_v39 = vpop.permute.xlu1 %513 }
 0x24e   : > { %v522_v40 = vsel %vm270_vm0, %v512_v37, %v514_v39 }
 0x24f   : > { %9196 = vmatprep.subr.mxu1 %v522_v40 }
 0x250   : > { %9197 = vmatpush3.msra.mxu1 %v522_v40 }
 0x251   : > { %9198 = vmatprep.subr.mxu1 %v521_v43  ;;  %v490_v41 = vpop.permute.xlu1 %489 }
 0x252   : > { %9199 = vmatpush3.msra.mxu1 %v521_v43  ;;  %v516_v49 = vsel %vm270_vm0, %v488_v31, %v490_v41 }
 0x253   : > { %9200 = vmatprep.subr.mxu1 %v520_v42 }
 0x254   : > { %9201 = vmatpush3.msra.mxu1 %v520_v42 }
 0x255   : > { %9202 = vmatprep.subr.mxu1 %v519_v44  ;;  %v498_v45 = vpop.permute.xlu1 %497 }
 0x256   : > { %9203 = vmatpush3.msra.mxu1 %v519_v44  ;;  %v518_v46 = vsel %vm270_vm0, %v496_v38, %v498_v45 }
 0x257   : > { %9204 = vmatprep.subr.mxu1 %v518_v46 }
 0x258   : > { %9205 = vmatpush3.msra.mxu1 %v518_v46 }
 0x259   : > { %9206 = vmatprep.subr.mxu1 %v517_v47  ;;  %v484_v48 = vpop.permute.xlu1 %483 }
 0x25a   : > { %9207 = vmatpush3.msra.mxu1 %v517_v47 }
 0x25b   : > { %9208 = vmatprep.subr.mxu1 %v516_v49 }
 0x25c   : > { %9209 = vmatpush3.msra.mxu1 %v516_v49 }
 0x25d   : > { %v486_v50 = vpop.permute.xlu1 %485 }
 0x25e   : > { %v515_v51 = vsel %vm270_vm0, %v484_v48, %v486_v50 }
 0x25f   : > { %9210 = vmatprep.subr.mxu1 %v515_v51 }
 0x260   : > { %9211 = vmatpush3.msra.mxu1 %v515_v51 }
 0x261   : > { %9213 = vmatmul.mubr.msk.f32.vlgmr.msra.gmra.mxu1 %vm531_vm1, %v263_v52  ;;  %v721_v55 = vpop.permute.xlu1 %720  ;;  %9224 = vmatprep.subr.bf16.mxu1 %v12747_v18 }
 0x262   : > { %v726_v56 = vsel %vm672_vm3, %v721_v55, 0  ;;  %9215 = vmatprep.mubr.msk.f32.mxu1 %vm531_vm1, %v264_v53 }
 0x263   : > { %9231 = vmatpush3.bf16.xpose.msra.mxu0 %v726_v56 }
 0x264   : > { %9242 = vmatprep.subr.bf16.mxu0 %v12747_v18 }
 0x265   : > { %9216 = vmatmul.mubr.msk.f32.gmra.mxu1 %vm531_vm1, %v265_v57  ;;  %v671_v59 = vpop.permute.xlu1 %670 }
 0x266   : > { %v677_v61 = vsel %vm672_vm3, %v671_v59, 0  ;;  %9218 = vmatprep.mubr.msk.f32.mxu1 %vm531_vm1, %v266_v58 }
 0x267   : > { %9225 = vmatpush3.bf16.xpose.msra.mxu1 %v677_v61 }
 0x268   : > { %9236 = vmatprep.subr.bf16.mxu1 %v12747_v18 }
 0x269   : > { %9219 = vmatmul.mubr.msk.f32.gmra.mxu1 %vm531_vm1, %v267_v62  ;;  %v819_v1 = vpop.permute.xlu1 %818 }
 0x26a   : > { %v824_v2 = vsel %vm672_vm3, %v819_v1, 0  ;;  %9233 = vmatmul.mubr.msk.bf16.vlgmr.msra.gmra.mxu0 %vm672_vm3, %v10629_v63  ;;  %9221 = vmatprep.mubr.msk.f32.mxu1 %vm531_vm1, %v268_v0 }
 0x26b   : > { %9243 = vmatpush3.bf16.xpose.msra.mxu0 %v824_v2  ;;  %9244 = vmatprep.mubr.msk.bf16.mxu0 %vm10483_vm2, %v12747_v18 }
 0x26c   : > { %9254 = vmatprep.subr.bf16.mxu0 %v12747_v18 }
 0x26d   : > { %9222 = vmatmul.mubr.msk.f32.gmra.mxu1 %vm531_vm1, %v269_v3  ;;  %v770_v4 = vpop.permute.xlu1 %769 }
 0x26e   : > { %9226 = vmatprep.mubr.msk.bf16.mxu1 %vm10483_vm2, %v12747_v18  ;;  %v775_v6 = vsel %vm672_vm3, %v770_v4, 0 }
 0x271   : > { %9227 = vmatmul.mubr.msk.bf16.vlgmr.msra.gmra.mxu1 %vm672_vm3, %v10653_v22  ;;  %v868_v13 = vpop.permute.xlu1 %867 }
 0x272   : > { %9237 = vmatpush3.bf16.xpose.msra.mxu1 %v775_v6  ;;  %9245 = vmatmul.mubr.msk.bf16.vlgmr.msra.gmra.mxu0 %vm672_vm3, %v10657_v23  ;;  %v873_v16 = vsel %vm672_vm3, %v868_v13, 0 }
 0x273   : > { %9255 = vmatpush3.bf16.xpose.msra.mxu0 %v922_v7  ;;  %9238 = vmatprep.mubr.msk.bf16.mxu1 %vm10483_vm2, %v12747_v18 }
 0x274   : > { %9248 = vmatprep.subr.bf16.mxu1 %v12747_v18  ;;  %9256 = vmatprep.mubr.msk.bf16.mxu0 %vm10483_vm2, %v12747_v18 }
 0x275   : > { %9266 = vmatprep.subr.bf16.mxu0 %v12747_v18  ;;  %v966_v19 = vpop.permute.xlu1 %965 }
 0x276   : > { %v971_v28 = vsel %vm672_vm3, %v966_v19, 0 }
 0x279   : > { %9239 = vmatmul.mubr.msk.bf16.vlgmr.msra.gmra.mxu1 %vm672_vm3, %v10661_v24  ;;  %v1159_v31 = vpop.permute.xlu1 %1158 }
 0x27a   : > { %9249 = vmatpush3.bf16.xpose.msra.mxu1 %v873_v16  ;;  %9257 = vmatmul.mubr.msk.bf16.vlgmr.msra.gmra.mxu0 %vm672_vm3, %v10619_v54  ;;  %v1165_v32 = vsel %vm1163_vm4, %v1159_v31, 0 }
 0x27b   : > { %9267 = vmatpush3.bf16.xpose.msra.mxu0 %v1020_v17  ;;  %9250 = vmatprep.mubr.msk.bf16.mxu1 %vm10483_vm2, %v12747_v18 }
 0x27c   : > { %9260 = vmatprep.subr.bf16.mxu1 %v12747_v18  ;;  %9268 = vmatprep.mubr.msk.bf16.mxu0 %vm10483_vm2, %v12747_v18 }
 0x27d   : > { %9278 = vmatprep.subr.bf16.mxu0 %v12747_v18 }
 0x281   : > { %9251 = vmatmul.mubr.msk.bf16.vlgmr.msra.gmra.mxu1 %vm672_vm3, %v10667_v26 }
 0x282   : > { %9261 = vmatpush3.bf16.xpose.msra.mxu1 %v971_v28  ;;  %9269 = vmatmul.mubr.msk.bf16.vlgmr.msra.gmra.mxu0 %vm672_vm3, %v10624_v60 }
 0x283   : > { %9279 = vmatpush3.bf16.msra.mxu0 %v1213_v30  ;;  %9262 = vmatprep.mubr.msk.bf16.mxu1 %vm10483_vm2, %v12747_v18 }
 0x284   : > { %9272 = vmatprep.subr.bf16.mxu1 %v12747_v18  ;;  %9280 = vmatprep.mubr.msk.bf16.mxu0 %vm10483_vm2, %v12747_v18 }
 0x285   : > { %9290 = vmatprep.subr.bf16.mxu0 %v12747_v18 }
 0x289   : > { %9263 = vmatmul.mubr.msk.bf16.vlgmr.msra.gmra.mxu1 %vm672_vm3, %v10671_v27 }
 0x28a   : > { %9273 = vmatpush3.bf16.msra.mxu1 %v1165_v32  ;;  %9274 = vmatprep.mubr.msk.bf16.mxu1 %vm10483_vm2, %v12747_v18 }
 0x28b   : > { %9284 = vmatprep.subr.bf16.mxu1 %v12747_v18 }
 0x321   : > { %v10772_v33 = vpop.f32.mrf.mxu1 }
 0x323   : > { %v10774_v34 = vpop.f32.mrf.mxu1 }
 0x325   : > { %v10776_v35 = vpop.f32.mrf.mxu1 }
 0x327   : > { %v10778_v36 = vpop.f32.mrf.mxu1 }
 0x329   : > { %v10780_v37 = vpop.f32.mrf.mxu1 }
 0x32a   : > { %v762_v38 = vpop.f32.mrf.mxu0 }
 0x32b   : > { %v10782_v39 = vpop.f32.mrf.mxu1  ;;  %v1065_v40 = vsel %vm672_vm3, %v762_v38, -inf }
 0x32c   : > { %1066 = vmax.xlane.f32.xlu0 %v1065_v40  ;;  %v9234_v43 = vpop.f32.mrf.mxu0 }
 0x32d   : > { %v10785_v8 = vpop.f32.mrf.mxu1  ;;  %v10814_v43 = vpop.permute.xlu1 %1255 }
 0x32e   : > { %v765_v41 = vpop.f32.mrf.mxu0 }
 0x32f   : > { %v10787_v42 = vpop.f32.mrf.mxu1 }
 0x330   : > { %v9235_v44 = vpop.f32.mrf.mxu0 }
 0x331   : > { %v713_v45 = vpop.f32.mrf.mxu1 }
 0x332   : > { %v860_v46 = vpop.f32.mrf.mxu0  ;;  %v1062_v47 = vsel %vm672_vm3, %v713_v45, -inf }
 0x333   : > { %1063 = vmax.xlane.f32.xlu1 %v1062_v47  ;;  %v9228_v48 = vpop.f32.mrf.mxu1  ;;  %v1071_v49 = vsel %vm672_vm3, %v860_v46, -inf  ;;  %v10816_v47 = vpop.permute.xlu1 %1303 }
 0x334   : > { %1072 = vmax.xlane.f32.xlu0 %v1071_v49  ;;  %v9246_v50 = vpop.f32.mrf.mxu0 }
 0x335   : > { %v716_v51 = vpop.f32.mrf.mxu1 }
 0x336   : > { %v863_v52 = vpop.f32.mrf.mxu0 }
 0x337   : > { %v9229_v53 = vpop.f32.mrf.mxu1 }
 0x338   : > { %v9247_v55 = vpop.f32.mrf.mxu0 }
 0x339   : > { %v10791_v56 = vpop.f32.mrf.mxu1 }
 0x33a   : > { %v958_v57 = vpop.f32.mrf.mxu0  ;;  %v1068_v17 = vsel %vm672_vm3, %v10791_v56, -inf }
 0x33b   : > { %v9240_v58 = vpop.f32.mrf.mxu1  ;;  %v1077_v59 = vsel %vm672_vm3, %v958_v57, -inf }
 0x33c   : > { %1078 = vmax.xlane.f32.xlu0 %v1077_v59  ;;  %v9258_v61 = vpop.f32.mrf.mxu0 }
 0x33d   : > { %v814_v62 = vpop.f32.mrf.mxu1 }
 0x33e   : > { %v961_v0 = vpop.f32.mrf.mxu0 }
 0x33f   : > { %v9241_v1 = vpop.f32.mrf.mxu1 }
 0x340   : > { %v9259_v2 = vpop.f32.mrf.mxu0 }
 0x341   : > { %v10794_v3 = vpop.f32.mrf.mxu1 }
 0x342   : > { %v10796_v4 = vpop.f32.mrf.mxu0  ;;  %v1074_v32 = vsel %vm672_vm3, %v10794_v3, -inf }
 0x343   : > { %v9252_v5 = vpop.f32.mrf.mxu1  ;;  %v1083_v6 = vsel %vm672_vm3, %v10796_v4, -inf }
 0x344   : > { %1351 = vrot.lane.b32.xlu1 %v10667_v26, %s10481_s11  ;;  %1084 = vmax.xlane.f32.xlu0 %v1083_v6  ;;  %v9270_v7 = vpop.f32.mrf.mxu0 }
 0x345   : > { %v912_v13 = vpop.f32.mrf.mxu1 }
 0x346   : > { %v1059_v15 = vpop.f32.mrf.mxu0 }
 0x347   : > { %v9253_v16 = vpop.f32.mrf.mxu1 }
 0x348   : > { %v9271_v19 = vpop.f32.mrf.mxu0  ;;  %1069 = vmax.xlane.f32.xlu0 %v1068_v17 }
 0x349   : > { %v10804_v21 = vpop.f32.mrf.mxu1 }
 0x34a   : > { %v1080_v40 = vsel %vm672_vm3, %v10804_v21, -inf }
 0x34b   : > { %v9264_v28 = vpop.f32.mrf.mxu1 }
 0x34d   : > { %v1010_v30 = vpop.f32.mrf.mxu1 }
 0x34f   : > { %v9265_v31 = vpop.f32.mrf.mxu1 }
 0x35e   : > { %1399 = vrot.lane.b32.xlu0 %v10619_v54, %s10481_s11 }
 0x368   : > { %1075 = vmax.xlane.f32.xlu1 %v1074_v32 }
 0x36c   : > { %1081 = vmax.xlane.f32.xlu1 %v1080_v40 }
 0x37d   : > { %1447 = vrot.lane.b32.xlu1 %v10671_v27, %s10481_s11 }
 0x3b5   : > { %v1067_v41 = vpop.xlane.xlu0 %1066 }
 0x3b6   : > { %v1087_v44 = vsub.f32 %v762_v38, %v1067_v41 }
 0x3b8   : > { %v1096_v48 = vmul.f32 1.442695, %v1087_v44 }
 0x3ba   : > { %10204 = vpow2.f32 %v1096_v48 }
 0x3bc   : > { %v1064_v49 = vpop.xlane.xlu1 %1063 }
 0x3bd   : > { %v1086_v50 = vsub.f32 %v713_v45, %v1064_v49  ;;  %v1073_v51 = vpop.xlane.xlu0 %1072 }
 0x3be   : > { %v1089_v52 = vsub.f32 %v860_v46, %v1073_v51 }
 0x3bf   : > { %v1094_v53 = vmul.f32 1.442695, %v1086_v50 }
 0x3c0   : > { %v1100_v55 = vmul.f32 1.442695, %v1089_v52  ;;  %v10839_v17 = vpop.permute.xlu1 %1351 }
 0x3c1   : > { %10206 = vpow2.f32 %v1094_v53 }
 0x3c2   : > { %10208 = vpow2.f32 %v1100_v55 }
 0x3c5   : > { %v1079_v58 = vpop.xlane.xlu0 %1078 }
 0x3c6   : > { %v1091_v59 = vsub.f32 %v958_v57, %v1079_v58 }
 0x3c7   : > { %v10818_v61 = vpop.eup %10204 }
 0x3c8   : > { %v1104_v62 = vmul.f32 1.442695, %v1091_v59  ;;  %v1113_v38 = vsel %vm672_vm3, %v10818_v61, 0.0 }
 0x3c9   : > { %1114 = vadd.xlane.f32.xlu0 %v1113_v38 }
 0x3ca   : > { %10210 = vpow2.f32 %v1104_v62 }
 0x3cd   : > { %v1085_v0 = vpop.xlane.xlu0 %1084 }
 0x3ce   : > { %v10822_v1 = vpop.eup %10206  ;;  %v1093_v30 = vsub.f32 %v10796_v4, %v1085_v0  ;;  %v1309_v0 = vsel %vm1163_vm4, %v10816_v47, 0 }
 0x3cf   : > { %v10824_v45 = vpop.eup %10208  ;;  %v1110_v46 = vsel %vm672_vm3, %v10822_v1, 0.0 }
 0x3d0   : > { %1111 = vadd.xlane.f32.xlu1 %v1110_v46  ;;  %v1119_v57 = vsel %vm672_vm3, %v10824_v45, 0.0  ;;  %v1108_v31 = vmul.f32 1.442695, %v1093_v30 }
 0x3d1   : > { %1120 = vadd.xlane.f32.xlu0 %v1119_v57  ;;  %v1070_v2 = vpop.xlane.xlu0 %1069 }
 0x3d2   : > { %v1088_v5 = vsub.f32 %v10791_v56, %v1070_v2 }
 0x3d4   : > { %v1098_v6 = vmul.f32 1.442695, %v1088_v5 }
 0x3d5   : > { %v1400_v50 = vpop.permute.xlu0 %1399 }
 0x3d6   : > { %10212 = vpow2.f32 %v1098_v6  ;;  %v1261_v6 = vsel %vm1163_vm4, %v10814_v43, 0 }
 0x3d7   : > { %v10831_v7 = vpop.eup %10210 }
 0x3d8   : > { %v1125_v13 = vsel %vm672_vm3, %v10831_v7, 0.0 }
 0x3d9   : > { %1126 = vadd.xlane.f32.xlu0 %v1125_v13  ;;  %v1405_v13 = vsel %vm1163_vm4, %v1400_v50, 0 }
 0x3e3   : > { %v10835_v15 = vpop.eup %10212 }
 0x3e4   : > { %v1116_v16 = vsel %vm672_vm3, %v10835_v15, 0.0 }
 0x3e5   : > { %1117 = vadd.xlane.f32.xlu1 %v1116_v16 }
 0x3ef   : > { %1495 = vrot.lane.b32.xlu0 %v10624_v60, %s10481_s11 }
 0x3f1   : > { %v1076_v56 = vpop.xlane.xlu1 %1075 }
 0x3f2   : > { %v1090_v19 = vsub.f32 %v10794_v3, %v1076_v56 }
 0x3f4   : > { %v1102_v28 = vmul.f32 1.442695, %v1090_v19 }
 0x3f5   : > { %v1082_v3 = vpop.xlane.xlu1 %1081 }
 0x3f6   : > { %10214 = vpow2.f32 %v1102_v28  ;;  %v1092_v4 = vsub.f32 %v10804_v21, %v1082_v3 }
 0x3f7   : > { %10216 = vpow2.f32 %v1108_v31 }
 0x3f8   : > { %v1106_v48 = vmul.f32 1.442695, %v1092_v4 }
 0x3f9   : > { %v10884_v52 = vpop.permute.xlu1 %1447 }
 0x3fa   : > { %10218 = vpow2.f32 %v1106_v48  ;;  %v1453_v48 = vsel %vm1163_vm4, %v10884_v52, 0 }
 0x403   : > { %v10845_v32 = vpop.eup %10214 }
 0x404   : > { %v1122_v40 = vsel %vm672_vm3, %v10845_v32, 0.0  ;;  %v10849_v41 = vpop.eup %10216 }
 0x405   : > { %1123 = vadd.xlane.f32.xlu1 %v1122_v40  ;;  %v1131_v44 = vsel %vm672_vm3, %v10849_v41, 0.0  ;;  %v1357_v40 = vsel %vm1163_vm4, %v10839_v17, 0 }
 0x407   : > { %v10866_v49 = vpop.eup %10218 }
 0x408   : > { %v1128_v21 = vsel %vm672_vm3, %v10866_v49, 0.0 }
 0x40e   : > { %1132 = vadd.xlane.f32.xlu0 %v1131_v44 }
 0x416   : > { %1545 = vrot.lane.b32.xlu1 %v10653_v22, %s10484_s6 }
 0x424   : > { %1595 = vrot.lane.b32.xlu0 %v10629_v63, %s10484_s6 }
 0x428   : > { %1593 = vrot.lane.b32.xlu0 %v10629_v63, %s10485_s7 }
 0x42c   : > { %1543 = vrot.lane.b32.xlu0 %v10653_v22, %s10485_s7 }
 0x430   : > { %1693 = vrot.lane.b32.xlu0 %v10657_v23, %s10485_s7 }
 0x434   : > { %1643 = vrot.lane.b32.xlu0 %v10661_v24, %s10485_s7 }
 0x438   : > { %1793 = vrot.lane.b32.xlu0 %v10619_v54, %s10485_s7 }
 0x43a   : > { %1129 = vadd.xlane.f32.xlu1 %v1128_v21 }
 0x43c   : > { %1743 = vrot.lane.b32.xlu0 %v10667_v26, %s10485_s7 }
 0x440   : > { %1893 = vrot.lane.b32.xlu0 %v10624_v60, %s10485_s7 }
 0x444   : > { %2087 = vrot.lane.b32.xlu0 %v10629_v63, %s10486_s8 }
 0x44b   : > { %1695 = vrot.lane.b32.xlu1 %v10657_v23, %s10484_s6 }
 0x44f   : > { %1645 = vrot.lane.b32.xlu1 %v10661_v24, %s10484_s6 }
 0x452   : > { %v1115_v51 = vpop.xlane.xlu0 %1114 }
 0x453   : > { %10220 = vrcp.f32 %v1115_v51  ;;  %1795 = vrot.lane.b32.xlu1 %v10619_v54, %s10484_s6 }
 0x457   : > { %1745 = vrot.lane.b32.xlu1 %v10667_v26, %s10484_s6 }
 0x459   : > { %v1112_v53 = vpop.xlane.xlu1 %1111 }
 0x45a   : > { %10222 = vrcp.f32 %v1112_v53  ;;  %v1121_v55 = vpop.xlane.xlu0 %1120 }
 0x45b   : > { %10224 = vrcp.f32 %v1121_v55  ;;  %1895 = vrot.lane.b32.xlu1 %v10624_v60, %s10484_s6 }
 0x45f   : > { %1845 = vrot.lane.b32.xlu1 %v10671_v27, %s10484_s6 }
 0x460   : > { %v10221_v58 = vpop.eup %10220 }
 0x461   : > { %v1143_v59 = vmul.f32 %v10221_v58, %v10818_v61 }
 0x462   : > { %v1127_v62 = vpop.xlane.xlu0 %1126 }
 0x463   : > { %10226 = vrcp.f32 %v1127_v62  ;;  %1843 = vrot.lane.b32.xlu1 %v10671_v27, %s10485_s7  ;;  %v1151_v38 = vpack.c.bf16 %v1143_v59, %v1143_v59 }
 0x465   : > { %9281 = vmatmul.mubr.msk.bf16.vlgmr.msra.gmra.mxu0 %vm672_vm3, %v1151_v38 }
 0x466   : > { %9291 = vmatpush3.bf16.msra.mxu0 %v1309_v0  ;;  %9292 = vmatprep.mubr.msk.bf16.mxu0 %vm10483_vm2, %v12747_v18 }
 0x467   : > { %v10223_v46 = vpop.eup %10222  ;;  %2039 = vrot.lane.b32.xlu1 %v10653_v22, %s10486_s8  ;;  %9302 = vmatprep.subr.bf16.mxu0 %v12747_v18 }
 0x468   : > { %v10225_v61 = vpop.eup %10224  ;;  %v1142_v57 = vmul.f32 %v10223_v46, %v10822_v1 }
 0x469   : > { %v1145_v2 = vmul.f32 %v10225_v61, %v10824_v45  ;;  %v1496_v45 = vpop.permute.xlu0 %1495 }
 0x46a   : > { %v1150_v5 = vpack.c.bf16 %v1142_v57, %v1142_v57  ;;  %v1501_v19 = vsel %vm1163_vm4, %v1496_v45, 0 }
 0x46b   : > { %2183 = vrot.lane.b32.xlu1 %v10657_v23, %s10486_s8  ;;  %v1153_v47 = vpack.c.bf16 %v1145_v2, %v1145_v2 }
 0x46c   : > { %9275 = vmatmul.mubr.msk.bf16.vlgmr.msra.gmra.mxu1 %vm672_vm3, %v1150_v5 }
 0x46d   : > { %9285 = vmatpush3.bf16.msra.mxu1 %v1261_v6  ;;  %9293 = vmatmul.mubr.msk.bf16.vlgmr.msra.gmra.mxu0 %vm672_vm3, %v1153_v47 }
 0x46e   : > { %9303 = vmatpush3.bf16.msra.mxu0 %v1405_v13  ;;  %v1118_v16 = vpop.xlane.xlu1 %1117  ;;  %9304 = vmatprep.mubr.msk.bf16.mxu0 %vm10483_vm2, %v12747_v18 }
 0x46f   : > { %10228 = vrcp.f32 %v1118_v16  ;;  %2135 = vrot.lane.b32.xlu1 %v10661_v24, %s10486_s8  ;;  %9314 = vmatprep.subr.bf16.mxu0 %v12747_v18 }
 0x470   : > { %v10227_v1 = vpop.eup %10226  ;;  %9286 = vmatprep.mubr.msk.bf16.mxu1 %vm10483_vm2, %v12747_v18  ;;  %9296 = vmatprep.subr.bf16.mxu1 %v12747_v18 }
 0x471   : > { %v1147_v43 = vmul.f32 %v10227_v1, %v10831_v7 }
 0x473   : > { %v1155_v56 = vpack.c.bf16 %v1147_v43, %v1147_v43 }
 0x475   : > { %9305 = vmatmul.mubr.msk.bf16.vlgmr.msra.gmra.mxu0 %vm672_vm3, %v1155_v56 }
 0x476   : > { %9315 = vmatpush3.bf16.msra.mxu0 %v1501_v19  ;;  %9316 = vmatprep.mubr.msk.bf16.mxu0 %vm10483_vm2, %v12747_v18 }
 0x477   : > { %9326 = vmatprep.subr.bf16.mxu0 %v12747_v18 }
 0x47c   : > { %v10229_v28 = vpop.eup %10228 }
 0x47d   : > { %v1144_v30 = vmul.f32 %v10229_v28, %v10835_v15 }
 0x47f   : > { %v1152_v31 = vpack.c.bf16 %v1144_v30, %v1144_v30 }
 0x481   : > { %9287 = vmatmul.mubr.msk.bf16.vlgmr.msra.gmra.mxu1 %vm672_vm3, %v1152_v31 }
 0x482   : > { %9297 = vmatpush3.bf16.msra.mxu1 %v1357_v40  ;;  %9298 = vmatprep.mubr.msk.bf16.mxu1 %vm10483_vm2, %v12747_v18 }
 0x483   : > { %9308 = vmatprep.subr.bf16.mxu1 %v12747_v18 }
 0x48e   : > { %v1124_v7 = vpop.xlane.xlu1 %1123 }
 0x48f   : > { %10230 = vrcp.f32 %v1124_v7 }
 0x497   : > { %v1133_v44 = vpop.xlane.xlu0 %1132 }
 0x498   : > { %10232 = vrcp.f32 %v1133_v44 }
 0x49b   : > { %v1596_v50 = vpop.permute.xlu0 %1595 }
 0x49c   : > { %v10231_v3 = vpop.eup %10230  ;;  %v1601_v53 = vsel %vm672_vm3, %v1596_v50, 0 }
 0x49d   : > { %v1146_v4 = vmul.f32 %v10231_v3, %v10845_v32 }
 0x49f   : > { %v1154_v15 = vpack.c.bf16 %v1146_v4, %v1146_v4  ;;  %v1594_v32 = vpop.permute.xlu0 %1593 }
 0x4a1   : > { %9299 = vmatmul.mubr.msk.bf16.vlgmr.msra.gmra.mxu1 %vm672_vm3, %v1154_v15 }
 0x4a2   : > { %9309 = vmatpush3.bf16.msra.mxu1 %v1453_v48  ;;  %9310 = vmatprep.mubr.msk.bf16.mxu1 %vm10483_vm2, %v12747_v18 }
 0x4a3   : > { %9320 = vmatprep.subr.bf16.mxu1 %v12747_v18  ;;  %v1544_v52 = vpop.permute.xlu0 %1543 }
 0x4a5   : > { %v10233_v17 = vpop.eup %10232 }
 0x4a6   : > { %v1149_v21 = vmul.f32 %v10233_v17, %v10849_v41  ;;  %v1546_v41 = vpop.permute.xlu1 %1545 }
 0x4a7   : > { %v1694_v55 = vpop.permute.xlu0 %1693  ;;  %v1551_v16 = vsel %vm672_vm3, %v1546_v41, 0 }
 0x4a8   : > { %v1157_v51 = vpack.c.bf16 %v1149_v21, %v1149_v21 }
 0x4aa   : > { %9317 = vmatmul.mubr.msk.bf16.vlgmr.msra.gmra.mxu0 %vm672_vm3, %v1157_v51 }
 0x4ab   : > { %9327 = vmatpush3.bf16.xpose.msra.mxu0 %v1601_v53  ;;  %9328 = vmatprep.mubr.msk.bf16.mxu0 %vm10483_vm2, %v12747_v18  ;;  %v1644_v59 = vpop.permute.xlu0 %1643 }
 0x4ac   : > { %9338 = vmatprep.subr.bf16.mxu0 %v12747_v18 }
 0x4af   : > { %v1794_v0 = vpop.permute.xlu0 %1793 }
 0x4b2   : > { %9329 = vmatmul.mubr.msk.bf16.vlgmr.msra.gmra.mxu0 %vm672_vm3, %v1594_v32 }
 0x4b3   : > { %9340 = vmatprep.mubr.msk.bf16.mxu0 %vm10483_vm2, %v12747_v18  ;;  %v1744_v5 = vpop.permute.xlu0 %1743 }
 0x4b7   : > { %v1894_v1 = vpop.permute.xlu0 %1893 }
 0x4c3   : > { %v1130_v58 = vpop.xlane.xlu1 %1129 }
 0x4c4   : > { %10234 = vrcp.f32 %v1130_v58 }
 0x4c7   : > { %v1696_v62 = vpop.permute.xlu1 %1695 }
 0x4c8   : > { %v1701_v38 = vsel %vm672_vm3, %v1696_v62, 0 }
 0x4c9   : > { %9339 = vmatpush3.bf16.xpose.msra.mxu0 %v1701_v38 }
 0x4ca   : > { %9350 = vmatprep.subr.bf16.mxu0 %v12747_v18 }
 0x4cb   : > { %v1646_v46 = vpop.permute.xlu1 %1645 }
 0x4cc   : > { %v1651_v56 = vsel %vm672_vm3, %v1646_v46, 0 }
 0x4cf   : > { %v1796_v61 = vpop.permute.xlu1 %1795 }
 0x4d0   : > { %v1801_v57 = vsel %vm672_vm3, %v1796_v61, 0  ;;  %9341 = vmatmul.mubr.msk.bf16.vlgmr.msra.gmra.mxu0 %vm672_vm3, %v1694_v55 }
 0x4d1   : > { %v10235_v2 = vpop.eup %10234  ;;  %9351 = vmatpush3.bf16.xpose.msra.mxu0 %v1801_v57  ;;  %9352 = vmatprep.mubr.msk.bf16.mxu0 %vm10483_vm2, %v12747_v18 }
 0x4d2   : > { %v1148_v47 = vmul.f32 %v10235_v2, %v10866_v49  ;;  %9362 = vmatprep.subr.bf16.mxu0 %v12747_v18  ;;  %v2088_v49 = vpop.permute.xlu0 %2087 }
 0x4d3   : > { %v1746_v6 = vpop.permute.xlu1 %1745  ;;  %v2093_v19 = vsel %vm1163_vm4, %v2088_v49, 0 }
 0x4d4   : > { %v1156_v13 = vpack.c.bf16 %v1148_v47, %v1148_v47  ;;  %v1751_v28 = vsel %vm672_vm3, %v1746_v6, 0 }
 0x4d6   : > { %9311 = vmatmul.mubr.msk.bf16.vlgmr.msra.gmra.mxu1 %vm672_vm3, %v1156_v13 }
 0x4d7   : > { %9321 = vmatpush3.bf16.xpose.msra.mxu1 %v1551_v16  ;;  %v1896_v43 = vpop.permute.xlu1 %1895  ;;  %9322 = vmatprep.mubr.msk.bf16.mxu1 %vm10483_vm2, %v12747_v18 }
 0x4d8   : > { %v1901_v45 = vsel %vm672_vm3, %v1896_v43, 0  ;;  %9353 = vmatmul.mubr.msk.bf16.vlgmr.msra.gmra.mxu0 %vm672_vm3, %v1794_v0  ;;  %9332 = vmatprep.subr.bf16.mxu1 %v12747_v18 }
 0x4d9   : > { %9363 = vmatpush3.bf16.xpose.msra.mxu0 %v1901_v45  ;;  %9364 = vmatprep.mubr.msk.bf16.mxu0 %vm10483_vm2, %v12747_v18 }
 0x4da   : > { %9374 = vmatprep.subr.bf16.mxu0 %v12747_v18 }
 0x4db   : > { %v1846_v30 = vpop.permute.xlu1 %1845 }
 0x4dc   : > { %v1851_v40 = vsel %vm672_vm3, %v1846_v30, 0 }
 0x4de   : > { %9323 = vmatmul.mubr.msk.bf16.vlgmr.msra.gmra.mxu1 %vm672_vm3, %v1544_v52 }
 0x4df   : > { %9333 = vmatpush3.bf16.xpose.msra.mxu1 %v1651_v56  ;;  %9334 = vmatprep.mubr.msk.bf16.mxu1 %vm10483_vm2, %v12747_v18  ;;  %v1844_v31 = vpop.permute.xlu1 %1843 }
 0x4e0   : > { %9365 = vmatmul.mubr.msk.bf16.vlgmr.msra.gmra.mxu0 %vm672_vm3, %v1894_v1  ;;  %9344 = vmatprep.subr.bf16.mxu1 %v12747_v18 }
 0x4e1   : > { %9375 = vmatpush3.bf16.msra.mxu0 %v2093_v19  ;;  %9376 = vmatprep.mubr.msk.bf16.mxu0 %vm10483_vm2, %v12747_v18 }
 0x4e2   : > { %9386 = vmatprep.subr.bf16.mxu0 %v12747_v18 }
 0x4e3   : > { %v2040_v7 = vpop.permute.xlu1 %2039 }
 0x4e4   : > { %v2045_v44 = vsel %vm1163_vm4, %v2040_v7, 0 }
 0x4e6   : > { %9335 = vmatmul.mubr.msk.bf16.vlgmr.msra.gmra.mxu1 %vm672_vm3, %v1644_v59 }
 0x4e7   : > { %9345 = vmatpush3.bf16.xpose.msra.mxu1 %v1751_v28  ;;  %9346 = vmatprep.mubr.msk.bf16.mxu1 %vm10483_vm2, %v12747_v18 }
 0x4e8   : > { %9356 = vmatprep.subr.bf16.mxu1 %v12747_v18 }
 0x4ee   : > { %9347 = vmatmul.mubr.msk.bf16.vlgmr.msra.gmra.mxu1 %vm672_vm3, %v1744_v5 }
 0x4ef   : > { %9357 = vmatpush3.bf16.xpose.msra.mxu1 %v1851_v40  ;;  %9358 = vmatprep.mubr.msk.bf16.mxu1 %vm10483_vm2, %v12747_v18 }
 0x4f0   : > { %9368 = vmatprep.subr.bf16.mxu1 %v12747_v18 }
 0x4f6   : > { %9359 = vmatmul.mubr.msk.bf16.vlgmr.msra.gmra.mxu1 %vm672_vm3, %v1844_v31 }
 0x4f7   : > { %9369 = vmatpush3.bf16.msra.mxu1 %v2045_v44  ;;  %9370 = vmatprep.mubr.msk.bf16.mxu1 %vm10483_vm2, %v12747_v18 }
 0x4f8   : > { %9380 = vmatprep.subr.bf16.mxu1 %v12747_v18 }
 0x525   : > { %v10992_v3 = vpop.f32.mrf.mxu0 }
 0x526   : > { %12767 = vst [vmem:[#allocation10_spill] sm:$0xff] %v10992_v3 }
 0x527   : > { %v9282_v4 = vpop.f32.mrf.mxu0 }
 0x529   : > { %v1252_v15 = vpop.f32.mrf.mxu0 }
 0x52b   : > { %v9283_v48 = vpop.f32.mrf.mxu0 }
 0x52c   : > { %v10994_v17 = vpop.f32.mrf.mxu1 }
 0x52d   : > { %12768 = vst [vmem:[#allocation11_spill] sm:$0xff] %v10994_v17  ;;  %v10996_v21 = vpop.f32.mrf.mxu0 }
 0x52e   : > { %12769 = vst [vmem:[#allocation12_spill] sm:$0xff] %v10996_v21  ;;  %v9276_v50 = vpop.f32.mrf.mxu1 }
 0x52f   : > { %v9294_v51 = vpop.f32.mrf.mxu0 }
 0x530   : > { %v1204_v53 = vpop.f32.mrf.mxu1 }
 0x531   : > { %v1348_v32 = vpop.f32.mrf.mxu0 }
 0x532   : > { %v9277_v52 = vpop.f32.mrf.mxu1 }
 0x533   : > { %v9295_v41 = vpop.f32.mrf.mxu0 }
 0x535   : > { %v10998_v55 = vpop.f32.mrf.mxu0 }
 0x536   : > { %12770 = vst [vmem:[#allocation13_spill] sm:$0xff] %v10998_v55 }
 0x537   : > { %v9306_v58 = vpop.f32.mrf.mxu0 }
 0x539   : > { %v1444_v59 = vpop.f32.mrf.mxu0 }
 0x53b   : > { %v9307_v62 = vpop.f32.mrf.mxu0 }
 0x541   : > { %v11000_v38 = vpop.f32.mrf.mxu1 }
 0x542   : > { %12771 = vst [vmem:[#allocation14_spill] sm:$0xff] %v11000_v38 }
 0x543   : > { %v9288_v0 = vpop.f32.mrf.mxu1 }
 0x545   : > { %v1300_v46 = vpop.f32.mrf.mxu1 }
 0x547   : > { %v9289_v61 = vpop.f32.mrf.mxu1 }
 0x561   : > { %v11002_v57 = vpop.f32.mrf.mxu1 }
 0x562   : > { %12772 = vst [vmem:[#allocation15_spill] sm:$0xff] %v11002_v57 }
 0x563   : > { %v9300_v2 = vpop.f32.mrf.mxu1 }
 0x565   : > { %v1396_v5 = vpop.f32.mrf.mxu1 }
 0x567   : > { %v9301_v47 = vpop.f32.mrf.mxu1 }
 0x56a   : > { %v11004_v6 = vpop.f32.mrf.mxu0 }
 0x56b   : > { %12773 = vst [vmem:[#allocation16_spill] sm:$0xff] %v11004_v6 }
 0x56c   : > { %v9318_v13 = vpop.f32.mrf.mxu0 }
 0x56e   : > { %v1540_v16 = vpop.f32.mrf.mxu0 }
 0x570   : > { %v9319_v1 = vpop.f32.mrf.mxu0 }
 0x572   : > { %v1637_v43 = vpop.f32.mrf.mxu0 }
 0x573   : > { %v1946_v45 = vsel %vm672_vm3, %v1637_v43, -inf }
 0x574   : > { %1947 = vmax.xlane.f32.xlu0 %v1946_v45  ;;  %v9330_v49 = vpop.f32.mrf.mxu0 }
 0x576   : > { %v1640_v56 = vpop.f32.mrf.mxu0 }
 0x578   : > { %v9331_v19 = vpop.f32.mrf.mxu0 }
 0x590   : > { %v1737_v28 = vpop.f32.mrf.mxu0 }
 0x591   : > { %v1952_v30 = vsel %vm672_vm3, %v1737_v28, -inf }
 0x592   : > { %1953 = vmax.xlane.f32.xlu0 %v1952_v30  ;;  %v9342_v31 = vpop.f32.mrf.mxu0 }
 0x594   : > { %v1740_v40 = vpop.f32.mrf.mxu0 }
 0x596   : > { %v11008_v7 = vpop.f32.mrf.mxu1  ;;  %v9343_v44 = vpop.f32.mrf.mxu0 }
 0x597   : > { %12774 = vst [vmem:[#allocation17_spill] sm:$0xff] %v11008_v7 }
 0x598   : > { %v9312_v4 = vpop.f32.mrf.mxu1  ;;  %v1837_v15 = vpop.f32.mrf.mxu0 }
 0x599   : > { %v1958_v48 = vsel %vm672_vm3, %v1837_v15, -inf }
 0x59a   : > { %v1492_v50 = vpop.f32.mrf.mxu1  ;;  %1959 = vmax.xlane.f32.xlu0 %v1958_v48  ;;  %v9354_v51 = vpop.f32.mrf.mxu0 }
 0x59c   : > { %v9313_v53 = vpop.f32.mrf.mxu1  ;;  %v1840_v32 = vpop.f32.mrf.mxu0 }
 0x59e   : > { %v1587_v52 = vpop.f32.mrf.mxu1  ;;  %v9355_v41 = vpop.f32.mrf.mxu0 }
 0x59f   : > { %v1943_v58 = vsel %vm672_vm3, %v1587_v52, -inf }
 0x5a0   : > { %1944 = vmax.xlane.f32.xlu1 %v1943_v58  ;;  %v9324_v59 = vpop.f32.mrf.mxu1  ;;  %v11012_v62 = vpop.f32.mrf.mxu0 }
 0x5a1   : > { %v1964_v0 = vsel %vm672_vm3, %v11012_v62, -inf }
 0x5a2   : > { %v1590_v46 = vpop.f32.mrf.mxu1  ;;  %1965 = vmax.xlane.f32.xlu0 %v1964_v0  ;;  %v9366_v61 = vpop.f32.mrf.mxu0 }
 0x5a4   : > { %v9325_v2 = vpop.f32.mrf.mxu1  ;;  %v1940_v5 = vpop.f32.mrf.mxu0 }
 0x5a5   : > { %v11032_v2 = vpop.permute.xlu1 %2183 }
 0x5a6   : > { %v1687_v47 = vpop.f32.mrf.mxu1  ;;  %v9367_v13 = vpop.f32.mrf.mxu0 }
 0x5a7   : > { %v1949_v16 = vsel %vm672_vm3, %v1687_v47, -inf }
 0x5a8   : > { %v9336_v1 = vpop.f32.mrf.mxu1  ;;  %1950 = vmax.xlane.f32.xlu0 %v1949_v16 }
 0x5a9   : > { %v11034_v16 = vpop.permute.xlu1 %2135 }
 0x5aa   : > { %v1690_v45 = vpop.f32.mrf.mxu1 }
 0x5ac   : > { %v9337_v49 = vpop.f32.mrf.mxu1 }
 0x5ae   : > { %v1787_v56 = vpop.f32.mrf.mxu1 }
 0x5af   : > { %v1955_v50 = vsel %vm672_vm3, %v1787_v56, -inf }
 0x5b0   : > { %v9348_v19 = vpop.f32.mrf.mxu1 }
 0x5b1   : > { %2231 = vrot.lane.b32.xlu1 %v10667_v26, %s10486_s8 }
 0x5b2   : > { %v1790_v30 = vpop.f32.mrf.mxu1 }
 0x5b4   : > { %v9349_v31 = vpop.f32.mrf.mxu1 }
 0x5b6   : > { %v11019_v40 = vpop.f32.mrf.mxu1 }
 0x5b7   : > { %v1961_v51 = vsel %vm672_vm3, %v11019_v40, -inf }
 0x5b8   : > { %v9360_v44 = vpop.f32.mrf.mxu1 }
 0x5ba   : > { %v1890_v4 = vpop.f32.mrf.mxu1 }
 0x5bc   : > { %v9361_v48 = vpop.f32.mrf.mxu1 }
 0x5be   : > { %2279 = vrot.lane.b32.xlu0 %v10619_v54, %s10486_s8 }
 0x5d5   : > { %1956 = vmax.xlane.f32.xlu1 %v1955_v50 }
 0x5d9   : > { %1962 = vmax.xlane.f32.xlu1 %v1961_v51 }
 0x5ea   : > { %2327 = vrot.lane.b32.xlu1 %v10671_v27, %s10486_s8 }
 0x5fd   : > { %v1948_v53 = vpop.xlane.xlu0 %1947 }
 0x5fe   : > { %v1968_v32 = vsub.f32 %v1637_v43, %v1948_v53 }
 0x600   : > { %v1977_v41 = vmul.f32 1.442695, %v1968_v32 }
 0x602   : > { %10236 = vpow2.f32 %v1977_v41 }
 0x60f   : > { %v11028_v58 = vpop.eup %10236 }
 0x610   : > { %v1994_v59 = vsel %vm672_vm3, %v11028_v58, 0.0 }
 0x611   : > { %1995 = vadd.xlane.f32.xlu0 %v1994_v59 }
 0x61b   : > { %v1954_v0 = vpop.xlane.xlu0 %1953 }
 0x61c   : > { %v1970_v46 = vsub.f32 %v1737_v28, %v1954_v0 }
 0x61e   : > { %v1981_v61 = vmul.f32 1.442695, %v1970_v46 }
 0x620   : > { %10238 = vpow2.f32 %v1981_v61 }
 0x623   : > { %v1960_v5 = vpop.xlane.xlu0 %1959 }
 0x624   : > { %v1972_v13 = vsub.f32 %v1837_v15, %v1960_v5 }
 0x626   : > { %v1985_v1 = vmul.f32 1.442695, %v1972_v13 }
 0x628   : > { %10240 = vpow2.f32 %v1985_v1 }
 0x629   : > { %v1945_v43 = vpop.xlane.xlu1 %1944 }
 0x62a   : > { %v1967_v45 = vsub.f32 %v1587_v52, %v1945_v43 }
 0x62b   : > { %v1966_v30 = vpop.xlane.xlu0 %1965 }
 0x62c   : > { %v1975_v49 = vmul.f32 1.442695, %v1967_v45 }
 0x62d   : > { %v11036_v19 = vpop.eup %10238  ;;  %v11055_v41 = vpop.permute.xlu1 %2231 }
 0x62e   : > { %10242 = vpow2.f32 %v1975_v49  ;;  %v2000_v28 = vsel %vm672_vm3, %v11036_v19, 0.0 }
 0x62f   : > { %2001 = vadd.xlane.f32.xlu0 %v2000_v28 }
 0x631   : > { %v1951_v31 = vpop.xlane.xlu0 %1950 }
 0x632   : > { %v1969_v44 = vsub.f32 %v1687_v47, %v1951_v31  ;;  %v1974_v47 = vsub.f32 %v11012_v62, %v1966_v30 }
 0x634   : > { %v1979_v4 = vmul.f32 1.442695, %v1969_v44  ;;  %v1989_v32 = vmul.f32 1.442695, %v1974_v47 }
 0x635   : > { %v11040_v48 = vpop.eup %10240  ;;  %v2280_v45 = vpop.permute.xlu0 %2279 }
 0x636   : > { %10244 = vpow2.f32 %v1979_v4  ;;  %v2006_v15 = vsel %vm672_vm3, %v11040_v48, 0.0  ;;  %v2189_v4 = vsel %vm1163_vm4, %v11032_v2, 0 }
 0x637   : > { %2007 = vadd.xlane.f32.xlu0 %v2006_v15  ;;  %10246 = vpow2.f32 %v1989_v32 }
 0x63b   : > { %v11044_v52 = vpop.eup %10242 }
 0x63c   : > { %v1991_v50 = vsel %vm672_vm3, %v11044_v52, 0.0 }
 0x63d   : > { %1992 = vadd.xlane.f32.xlu1 %v1991_v50 }
 0x643   : > { %v11048_v51 = vpop.eup %10244 }
 0x644   : > { %v1997_v53 = vsel %vm672_vm3, %v11048_v51, 0.0  ;;  %v11057_v61 = vpop.eup %10246 }
 0x645   : > { %1998 = vadd.xlane.f32.xlu1 %v1997_v53  ;;  %v2012_v5 = vsel %vm672_vm3, %v11057_v61, 0.0 }
 0x64d   : > { %2375 = vrot.lane.b32.xlu0 %v10624_v60, %s10486_s8 }
 0x65e   : > { %v1957_v59 = vpop.xlane.xlu1 %1956 }
 0x65f   : > { %v1971_v0 = vsub.f32 %v1787_v56, %v1957_v59  ;;  %v2285_v59 = vsel %vm1163_vm4, %v2280_v45, 0  ;;  %v2141_v45 = vsel %vm1163_vm4, %v11034_v16, 0 }
 0x661   : > { %v1983_v46 = vmul.f32 1.442695, %v1971_v0 }
 0x662   : > { %v1963_v62 = vpop.xlane.xlu1 %1962 }
 0x663   : > { %10248 = vpow2.f32 %v1983_v46  ;;  %v1973_v56 = vsub.f32 %v11019_v40, %v1963_v62 }
 0x665   : > { %v1987_v43 = vmul.f32 1.442695, %v1973_v56 }
 0x666   : > { %v2328_v2 = vpop.permute.xlu1 %2327 }
 0x667   : > { %10250 = vpow2.f32 %v1987_v43 }
 0x66c   : > { %2013 = vadd.xlane.f32.xlu0 %v2012_v5 }
 0x670   : > { %v11061_v13 = vpop.eup %10248 }
 0x671   : > { %v2003_v1 = vsel %vm672_vm3, %v11061_v13, 0.0 }
 0x672   : > { %2004 = vadd.xlane.f32.xlu1 %v2003_v1 }
 0x674   : > { %v11086_v40 = vpop.eup %10250 }
 0x675   : > { %v2009_v30 = vsel %vm672_vm3, %v11086_v40, 0.0 }
 0x682   : > { %2475 = vrot.lane.b32.xlu0 %v10629_v63, %s10487_s12 }
 0x683   : > { %2425 = vrot.lane.b32.xlu1 %v10653_v22, %s10487_s12 }
 0x686   : > { %2473 = vrot.lane.b32.xlu0 %v10629_v63, %s10488_s13 }
 0x68a   : > { %2423 = vrot.lane.b32.xlu0 %v10653_v22, %s10488_s13 }
 0x68e   : > { %2573 = vrot.lane.b32.xlu0 %v10657_v23, %s10488_s13 }
 0x692   : > { %2523 = vrot.lane.b32.xlu0 %v10661_v24, %s10488_s13 }
 0x696   : > { %2673 = vrot.lane.b32.xlu0 %v10619_v54, %s10488_s13 }
 0x69a   : > { %2623 = vrot.lane.b32.xlu0 %v10667_v26, %s10488_s13  ;;  %v1996_v49 = vpop.xlane.xlu0 %1995 }
 0x69b   : > { %10252 = vrcp.f32 %v1996_v49 }
 0x69e   : > { %2773 = vrot.lane.b32.xlu0 %v10624_v60, %s10488_s13 }
 0x6a2   : > { %2967 = vrot.lane.b32.xlu0 %v10629_v63, %s10489_s14 }
 0x6a7   : > { %2010 = vadd.xlane.f32.xlu1 %v2009_v30 }
 0x6a8   : > { %v10253_v28 = vpop.eup %10252 }
 0x6a9   : > { %v2024_v31 = vmul.f32 %v10253_v28, %v11028_v58  ;;  %v2237_v28 = vsel %vm1163_vm4, %v11055_v41, 0 }
 0x6ab   : > { %v2032_v44 = vpack.c.bf16 %v2024_v31, %v2024_v31 }
 0x6ad   : > { %9377 = vmatmul.mubr.msk.bf16.vlgmr.msra.gmra.mxu0 %vm672_vm3, %v2032_v44 }
 0x6ae   : > { %9387 = vmatpush3.bf16.msra.mxu0 %v2189_v4  ;;  %9388 = vmatprep.mubr.msk.bf16.mxu0 %vm10483_vm2, %v12747_v18 }
 0x6af   : > { %9398 = vmatprep.subr.bf16.mxu0 %v12747_v18 }
 0x6b8   : > { %v2002_v15 = vpop.xlane.xlu0 %2001  ;;  %2575 = vrot.lane.b32.xlu1 %v10657_v23, %s10487_s12 }
 0x6b9   : > { %10254 = vrcp.f32 %v2002_v15 }
 0x6bc   : > { %2525 = vrot.lane.b32.xlu1 %v10661_v24, %s10487_s12 }
 0x6c0   : > { %v2008_v58 = vpop.xlane.xlu0 %2007  ;;  %2675 = vrot.lane.b32.xlu1 %v10619_v54, %s10487_s12 }
 0x6c1   : > { %10256 = vrcp.f32 %v2008_v58 }
 0x6c4   : > { %2625 = vrot.lane.b32.xlu1 %v10667_v26, %s10487_s12  ;;  %v2376_v5 = vpop.permute.xlu0 %2375 }
 0x6c5   : > { %v2381_v62 = vsel %vm1163_vm4, %v2376_v5, 0 }
 0x6c6   : > { %v10255_v50 = vpop.eup %10254  ;;  %v1993_v53 = vpop.xlane.xlu1 %1992 }
 0x6c7   : > { %10258 = vrcp.f32 %v1993_v53  ;;  %v2026_v47 = vmul.f32 %v10255_v50, %v11036_v19 }
 0x6c8   : > { %2775 = vrot.lane.b32.xlu1 %v10624_v60, %s10487_s12 }
 0x6c9   : > { %v2034_v32 = vpack.c.bf16 %v2026_v47, %v2026_v47  ;;  %v2333_v47 = vsel %vm1163_vm4, %v2328_v2, 0 }
 0x6cb   : > { %9389 = vmatmul.mubr.msk.bf16.vlgmr.msra.gmra.mxu0 %vm672_vm3, %v2034_v32 }
 0x6cc   : > { %9399 = vmatpush3.bf16.msra.mxu0 %v2285_v59  ;;  %2725 = vrot.lane.b32.xlu1 %v10671_v27, %s10487_s12 }
 0x6cd   : > { %9400 = vmatprep.mubr.msk.bf16.mxu0 %vm10483_vm2, %v12747_v18  ;;  %9410 = vmatprep.subr.bf16.mxu0 %v12747_v18 }
 0x6ce   : > { %v10257_v0 = vpop.eup %10256  ;;  %v1999_v46 = vpop.xlane.xlu1 %1998 }
 0x6cf   : > { %10260 = vrcp.f32 %v1999_v46  ;;  %v2028_v19 = vmul.f32 %v10257_v0, %v11040_v48 }
 0x6d0   : > { %2723 = vrot.lane.b32.xlu1 %v10671_v27, %s10488_s13 }
 0x6d1   : > { %v2036_v1 = vpack.c.bf16 %v2028_v19, %v2028_v19 }
 0x6d3   : > { %9401 = vmatmul.mubr.msk.bf16.vlgmr.msra.gmra.mxu0 %vm672_vm3, %v2036_v1 }
 0x6d4   : > { %v10259_v56 = vpop.eup %10258  ;;  %9411 = vmatpush3.bf16.msra.mxu0 %v2381_v62  ;;  %2919 = vrot.lane.b32.xlu1 %v10653_v22, %s10489_s14 }
 0x6d5   : > { %v2023_v43 = vmul.f32 %v10259_v56, %v11044_v52  ;;  %9412 = vmatprep.mubr.msk.bf16.mxu0 %vm10483_vm2, %v12747_v18  ;;  %9422 = vmatprep.subr.bf16.mxu0 %v12747_v18 }
 0x6d7   : > { %v2031_v48 = vpack.c.bf16 %v2023_v43, %v2023_v43 }
 0x6d8   : > { %3063 = vrot.lane.b32.xlu1 %v10657_v23, %s10489_s14 }
 0x6d9   : > { %9371 = vmatmul.mubr.msk.bf16.vlgmr.msra.gmra.mxu1 %vm672_vm3, %v2031_v48 }
 0x6da   : > { %9381 = vmatpush3.bf16.msra.mxu1 %v2141_v45  ;;  %9382 = vmatprep.mubr.msk.bf16.mxu1 %vm10483_vm2, %v12747_v18 }
 0x6db   : > { %9392 = vmatprep.subr.bf16.mxu1 %v12747_v18 }
 0x6dc   : > { %v10261_v52 = vpop.eup %10260  ;;  %3015 = vrot.lane.b32.xlu1 %v10661_v24, %s10489_s14 }
 0x6dd   : > { %v2025_v49 = vmul.f32 %v10261_v52, %v11048_v51 }
 0x6df   : > { %v2033_v30 = vpack.c.bf16 %v2025_v49, %v2025_v49 }
 0x6e1   : > { %9383 = vmatmul.mubr.msk.bf16.vlgmr.msra.gmra.mxu1 %vm672_vm3, %v2033_v30 }
 0x6e2   : > { %9393 = vmatpush3.bf16.msra.mxu1 %v2237_v28  ;;  %9394 = vmatprep.mubr.msk.bf16.mxu1 %vm10483_vm2, %v12747_v18 }
 0x6e3   : > { %9404 = vmatprep.subr.bf16.mxu1 %v12747_v18 }
 0x6f5   : > { %v2014_v16 = vpop.xlane.xlu0 %2013 }
 0x6f6   : > { %10262 = vrcp.f32 %v2014_v16 }
 0x6f9   : > { %v2476_v51 = vpop.permute.xlu0 %2475 }
 0x6fa   : > { %v2481_v58 = vsel %vm672_vm3, %v2476_v51, 0 }
 0x6fb   : > { %v2005_v31 = vpop.xlane.xlu1 %2004 }
 0x6fc   : > { %10264 = vrcp.f32 %v2005_v31 }
 0x6ff   : > { %v2426_v32 = vpop.permute.xlu1 %2425 }
 0x700   : > { %v2431_v30 = vsel %vm672_vm3, %v2426_v32, 0 }
 0x703   : > { %v10263_v44 = vpop.eup %10262 }
 0x704   : > { %v2030_v4 = vmul.f32 %v10263_v44, %v11057_v61  ;;  %v2474_v61 = vpop.permute.xlu0 %2473 }
 0x706   : > { %v2038_v15 = vpack.c.bf16 %v2030_v4, %v2030_v4 }
 0x708   : > { %9413 = vmatmul.mubr.msk.bf16.vlgmr.msra.gmra.mxu0 %vm672_vm3, %v2038_v15 }
 0x709   : > { %v10265_v41 = vpop.eup %10264  ;;  %9423 = vmatpush3.bf16.xpose.msra.mxu0 %v2481_v58  ;;  %9424 = vmatprep.mubr.msk.bf16.mxu0 %vm10483_vm2, %v12747_v18 }
 0x70a   : > { %v2027_v50 = vmul.f32 %v10265_v41, %v11061_v13  ;;  %9434 = vmatprep.subr.bf16.mxu0 %v12747_v18  ;;  %v2424_v13 = vpop.permute.xlu0 %2423 }
 0x70c   : > { %v2035_v53 = vpack.c.bf16 %v2027_v50, %v2027_v50 }
 0x70e   : > { %9395 = vmatmul.mubr.msk.bf16.vlgmr.msra.gmra.mxu1 %vm672_vm3, %v2035_v53  ;;  %v2574_v59 = vpop.permute.xlu0 %2573 }
 0x70f   : > { %9405 = vmatpush3.bf16.msra.mxu1 %v2333_v47  ;;  %9406 = vmatprep.mubr.msk.bf16.mxu1 %vm10483_vm2, %v12747_v18 }
 0x710   : > { %9425 = vmatmul.mubr.msk.bf16.vlgmr.msra.gmra.mxu0 %vm672_vm3, %v2474_v61  ;;  %9416 = vmatprep.subr.bf16.mxu1 %v12747_v18 }
 0x711   : > { %9436 = vmatprep.mubr.msk.bf16.mxu0 %vm10483_vm2, %v12747_v18 }
 0x712   : > { %v2524_v2 = vpop.permute.xlu0 %2523 }
 0x716   : > { %v2674_v5 = vpop.permute.xlu0 %2673 }
 0x71a   : > { %v2624_v48 = vpop.permute.xlu0 %2623 }
 0x71e   : > { %v2774_v28 = vpop.permute.xlu0 %2773 }
 0x730   : > { %v2011_v0 = vpop.xlane.xlu1 %2010 }
 0x731   : > { %10266 = vrcp.f32 %v2011_v0 }
 0x734   : > { %v2576_v46 = vpop.permute.xlu1 %2575 }
 0x735   : > { %v2581_v19 = vsel %vm672_vm3, %v2576_v46, 0 }
 0x736   : > { %9435 = vmatpush3.bf16.xpose.msra.mxu0 %v2581_v19 }
 0x737   : > { %9446 = vmatprep.subr.bf16.mxu0 %v12747_v18 }
 0x738   : > { %v2526_v1 = vpop.permute.xlu1 %2525 }
 0x739   : > { %v2531_v44 = vsel %vm672_vm3, %v2526_v1, 0 }
 0x73c   : > { %v2676_v62 = vpop.permute.xlu1 %2675 }
 0x73d   : > { %v2681_v56 = vsel %vm672_vm3, %v2676_v62, 0  ;;  %9437 = vmatmul.mubr.msk.bf16.vlgmr.msra.gmra.mxu0 %vm672_vm3, %v2574_v59 }
 0x73e   : > { %v10267_v43 = vpop.eup %10266  ;;  %9447 = vmatpush3.bf16.xpose.msra.mxu0 %v2681_v56  ;;  %9448 = vmatprep.mubr.msk.bf16.mxu0 %vm10483_vm2, %v12747_v18 }
 0x73f   : > { %v2029_v45 = vmul.f32 %v10267_v43, %v11086_v40  ;;  %9458 = vmatprep.subr.bf16.mxu0 %v12747_v18  ;;  %v2968_v40 = vpop.permute.xlu0 %2967 }
 0x740   : > { %v2626_v52 = vpop.permute.xlu1 %2625  ;;  %v2973_v4 = vsel %vm1163_vm4, %v2968_v40, 0 }
 0x741   : > { %v2037_v49 = vpack.c.bf16 %v2029_v45, %v2029_v45  ;;  %v2631_v51 = vsel %vm672_vm3, %v2626_v52, 0 }
 0x743   : > { %9407 = vmatmul.mubr.msk.bf16.vlgmr.msra.gmra.mxu1 %vm672_vm3, %v2037_v49 }
 0x744   : > { %9417 = vmatpush3.bf16.xpose.msra.mxu1 %v2431_v30  ;;  %v2776_v16 = vpop.permute.xlu1 %2775  ;;  %9418 = vmatprep.mubr.msk.bf16.mxu1 %vm10483_vm2, %v12747_v18 }
 0x745   : > { %v2781_v31 = vsel %vm672_vm3, %v2776_v16, 0  ;;  %9449 = vmatmul.mubr.msk.bf16.vlgmr.msra.gmra.mxu0 %vm672_vm3, %v2674_v5  ;;  %9428 = vmatprep.subr.bf16.mxu1 %v12747_v18 }
 0x746   : > { %9459 = vmatpush3.bf16.xpose.msra.mxu0 %v2781_v31  ;;  %9460 = vmatprep.mubr.msk.bf16.mxu0 %vm10483_vm2, %v12747_v18 }
 0x747   : > { %9470 = vmatprep.subr.bf16.mxu0 %v12747_v18 }
 0x748   : > { %v2726_v15 = vpop.permute.xlu1 %2725 }
 0x749   : > { %v2731_v41 = vsel %vm672_vm3, %v2726_v15, 0 }
 0x74b   : > { %9419 = vmatmul.mubr.msk.bf16.vlgmr.msra.gmra.mxu1 %vm672_vm3, %v2424_v13 }
 0x74c   : > { %9429 = vmatpush3.bf16.xpose.msra.mxu1 %v2531_v44  ;;  %9430 = vmatprep.mubr.msk.bf16.mxu1 %vm10483_vm2, %v12747_v18  ;;  %v2724_v58 = vpop.permute.xlu1 %2723 }
 0x74d   : > { %9461 = vmatmul.mubr.msk.bf16.vlgmr.msra.gmra.mxu0 %vm672_vm3, %v2774_v28  ;;  %9440 = vmatprep.subr.bf16.mxu1 %v12747_v18 }
 0x74e   : > { %9471 = vmatpush3.bf16.msra.mxu0 %v2973_v4  ;;  %9472 = vmatprep.mubr.msk.bf16.mxu0 %vm10483_vm2, %v12747_v18 }
 0x74f   : > { %9482 = vmatprep.subr.bf16.mxu0 %v12747_v18 }
 0x750   : > { %v2920_v50 = vpop.permute.xlu1 %2919 }
 0x751   : > { %v2925_v53 = vsel %vm1163_vm4, %v2920_v50, 0 }
 0x753   : > { %9431 = vmatmul.mubr.msk.bf16.vlgmr.msra.gmra.mxu1 %vm672_vm3, %v2524_v2 }
 0x754   : > { %9441 = vmatpush3.bf16.xpose.msra.mxu1 %v2631_v51  ;;  %9442 = vmatprep.mubr.msk.bf16.mxu1 %vm10483_vm2, %v12747_v18 }
 0x755   : > { %9452 = vmatprep.subr.bf16.mxu1 %v12747_v18 }
 0x75b   : > { %9443 = vmatmul.mubr.msk.bf16.vlgmr.msra.gmra.mxu1 %vm672_vm3, %v2624_v48 }
 0x75c   : > { %9453 = vmatpush3.bf16.xpose.msra.mxu1 %v2731_v41  ;;  %9454 = vmatprep.mubr.msk.bf16.mxu1 %vm10483_vm2, %v12747_v18 }
 0x75d   : > { %9464 = vmatprep.subr.bf16.mxu1 %v12747_v18 }
 0x763   : > { %9455 = vmatmul.mubr.msk.bf16.vlgmr.msra.gmra.mxu1 %vm672_vm3, %v2724_v58 }
 0x764   : > { %9465 = vmatpush3.bf16.msra.mxu1 %v2925_v53  ;;  %9466 = vmatprep.mubr.msk.bf16.mxu1 %vm10483_vm2, %v12747_v18 }
 0x765   : > { %9476 = vmatprep.subr.bf16.mxu1 %v12747_v18 }
 0x76d   : > { %v11201_v47 = vpop.f32.mrf.mxu0 }
 0x76f   : > { %v9378_v61 = vpop.f32.mrf.mxu0 }
 0x771   : > { %v2132_v13 = vpop.f32.mrf.mxu0 }
 0x773   : > { %v9379_v32 = vpop.f32.mrf.mxu0 }
 0x78b   : > { %v11203_v59 = vpop.f32.mrf.mxu0 }
 0x78d   : > { %v9390_v0 = vpop.f32.mrf.mxu0 }
 0x78f   : > { %v2228_v2 = vpop.f32.mrf.mxu0 }
 0x791   : > { %v9391_v46 = vpop.f32.mrf.mxu0 }
 0x793   : > { %v11205_v19 = vpop.f32.mrf.mxu0 }
 0x795   : > { %v9402_v5 = vpop.f32.mrf.mxu0 }
 0x797   : > { %v2324_v1 = vpop.f32.mrf.mxu0 }
 0x799   : > { %v11207_v62 = vpop.f32.mrf.mxu1  ;;  %v9403_v56 = vpop.f32.mrf.mxu0 }
 0x79b   : > { %v9372_v48 = vpop.f32.mrf.mxu1 }
 0x79d   : > { %v2084_v45 = vpop.f32.mrf.mxu1 }
 0x79f   : > { %v9373_v52 = vpop.f32.mrf.mxu1 }
 0x7a1   : > { %v11211_v49 = vpop.f32.mrf.mxu1 }
 0x7a3   : > { %v9384_v28 = vpop.f32.mrf.mxu1 }
 0x7a5   : > { %v2180_v16 = vpop.f32.mrf.mxu1 }
 0x7a7   : > { %v9385_v31 = vpop.f32.mrf.mxu1 }
 0x7c8   : > { %v11215_v40 = vpop.f32.mrf.mxu0 }
 0x7ca   : > { %v9414_v44 = vpop.f32.mrf.mxu0 }
 0x7cc   : > { %v2420_v4 = vpop.f32.mrf.mxu0 }
 0x7ce   : > { %v11217_v51 = vpop.f32.mrf.mxu1  ;;  %v9415_v15 = vpop.f32.mrf.mxu0 }
 0x7d0   : > { %v9396_v41 = vpop.f32.mrf.mxu1  ;;  %v2517_v50 = vpop.f32.mrf.mxu0 }
 0x7d1   : > { %v2826_v53 = vsel %vm672_vm3, %v2517_v50, -inf }
 0x7d2   : > { %2827 = vmax.xlane.f32.xlu0 %v2826_v53  ;;  %v2276_v61 = vpop.f32.mrf.mxu1  ;;  %v9426_v13 = vpop.f32.mrf.mxu0 }
 0x7d4   : > { %v9397_v32 = vpop.f32.mrf.mxu1  ;;  %v2520_v0 = vpop.f32.mrf.mxu0 }
 0x7d6   : > { %v9427_v2 = vpop.f32.mrf.mxu0 }
 0x7fd   : > { %v2617_v46 = vpop.f32.mrf.mxu0 }
 0x7fe   : > { %v2832_v5 = vsel %vm672_vm3, %v2617_v46, -inf }
 0x7ff   : > { %2833 = vmax.xlane.f32.xlu0 %v2832_v5  ;;  %v9438_v1 = vpop.f32.mrf.mxu0 }
 0x801   : > { %v2620_v56 = vpop.f32.mrf.mxu0 }
 0x803   : > { %v11223_v48 = vpop.f32.mrf.mxu1  ;;  %v9439_v45 = vpop.f32.mrf.mxu0 }
 0x805   : > { %v9408_v28 = vpop.f32.mrf.mxu1  ;;  %v2717_v16 = vpop.f32.mrf.mxu0 }
 0x806   : > { %v2838_v31 = vsel %vm672_vm3, %v2717_v16, -inf }
 0x807   : > { %v2372_v44 = vpop.f32.mrf.mxu1  ;;  %2839 = vmax.xlane.f32.xlu0 %v2838_v31  ;;  %v9450_v4 = vpop.f32.mrf.mxu0 }
 0x809   : > { %v9409_v15 = vpop.f32.mrf.mxu1  ;;  %v2720_v41 = vpop.f32.mrf.mxu0 }
 0x80b   : > { %v2467_v53 = vpop.f32.mrf.mxu1  ;;  %v9451_v61 = vpop.f32.mrf.mxu0 }
 0x80c   : > { %v2823_v13 = vsel %vm672_vm3, %v2467_v53, -inf }
 0x80d   : > { %2824 = vmax.xlane.f32.xlu1 %v2823_v13  ;;  %v9420_v32 = vpop.f32.mrf.mxu1  ;;  %v11229_v0 = vpop.f32.mrf.mxu0 }
 0x80e   : > { %v2844_v2 = vsel %vm672_vm3, %v11229_v0, -inf }
 0x80f   : > { %v2470_v5 = vpop.f32.mrf.mxu1  ;;  %2845 = vmax.xlane.f32.xlu0 %v2844_v2  ;;  %v9462_v1 = vpop.f32.mrf.mxu0 }
 0x811   : > { %v9421_v56 = vpop.f32.mrf.mxu1  ;;  %v2820_v45 = vpop.f32.mrf.mxu0 }
 0x813   : > { %v2567_v28 = vpop.f32.mrf.mxu1  ;;  %v9463_v31 = vpop.f32.mrf.mxu0 }
 0x814   : > { %v2829_v44 = vsel %vm672_vm3, %v2567_v28, -inf }
 0x815   : > { %v9432_v4 = vpop.f32.mrf.mxu1  ;;  %2830 = vmax.xlane.f32.xlu0 %v2829_v44 }
 0x817   : > { %v2570_v15 = vpop.f32.mrf.mxu1 }
 0x819   : > { %v9433_v41 = vpop.f32.mrf.mxu1 }
 0x81b   : > { %v2667_v61 = vpop.f32.mrf.mxu1 }
 0x81c   : > { %v2835_v45 = vsel %vm672_vm3, %v2667_v61, -inf }
 0x81d   : > { %v9444_v13 = vpop.f32.mrf.mxu1 }
 0x81e   : > { %3111 = vrot.lane.b32.xlu1 %v10667_v26, %s10489_s14 }
 0x81f   : > { %v2670_v32 = vpop.f32.mrf.mxu1 }
 0x821   : > { %v9445_v52 = vpop.f32.mrf.mxu1 }
 0x823   : > { %v11236_v5 = vpop.f32.mrf.mxu1 }
 0x824   : > { %v2841_v31 = vsel %vm672_vm3, %v11236_v5, -inf }
 0x825   : > { %v9456_v2 = vpop.f32.mrf.mxu1 }
 0x827   : > { %v2770_v1 = vpop.f32.mrf.mxu1 }
 0x828   : > { %v11249_v1 = vpop.permute.xlu1 %3063 }
 0x829   : > { %v9457_v56 = vpop.f32.mrf.mxu1 }
 0x82b   : > { %3159 = vrot.lane.b32.xlu0 %v10619_v54, %s10489_s14 }
 0x842   : > { %2836 = vmax.xlane.f32.xlu1 %v2835_v45 }
 0x846   : > { %2842 = vmax.xlane.f32.xlu1 %v2841_v31  ;;  %v11251_v31 = vpop.permute.xlu1 %3015 }
 0x857   : > { %3207 = vrot.lane.b32.xlu1 %v10671_v27, %s10489_s14 }
 0x85b   : > { %v2828_v44 = vpop.xlane.xlu0 %2827 }
 0x85c   : > { %v2848_v52 = vsub.f32 %v2517_v50, %v2828_v44 }
 0x85e   : > { %v2857_v4 = vmul.f32 1.442695, %v2848_v52 }
 0x860   : > { %10268 = vpow2.f32 %v2857_v4 }
 0x86d   : > { %v11245_v15 = vpop.eup %10268 }
 0x86e   : > { %v2874_v41 = vsel %vm672_vm3, %v11245_v15, 0.0 }
 0x86f   : > { %2875 = vadd.xlane.f32.xlu0 %v2874_v41 }
 0x888   : > { %v2834_v13 = vpop.xlane.xlu0 %2833 }
 0x889   : > { %v2850_v32 = vsub.f32 %v2617_v46, %v2834_v13 }
 0x88b   : > { %v2861_v2 = vmul.f32 1.442695, %v2850_v32 }
 0x88d   : > { %10270 = vpow2.f32 %v2861_v2 }
 0x890   : > { %v2840_v56 = vpop.xlane.xlu0 %2839 }
 0x891   : > { %v2852_v45 = vsub.f32 %v2717_v16, %v2840_v56 }
 0x893   : > { %v2865_v58 = vmul.f32 1.442695, %v2852_v45 }
 0x895   : > { %10272 = vpow2.f32 %v2865_v58 }
 0x896   : > { %v2825_v50 = vpop.xlane.xlu1 %2824 }
 0x897   : > { %v2847_v44 = vsub.f32 %v2467_v53, %v2825_v50 }
 0x898   : > { %v2846_v30 = vpop.xlane.xlu0 %2845 }
 0x899   : > { %v2855_v52 = vmul.f32 1.442695, %v2847_v44 }
 0x89a   : > { %v11253_v4 = vpop.eup %10270  ;;  %v11272_v44 = vpop.permute.xlu1 %3111 }
 0x89b   : > { %10274 = vpow2.f32 %v2855_v52  ;;  %v2880_v46 = vsel %vm672_vm3, %v11253_v4, 0.0 }
 0x89c   : > { %2881 = vadd.xlane.f32.xlu0 %v2880_v46 }
 0x89e   : > { %v2831_v41 = vpop.xlane.xlu0 %2830 }
 0x89f   : > { %v2849_v13 = vsub.f32 %v2567_v28, %v2831_v41  ;;  %v2854_v28 = vsub.f32 %v11229_v0, %v2846_v30 }
 0x8a1   : > { %v2859_v32 = vmul.f32 1.442695, %v2849_v13  ;;  %v2869_v50 = vmul.f32 1.442695, %v2854_v28 }
 0x8a2   : > { %v11257_v2 = vpop.eup %10272  ;;  %v3160_v30 = vpop.permute.xlu0 %3159 }
 0x8a3   : > { %10276 = vpow2.f32 %v2859_v32  ;;  %v2886_v58 = vsel %vm672_vm3, %v11257_v2, 0.0 }
 0x8a4   : > { %2887 = vadd.xlane.f32.xlu0 %v2886_v58  ;;  %10278 = vpow2.f32 %v2869_v50 }
 0x8a8   : > { %v11261_v16 = vpop.eup %10274 }
 0x8a9   : > { %v2871_v53 = vsel %vm672_vm3, %v11261_v16, 0.0 }
 0x8aa   : > { %2872 = vadd.xlane.f32.xlu1 %v2871_v53 }
 0x8b0   : > { %v11265_v56 = vpop.eup %10276 }
 0x8b1   : > { %v2877_v45 = vsel %vm672_vm3, %v11265_v56, 0.0  ;;  %v11274_v13 = vpop.eup %10278 }
 0x8b2   : > { %2878 = vadd.xlane.f32.xlu1 %v2877_v45  ;;  %v2892_v32 = vsel %vm672_vm3, %v11274_v13, 0.0 }
 0x8ba   : > { %3255 = vrot.lane.b32.xlu0 %v10624_v60, %s10489_s14 }
 0x8cb   : > { %v2837_v52 = vpop.xlane.xlu1 %2836 }
 0x8cc   : > { %v2851_v46 = vsub.f32 %v2667_v61, %v2837_v52 }
 0x8ce   : > { %v2863_v41 = vmul.f32 1.442695, %v2851_v46 }
 0x8cf   : > { %v2843_v0 = vpop.xlane.xlu1 %2842 }
 0x8d0   : > { %10280 = vpow2.f32 %v2863_v41  ;;  %v2853_v45 = vsub.f32 %v11236_v5, %v2843_v0  ;;  %v3069_v5 = vsel %vm1163_vm4, %v11249_v1, 0 }
 0x8d2   : > { %v2867_v28 = vmul.f32 1.442695, %v2853_v45 }
 0x8d9   : > { %2893 = vadd.xlane.f32.xlu0 %v2892_v32 }
 0x8dd   : > { %v11278_v58 = vpop.eup %10280 }
 0x8de   : > { %v2883_v53 = vsel %vm672_vm3, %v11278_v58, 0.0 }
 0x8df   : > { %2884 = vadd.xlane.f32.xlu1 %v2883_v53 }
 0x8ef   : > { %3355 = vrot.lane.b32.xlu0 %v10629_v63, %s10490_s15 }
 0x8f0   : > { %3305 = vrot.lane.b32.xlu1 %v10653_v22, %s10490_s15 }
 0x8f3   : > { %3353 = vrot.lane.b32.xlu0 %v10629_v63, %s10491_s16 }
 0x8f7   : > { %3303 = vrot.lane.b32.xlu0 %v10653_v22, %s10491_s16 }
 0x8f8   : > { %v2876_v61 = vpop.xlane.xlu0 %2875 }
 0x8f9   : > { %10282 = vrcp.f32 %v2876_v61 }
 0x8fa   : > { %10284 = vpow2.f32 %v2867_v28  ;;  %v3165_v28 = vsel %vm1163_vm4, %v3160_v30, 0 }
 0x8fb   : > { %3453 = vrot.lane.b32.xlu0 %v10657_v23, %s10491_s16 }
 0x8ff   : > { %3403 = vrot.lane.b32.xlu0 %v10661_v24, %s10491_s16 }
 0x903   : > { %3553 = vrot.lane.b32.xlu0 %v10619_v54, %s10491_s16 }
 0x906   : > { %v10283_v50 = vpop.eup %10282 }
 0x907   : > { %3503 = vrot.lane.b32.xlu0 %v10667_v26, %s10491_s16  ;;  %v2904_v52 = vmul.f32 %v10283_v50, %v11245_v15  ;;  %v11310_v15 = vpop.eup %10284 }
 0x908   : > { %v2889_v1 = vsel %vm672_vm3, %v11310_v15, 0.0 }
 0x909   : > { %v2912_v46 = vpack.c.bf16 %v2904_v52, %v2904_v52 }
 0x90b   : > { %3653 = vrot.lane.b32.xlu0 %v10624_v60, %s10491_s16  ;;  %9473 = vmatmul.mubr.msk.bf16.vlgmr.msra.gmra.mxu0 %vm672_vm3, %v2912_v46 }
 0x90c   : > { %9483 = vmatpush3.bf16.msra.mxu0 %v3069_v5  ;;  %9484 = vmatprep.mubr.msk.bf16.mxu0 %vm10483_vm2, %v12747_v18 }
 0x90d   : > { %9494 = vmatprep.subr.bf16.mxu0 %v12747_v18 }
 0x90f   : > { %3847 = vrot.lane.b32.xlu0 %v10629_v63, %s10492_s17  ;;  %v3208_v63 = vpop.permute.xlu1 %3207 }
 0x914   : > { %2890 = vadd.xlane.f32.xlu1 %v2889_v1 }
 0x925   : > { %v2882_v41 = vpop.xlane.xlu0 %2881  ;;  %3455 = vrot.lane.b32.xlu1 %v10657_v23, %s10490_s15 }
 0x926   : > { %10286 = vrcp.f32 %v2882_v41 }
 0x929   : > { %3405 = vrot.lane.b32.xlu1 %v10661_v24, %s10490_s15 }
 0x92d   : > { %v2888_v32 = vpop.xlane.xlu0 %2887  ;;  %3555 = vrot.lane.b32.xlu1 %v10619_v54, %s10490_s15 }
 0x92e   : > { %10288 = vrcp.f32 %v2888_v32  ;;  %v3021_v32 = vsel %vm1163_vm4, %v11251_v31, 0 }
 0x931   : > { %3505 = vrot.lane.b32.xlu1 %v10667_v26, %s10490_s15  ;;  %v3256_v46 = vpop.permute.xlu0 %3255 }
 0x932   : > { %v3261_v5 = vsel %vm1163_vm4, %v3256_v46, 0 }
 0x933   : > { %v10287_v53 = vpop.eup %10286  ;;  %v2873_v0 = vpop.xlane.xlu1 %2872 }
 0x934   : > { %10290 = vrcp.f32 %v2873_v0  ;;  %v2906_v61 = vmul.f32 %v10287_v53, %v11253_v4 }
 0x935   : > { %3655 = vrot.lane.b32.xlu1 %v10624_v60, %s10490_s15 }
 0x936   : > { %v2914_v45 = vpack.c.bf16 %v2906_v61, %v2906_v61 }
 0x938   : > { %9485 = vmatmul.mubr.msk.bf16.vlgmr.msra.gmra.mxu0 %vm672_vm3, %v2914_v45 }
 0x939   : > { %9495 = vmatpush3.bf16.msra.mxu0 %v3165_v28  ;;  %3605 = vrot.lane.b32.xlu1 %v10671_v27, %s10490_s15 }
 0x93a   : > { %9496 = vmatprep.mubr.msk.bf16.mxu0 %vm10483_vm2, %v12747_v18  ;;  %9506 = vmatprep.subr.bf16.mxu0 %v12747_v18 }
 0x93b   : > { %v10289_v50 = vpop.eup %10288  ;;  %v2879_v52 = vpop.xlane.xlu1 %2878 }
 0x93c   : > { %10292 = vrcp.f32 %v2879_v52  ;;  %v2908_v4 = vmul.f32 %v10289_v50, %v11257_v2 }
 0x93d   : > { %3603 = vrot.lane.b32.xlu1 %v10671_v27, %s10491_s16 }
 0x93e   : > { %v2916_v30 = vpack.c.bf16 %v2908_v4, %v2908_v4  ;;  %v3213_v4 = vsel %vm1163_vm4, %v3208_v63, 0 }
 0x940   : > { %9497 = vmatmul.mubr.msk.bf16.vlgmr.msra.gmra.mxu0 %vm672_vm3, %v2916_v30 }
 0x941   : > { %v10291_v1 = vpop.eup %10290  ;;  %9507 = vmatpush3.bf16.msra.mxu0 %v3261_v5  ;;  %3799 = vrot.lane.b32.xlu1 %v10653_v22, %s10492_s17 }
 0x942   : > { %v2903_v41 = vmul.f32 %v10291_v1, %v11261_v16  ;;  %9508 = vmatprep.mubr.msk.bf16.mxu0 %vm10483_vm2, %v12747_v18  ;;  %9518 = vmatprep.subr.bf16.mxu0 %v12747_v18 }
 0x944   : > { %v2911_v2 = vpack.c.bf16 %v2903_v41, %v2903_v41 }
 0x945   : > { %3943 = vrot.lane.b32.xlu1 %v10657_v23, %s10492_s17  ;;  %v3117_v23 = vsel %vm1163_vm4, %v11272_v44, 0 }
 0x946   : > { %9467 = vmatmul.mubr.msk.bf16.vlgmr.msra.gmra.mxu1 %vm672_vm3, %v2911_v2 }
 0x947   : > { %9477 = vmatpush3.bf16.msra.mxu1 %v3021_v32  ;;  %9478 = vmatprep.mubr.msk.bf16.mxu1 %vm10483_vm2, %v12747_v18 }
 0x948   : > { %9488 = vmatprep.subr.bf16.mxu1 %v12747_v18 }
 0x949   : > { %v10293_v22 = vpop.eup %10292  ;;  %3895 = vrot.lane.b32.xlu1 %v10661_v24, %s10492_s17 }
 0x94a   : > { %v2905_v16 = vmul.f32 %v10293_v22, %v11265_v56 }
 0x94c   : > { %v2913_v53 = vpack.c.bf16 %v2905_v16, %v2905_v16 }
 0x94e   : > { %9479 = vmatmul.mubr.msk.bf16.vlgmr.msra.gmra.mxu1 %vm672_vm3, %v2913_v53 }
 0x94f   : > { %9489 = vmatpush3.bf16.msra.mxu1 %v3117_v23  ;;  %9490 = vmatprep.mubr.msk.bf16.mxu1 %vm10483_vm2, %v12747_v18 }
 0x950   : > { %9500 = vmatprep.subr.bf16.mxu1 %v12747_v18 }
 0x962   : > { %v2894_v31 = vpop.xlane.xlu0 %2893 }
 0x963   : > { %10294 = vrcp.f32 %v2894_v31 }
 0x966   : > { %v3356_v56 = vpop.permute.xlu0 %3355 }
 0x967   : > { %v3361_v28 = vsel %vm672_vm3, %v3356_v56, 0 }
 0x968   : > { %v2885_v0 = vpop.xlane.xlu1 %2884 }
 0x969   : > { %10296 = vrcp.f32 %v2885_v0 }
 0x96c   : > { %v3306_v46 = vpop.permute.xlu1 %3305 }
 0x970   : > { %v10295_v61 = vpop.eup %10294 }
 0x971   : > { %v2910_v24 = vmul.f32 %v10295_v61, %v11274_v13  ;;  %v3354_v13 = vpop.permute.xlu0 %3353 }
 0x973   : > { %v2918_v45 = vpack.c.bf16 %v2910_v24, %v2910_v24  ;;  %v3311_v24 = vsel %vm672_vm3, %v3306_v46, 0 }
 0x975   : > { %9509 = vmatmul.mubr.msk.bf16.vlgmr.msra.gmra.mxu0 %vm672_vm3, %v2918_v45 }
 0x976   : > { %v10297_v44 = vpop.eup %10296  ;;  %9519 = vmatpush3.bf16.xpose.msra.mxu0 %v3361_v28  ;;  %9520 = vmatprep.mubr.msk.bf16.mxu0 %vm10483_vm2, %v12747_v18 }
 0x977   : > { %v2907_v50 = vmul.f32 %v10297_v44, %v11278_v58  ;;  %9530 = vmatprep.subr.bf16.mxu0 %v12747_v18  ;;  %v3304_v58 = vpop.permute.xlu0 %3303 }
 0x979   : > { %v2915_v52 = vpack.c.bf16 %v2907_v50, %v2907_v50 }
 0x97b   : > { %9491 = vmatmul.mubr.msk.bf16.vlgmr.msra.gmra.mxu1 %vm672_vm3, %v2915_v52  ;;  %v3454_v30 = vpop.permute.xlu0 %3453 }
 0x97c   : > { %9501 = vmatpush3.bf16.msra.mxu1 %v3213_v4  ;;  %9502 = vmatprep.mubr.msk.bf16.mxu1 %vm10483_vm2, %v12747_v18 }
 0x97d   : > { %9521 = vmatmul.mubr.msk.bf16.vlgmr.msra.gmra.mxu0 %vm672_vm3, %v3354_v13  ;;  %9512 = vmatprep.subr.bf16.mxu1 %v12747_v18 }
 0x97e   : > { %9532 = vmatprep.mubr.msk.bf16.mxu0 %vm10483_vm2, %v12747_v18 }
 0x97f   : > { %v3404_v63 = vpop.permute.xlu0 %3403 }
 0x983   : > { %v3554_v2 = vpop.permute.xlu0 %3553 }
 0x987   : > { %v3504_v23 = vpop.permute.xlu0 %3503 }
 0x98b   : > { %v3654_v56 = vpop.permute.xlu0 %3653 }
 0x99d   : > { %v2891_v5 = vpop.xlane.xlu1 %2890 }
 0x99e   : > { %10298 = vrcp.f32 %v2891_v5 }
 0x9a1   : > { %v3456_v1 = vpop.permute.xlu1 %3455 }
 0x9a2   : > { %v3461_v41 = vsel %vm672_vm3, %v3456_v1, 0 }
 0x9a3   : > { %9531 = vmatpush3.bf16.xpose.msra.mxu0 %v3461_v41 }
 0x9a4   : > { %9542 = vmatprep.subr.bf16.mxu0 %v12747_v18 }
 0x9a5   : > { %v3406_v32 = vpop.permute.xlu1 %3405 }
 0x9a6   : > { %v3411_v44 = vsel %vm672_vm3, %v3406_v32, 0 }
 0x9a9   : > { %v3556_v22 = vpop.permute.xlu1 %3555 }
 0x9aa   : > { %v3561_v16 = vsel %vm672_vm3, %v3556_v22, 0  ;;  %9533 = vmatmul.mubr.msk.bf16.vlgmr.msra.gmra.mxu0 %vm672_vm3, %v3454_v30 }
 0x9ab   : > { %v10299_v53 = vpop.eup %10298  ;;  %9543 = vmatpush3.bf16.xpose.msra.mxu0 %v3561_v16  ;;  %9544 = vmatprep.mubr.msk.bf16.mxu0 %vm10483_vm2, %v12747_v18 }
 0x9ac   : > { %v2909_v31 = vmul.f32 %v10299_v53, %v11310_v15  ;;  %9554 = vmatprep.subr.bf16.mxu0 %v12747_v18  ;;  %v3848_v15 = vpop.permute.xlu0 %3847 }
 0x9ad   : > { %v3506_v0 = vpop.permute.xlu1 %3505  ;;  %v3853_v50 = vsel %vm1163_vm4, %v3848_v15, 0 }
 0x9ae   : > { %v2917_v61 = vpack.c.bf16 %v2909_v31, %v2909_v31  ;;  %v3511_v52 = vsel %vm672_vm3, %v3506_v0, 0 }
 0x9b0   : > { %9503 = vmatmul.mubr.msk.bf16.vlgmr.msra.gmra.mxu1 %vm672_vm3, %v2917_v61 }
 0x9b1   : > { %9513 = vmatpush3.bf16.xpose.msra.mxu1 %v3311_v24  ;;  %v3656_v45 = vpop.permute.xlu1 %3655  ;;  %9514 = vmatprep.mubr.msk.bf16.mxu1 %vm10483_vm2, %v12747_v18 }
 0x9b2   : > { %v3661_v28 = vsel %vm672_vm3, %v3656_v45, 0  ;;  %9545 = vmatmul.mubr.msk.bf16.vlgmr.msra.gmra.mxu0 %vm672_vm3, %v3554_v2  ;;  %9524 = vmatprep.subr.bf16.mxu1 %v12747_v18 }
 0x9b3   : > { %9555 = vmatpush3.bf16.xpose.msra.mxu0 %v3661_v28  ;;  %9556 = vmatprep.mubr.msk.bf16.mxu0 %vm10483_vm2, %v12747_v18 }
 0x9b4   : > { %9566 = vmatprep.subr.bf16.mxu0 %v12747_v18 }
 0x9b5   : > { %v3606_v4 = vpop.permute.xlu1 %3605 }
 0x9b8   : > { %9515 = vmatmul.mubr.msk.bf16.vlgmr.msra.gmra.mxu1 %vm672_vm3, %v3304_v58  ;;  %v3611_v58 = vsel %vm672_vm3, %v3606_v4, 0 }
 0x9b9   : > { %9525 = vmatpush3.bf16.xpose.msra.mxu1 %v3411_v44  ;;  %9526 = vmatprep.mubr.msk.bf16.mxu1 %vm10483_vm2, %v12747_v18  ;;  %v3604_v13 = vpop.permute.xlu1 %3603 }
 0x9ba   : > { %9557 = vmatmul.mubr.msk.bf16.vlgmr.msra.gmra.mxu0 %vm672_vm3, %v3654_v56  ;;  %9536 = vmatprep.subr.bf16.mxu1 %v12747_v18 }
 0x9bb   : > { %9567 = vmatpush3.bf16.msra.mxu0 %v3853_v50  ;;  %9568 = vmatprep.mubr.msk.bf16.mxu0 %vm10483_vm2, %v12747_v18 }
 0x9bc   : > { %9578 = vmatprep.subr.bf16.mxu0 %v12747_v18 }
 0x9bd   : > { %v3800_v30 = vpop.permute.xlu1 %3799 }
 0x9be   : > { %v3805_v1 = vsel %vm1163_vm4, %v3800_v30, 0 }
 0x9c0   : > { %9527 = vmatmul.mubr.msk.bf16.vlgmr.msra.gmra.mxu1 %vm672_vm3, %v3404_v63 }
 0x9c1   : > { %9537 = vmatpush3.bf16.xpose.msra.mxu1 %v3511_v52  ;;  %9538 = vmatprep.mubr.msk.bf16.mxu1 %vm10483_vm2, %v12747_v18 }
 0x9c2   : > { %9548 = vmatprep.subr.bf16.mxu1 %v12747_v18 }
 0x9c8   : > { %9539 = vmatmul.mubr.msk.bf16.vlgmr.msra.gmra.mxu1 %vm672_vm3, %v3504_v23 }
 0x9c9   : > { %9549 = vmatpush3.bf16.xpose.msra.mxu1 %v3611_v58  ;;  %9550 = vmatprep.mubr.msk.bf16.mxu1 %vm10483_vm2, %v12747_v18 }
 0x9ca   : > { %9560 = vmatprep.subr.bf16.mxu1 %v12747_v18 }
 0x9cb   : > { %v11413_v46 = vpop.f32.mrf.mxu0 }
 0x9cd   : > { %v9474_v5 = vpop.f32.mrf.mxu0 }
 0x9cf   : > { %v3012_v63 = vpop.f32.mrf.mxu0 }
 0x9d0   : > { %9551 = vmatmul.mubr.msk.bf16.vlgmr.msra.gmra.mxu1 %vm672_vm3, %v3604_v13 }
 0x9d1   : > { %9561 = vmatpush3.bf16.msra.mxu1 %v3805_v1  ;;  %v9475_v41 = vpop.f32.mrf.mxu0  ;;  %9562 = vmatprep.mubr.msk.bf16.mxu1 %vm10483_vm2, %v12747_v18 }
 0x9d2   : > { %9572 = vmatprep.subr.bf16.mxu1 %v12747_v18 }
 0x9f8   : > { %v11420_v2 = vpop.f32.mrf.mxu0 }
 0x9fa   : > { %v9486_v32 = vpop.f32.mrf.mxu0 }
 0x9fc   : > { %v3108_v22 = vpop.f32.mrf.mxu0 }
 0x9fe   : > { %v9487_v16 = vpop.f32.mrf.mxu0 }
 0xa00   : > { %v11422_v53 = vpop.f32.mrf.mxu0 }
 0xa02   : > { %v9498_v23 = vpop.f32.mrf.mxu0 }
 0xa04   : > { %v3204_v31 = vpop.f32.mrf.mxu0 }
 0xa06   : > { %v11424_v0 = vpop.f32.mrf.mxu1  ;;  %v9499_v61 = vpop.f32.mrf.mxu0 }
 0xa08   : > { %v9468_v56 = vpop.f32.mrf.mxu1 }
 0xa0a   : > { %v2964_v45 = vpop.f32.mrf.mxu1 }
 0xa0c   : > { %v9469_v28 = vpop.f32.mrf.mxu1 }
 0xa0e   : > { %v11428_v15 = vpop.f32.mrf.mxu1 }
 0xa10   : > { %v9480_v50 = vpop.f32.mrf.mxu1 }
 0xa12   : > { %v3060_v52 = vpop.f32.mrf.mxu1 }
 0xa14   : > { %v9481_v4 = vpop.f32.mrf.mxu1 }
 0xa35   : > { %v11432_v13 = vpop.f32.mrf.mxu0 }
 0xa37   : > { %v9510_v58 = vpop.f32.mrf.mxu0 }
 0xa39   : > { %v3300_v30 = vpop.f32.mrf.mxu0 }
 0xa3b   : > { %v11434_v5 = vpop.f32.mrf.mxu1  ;;  %v9511_v63 = vpop.f32.mrf.mxu0 }
 0xa3d   : > { %v9492_v41 = vpop.f32.mrf.mxu1  ;;  %v3397_v32 = vpop.f32.mrf.mxu0 }
 0xa3e   : > { %v3706_v22 = vsel %vm672_vm3, %v3397_v32, -inf }
 0xa3f   : > { %3707 = vmax.xlane.f32.xlu0 %v3706_v22  ;;  %v3156_v16 = vpop.f32.mrf.mxu1  ;;  %v9522_v23 = vpop.f32.mrf.mxu0 }
 0xa41   : > { %v9493_v31 = vpop.f32.mrf.mxu1  ;;  %v3400_v61 = vpop.f32.mrf.mxu0 }
 0xa43   : > { %v9523_v56 = vpop.f32.mrf.mxu0 }
 0xa6a   : > { %v3497_v45 = vpop.f32.mrf.mxu0 }
 0xa6b   : > { %v3712_v28 = vsel %vm672_vm3, %v3497_v45, -inf }
 0xa6c   : > { %3713 = vmax.xlane.f32.xlu0 %v3712_v28  ;;  %v9534_v50 = vpop.f32.mrf.mxu0 }
 0xa6e   : > { %v3500_v52 = vpop.f32.mrf.mxu0 }
 0xa70   : > { %v11440_v4 = vpop.f32.mrf.mxu1  ;;  %v9535_v58 = vpop.f32.mrf.mxu0 }
 0xa72   : > { %v9504_v63 = vpop.f32.mrf.mxu1  ;;  %v3597_v41 = vpop.f32.mrf.mxu0 }
 0xa73   : > { %v3718_v22 = vsel %vm672_vm3, %v3597_v41, -inf }
 0xa74   : > { %v3252_v16 = vpop.f32.mrf.mxu1  ;;  %3719 = vmax.xlane.f32.xlu0 %v3718_v22  ;;  %v9546_v23 = vpop.f32.mrf.mxu0 }
 0xa76   : > { %v9505_v31 = vpop.f32.mrf.mxu1  ;;  %v3600_v61 = vpop.f32.mrf.mxu0 }
 0xa78   : > { %v3347_v56 = vpop.f32.mrf.mxu1  ;;  %v9547_v1 = vpop.f32.mrf.mxu0 }
 0xa79   : > { %v3703_v28 = vsel %vm672_vm3, %v3347_v56, -inf }
 0xa7a   : > { %3704 = vmax.xlane.f32.xlu1 %v3703_v28  ;;  %v9516_v50 = vpop.f32.mrf.mxu1  ;;  %v11446_v52 = vpop.f32.mrf.mxu0 }
 0xa7b   : > { %v3724_v58 = vsel %vm672_vm3, %v11446_v52, -inf }
 0xa7c   : > { %v3350_v63 = vpop.f32.mrf.mxu1  ;;  %3725 = vmax.xlane.f32.xlu0 %v3724_v58  ;;  %v9558_v30 = vpop.f32.mrf.mxu0 }
 0xa7e   : > { %v9517_v44 = vpop.f32.mrf.mxu1  ;;  %v3700_v16 = vpop.f32.mrf.mxu0 }
 0xa80   : > { %v3447_v22 = vpop.f32.mrf.mxu1  ;;  %v9559_v23 = vpop.f32.mrf.mxu0 }
 0xa81   : > { %v3709_v31 = vsel %vm672_vm3, %v3447_v22, -inf }
 0xa82   : > { %v9528_v61 = vpop.f32.mrf.mxu1  ;;  %3710 = vmax.xlane.f32.xlu0 %v3709_v31 }
 0xa84   : > { %v3450_v1 = vpop.f32.mrf.mxu1 }
 0xa86   : > { %v9529_v24 = vpop.f32.mrf.mxu1 }
 0xa88   : > { %v3547_v28 = vpop.f32.mrf.mxu1 }
 0xa89   : > { %v3715_v50 = vsel %vm672_vm3, %v3547_v28, -inf }
 0xa8a   : > { %3716 = vmax.xlane.f32.xlu1 %v3715_v50  ;;  %v9540_v43 = vpop.f32.mrf.mxu1  ;;  %v11461_v50 = vpop.permute.xlu1 %3943 }
 0xa8c   : > { %v3550_v18 = vpop.f32.mrf.mxu1 }
 0xa8e   : > { %v9541_v29 = vpop.f32.mrf.mxu1 }
 0xa90   : > { %v3647_v63 = vpop.f32.mrf.mxu1 }
 0xa91   : > { %v3721_v30 = vsel %vm672_vm3, %v3647_v63, -inf }
 0xa92   : > { %3722 = vmax.xlane.f32.xlu1 %v3721_v30  ;;  %v9552_v44 = vpop.f32.mrf.mxu1 }
 0xa93   : > { %v11463_v44 = vpop.permute.xlu1 %3895 }
 0xa94   : > { %v3650_v58 = vpop.f32.mrf.mxu1 }
 0xa96   : > { %v9553_v16 = vpop.f32.mrf.mxu1 }
 0xa98   : > { %4039 = vrot.lane.b32.xlu0 %v10619_v54, %s10492_s17 }
 0xaa3   : > { %3991 = vrot.lane.b32.xlu1 %v10667_v26, %s10492_s17 }
 0xac8   : > { %v3708_v24 = vpop.xlane.xlu0 %3707 }
 0xac9   : > { %v3728_v23 = vsub.f32 %v3397_v32, %v3708_v24 }
 0xacb   : > { %v3737_v31 = vmul.f32 1.442695, %v3728_v23 }
 0xacd   : > { %10300 = vpow2.f32 %v3737_v31 }
 0xada   : > { %v11457_v43 = vpop.eup %10300 }
 0xadb   : > { %v3754_v29 = vsel %vm672_vm3, %v11457_v43, 0.0 }
 0xadc   : > { %3755 = vadd.xlane.f32.xlu0 %v3754_v29 }
 0xaf5   : > { %v3714_v18 = vpop.xlane.xlu0 %3713 }
 0xaf6   : > { %v3730_v61 = vsub.f32 %v3497_v45, %v3714_v18 }
 0xaf8   : > { %v3741_v1 = vmul.f32 1.442695, %v3730_v61 }
 0xafa   : > { %10302 = vpow2.f32 %v3741_v1 }
 0xafd   : > { %v3720_v54 = vpop.xlane.xlu0 %3719 }
 0xafe   : > { %v3732_v30 = vsub.f32 %v3597_v41, %v3720_v54 }
 0xb00   : > { %v3745_v26 = vmul.f32 1.442695, %v3732_v30 }
 0xb02   : > { %10304 = vpow2.f32 %v3745_v26 }
 0xb03   : > { %v3705_v32 = vpop.xlane.xlu1 %3704 }
 0xb04   : > { %v3727_v58 = vsub.f32 %v3347_v56, %v3705_v32 }
 0xb05   : > { %v3726_v23 = vpop.xlane.xlu0 %3725 }
 0xb06   : > { %v3735_v16 = vmul.f32 1.442695, %v3727_v58 }
 0xb07   : > { %v11465_v24 = vpop.eup %10302 }
 0xb08   : > { %10306 = vpow2.f32 %v3735_v16  ;;  %v3760_v45 = vsel %vm672_vm3, %v11465_v24, 0.0 }
 0xb09   : > { %3761 = vadd.xlane.f32.xlu0 %v3760_v45 }
 0xb0b   : > { %v3711_v31 = vpop.xlane.xlu0 %3710 }
 0xb0c   : > { %v3729_v29 = vsub.f32 %v3447_v22, %v3711_v31  ;;  %v3734_v22 = vsub.f32 %v11446_v52, %v3726_v23  ;;  %v11506_v23 = vpack.c.bf16 %v10776_v35, %v10776_v35  ;;  %v11522_v35 = vpack.c.bf16 %v10774_v34, %v10774_v34 }
 0xb0d   : > { %v11538_v34 = vpack.c.bf16 %v10782_v39, %v10782_v39  ;;  %v12775_v39 = vmov 0.0  }
 0xb0e   : > { %v3739_v18 = vmul.f32 1.442695, %v3729_v29  ;;  %v3749_v26 = vmul.f32 1.442695, %v3734_v22  ;;  %v11518_v22 = vpack.c.bf16 %v10785_v8, %v10785_v8 }
 0xb0f   : > { %v11469_v61 = vpop.eup %10304 }
 0xb10   : > { %10308 = vpow2.f32 %v3739_v18  ;;  %v3766_v41 = vsel %vm672_vm3, %v11469_v61, 0.0 }
 0xb11   : > { %3767 = vadd.xlane.f32.xlu0 %v3766_v41  ;;  %10310 = vpow2.f32 %v3749_v26  ;;  %v11544_v26 = vpack.c.bf16 %v10787_v42, %v10787_v42 }
 0xb13   : > { %v3717_v32 = vpop.xlane.xlu1 %3716 }
 0xb14   : > { %v3731_v58 = vsub.f32 %v3547_v28, %v3717_v32 }
 0xb15   : > { %v11473_v56 = vpop.eup %10306 }
 0xb16   : > { %v3751_v1 = vsel %vm672_vm3, %v11473_v56, 0.0  ;;  %v3743_v45 = vmul.f32 1.442695, %v3731_v58  ;;  %v3949_v58 = vsel %vm1163_vm4, %v11461_v50, 0 }
 0xb17   : > { %3752 = vadd.xlane.f32.xlu1 %v3751_v1  ;;  %v4040_v1 = vpop.permute.xlu0 %4039 }
 0xb18   : > { %10312 = vpow2.f32 %v3743_v45 }
 0xb1b   : > { %v3723_v16 = vpop.xlane.xlu1 %3722 }
 0xb1c   : > { %v3733_v31 = vsub.f32 %v3647_v63, %v3723_v16  ;;  %v11500_v63 = vpack.c.bf16 %v10772_v33, %v10772_v33 }
 0xb1d   : > { %v11477_v54 = vpop.eup %10308 }
 0xb1e   : > { %v3757_v30 = vsel %vm672_vm3, %v11477_v54, 0.0  ;;  %v11486_v29 = vpop.eup %10310  ;;  %v3747_v18 = vmul.f32 1.442695, %v3733_v31 }
 0xb1f   : > { %3758 = vadd.xlane.f32.xlu1 %v3757_v30  ;;  %v3772_v41 = vsel %vm672_vm3, %v11486_v29, 0.0  ;;  %v11512_v30 = vpack.c.bf16 %v10780_v37, %v10780_v37  ;;  %v11530_v37 = vpack.c.bf16 %v10778_v36, %v10778_v36  ;;  %v3992_v50 = vpop.permute.xlu1 %3991 }
 0xb20   : > { %10314 = vpow2.f32 %v3747_v18 }
 0xb27   : > { %4135 = vrot.lane.b32.xlu0 %v10624_v60, %s10492_s17  ;;  %v11490_v60 = vpop.eup %10312 }
 0xb2d   : > { %v11494_v52 = vpop.eup %10314 }
 0xb2e   : > { %v3769_v28 = vsel %vm672_vm3, %v11494_v52, 0.0 }
 0xb30   : > { %4087 = vrot.lane.b32.xlu1 %v10671_v27, %s10492_s17  ;;  %v3763_v27 = vsel %vm672_vm3, %v11490_v60, 0.0 }
 0xb46   : > { %3773 = vadd.xlane.f32.xlu0 %v3772_v41  ;;  %v4045_v41 = vsel %vm1163_vm4, %v4040_v1, 0 }
 0xb54   : > { %3764 = vadd.xlane.f32.xlu1 %v3763_v27 }
 0xb58   : > { %3770 = vadd.xlane.f32.xlu1 %v3769_v28 }
 0xb5c   : > { %4363 = vrot.lane.b32.xlu0 %v11500_v63, %s10480_s10 }
 0xb60   : > { %4461 = vrot.lane.b32.xlu0 %v11506_v23, %s10480_s10 }
 0xb64   : > { %4559 = vrot.lane.b32.xlu0 %v11512_v30, %s10480_s10 }
 0xb65   : > { %v3756_v33 = vpop.xlane.xlu0 %3755 }
 0xb66   : > { %10316 = vrcp.f32 %v3756_v33 }
 0xb68   : > { %4657 = vrot.lane.b32.xlu0 %v11518_v22, %s10480_s10 }
 0xb69   : > { %4314 = vrot.lane.b32.xlu1 %v11522_v35, %s10480_s10 }
 0xb6c   : > { %4849 = vrot.lane.b32.xlu0 %v11500_v63, %s10481_s11 }
 0xb6d   : > { %4412 = vrot.lane.b32.xlu1 %v11530_v37, %s10480_s10 }
 0xb71   : > { %4510 = vrot.lane.b32.xlu1 %v11538_v34, %s10480_s10 }
 0xb73   : > { %v10317_v8 = vpop.eup %10316 }
 0xb74   : > { %v3784_v36 = vmul.f32 %v10317_v8, %v11457_v43 }
 0xb75   : > { %4608 = vrot.lane.b32.xlu1 %v11544_v26, %s10480_s10  ;;  %s10493_s10 = smov 8  }
 0xb76   : > { %v3792_v32 = vpack.c.bf16 %v3784_v36, %v3784_v36 }
 0xb78   : > { %9569 = vmatmul.mubr.msk.bf16.vlgmr.msra.gmra.mxu0 %vm672_vm3, %v3792_v32 }
 0xb79   : > { %9579 = vmatpush3.bf16.msra.mxu0 %v3949_v58  ;;  %4801 = vrot.lane.b32.xlu1 %v11522_v35, %s10481_s11 }
 0xb7a   : > { %9580 = vmatprep.mubr.msk.bf16.mxu0 %vm10483_vm2, %v12775_v39  ;;  %9590 = vmatprep.subr.bf16.mxu0 %v12775_v39 }
 0xb7d   : > { %4945 = vrot.lane.b32.xlu1 %v11506_v23, %s10481_s11 }
 0xb81   : > { %4897 = vrot.lane.b32.xlu1 %v11530_v37, %s10481_s11 }
 0xb92   : > { %v3762_v42 = vpop.xlane.xlu0 %3761 }
 0xb93   : > { %10318 = vrcp.f32 %v3762_v42 }
 0xb9a   : > { %v3768_v43 = vpop.xlane.xlu0 %3767 }
 0xb9b   : > { %10320 = vrcp.f32 %v3768_v43 }
 0xb9e   : > { %v4136_v8 = vpop.permute.xlu0 %4135 }
 0xba0   : > { %v10319_v16 = vpop.eup %10318  ;;  %v3753_v45 = vpop.xlane.xlu1 %3752 }
 0xba1   : > { %v3786_v31 = vmul.f32 %v10319_v16, %v11465_v24  ;;  %10322 = vrcp.f32 %v3753_v45  ;;  %v4141_v24 = vsel %vm1163_vm4, %v4136_v8, 0 }
 0xba3   : > { %v3794_v18 = vpack.c.bf16 %v3786_v31, %v3786_v31 }
 0xba5   : > { %9581 = vmatmul.mubr.msk.bf16.vlgmr.msra.gmra.mxu0 %vm672_vm3, %v3794_v18 }
 0xba6   : > { %9591 = vmatpush3.bf16.msra.mxu0 %v4045_v41  ;;  %9592 = vmatprep.mubr.msk.bf16.mxu0 %vm10483_vm2, %v12775_v39 }
 0xba7   : > { %9602 = vmatprep.subr.bf16.mxu0 %v12775_v39 }
 0xba8   : > { %v10321_v27 = vpop.eup %10320  ;;  %v3759_v28 = vpop.xlane.xlu1 %3758 }
 0xba9   : > { %v3788_v33 = vmul.f32 %v10321_v27, %v11469_v61  ;;  %10324 = vrcp.f32 %v3759_v28  ;;  %v3901_v61 = vsel %vm1163_vm4, %v11463_v44, 0 }
 0xbab   : > { %v3796_v36 = vpack.c.bf16 %v3788_v33, %v3788_v33 }
 0xbac   : > { %v4088_v45 = vpop.permute.xlu1 %4087 }
 0xbad   : > { %9593 = vmatmul.mubr.msk.bf16.vlgmr.msra.gmra.mxu0 %vm672_vm3, %v3796_v36 }
 0xbae   : > { %v10323_v1 = vpop.eup %10322  ;;  %9603 = vmatpush3.bf16.msra.mxu0 %v4141_v24  ;;  %9604 = vmatprep.mubr.msk.bf16.mxu0 %vm10483_vm2, %v12775_v39 }
 0xbaf   : > { %v3783_v32 = vmul.f32 %v10323_v1, %v11473_v56  ;;  %9614 = vmatprep.subr.bf16.mxu0 %v12775_v39  ;;  %v3997_v56 = vsel %vm1163_vm4, %v3992_v50, 0 }
 0xbb1   : > { %v3791_v58 = vpack.c.bf16 %v3783_v32, %v3783_v32 }
 0xbb3   : > { %9563 = vmatmul.mubr.msk.bf16.vlgmr.msra.gmra.mxu1 %vm672_vm3, %v3791_v58  ;;  %v4093_v58 = vsel %vm1163_vm4, %v4088_v45, 0 }
 0xbb4   : > { %9573 = vmatpush3.bf16.msra.mxu1 %v3901_v61  ;;  %9574 = vmatprep.mubr.msk.bf16.mxu1 %vm10483_vm2, %v12775_v39 }
 0xbb5   : > { %9584 = vmatprep.subr.bf16.mxu1 %v12775_v39 }
 0xbb6   : > { %v10325_v42 = vpop.eup %10324 }
 0xbb7   : > { %v3785_v43 = vmul.f32 %v10325_v42, %v11477_v54 }
 0xbb9   : > { %v3793_v16 = vpack.c.bf16 %v3785_v43, %v3785_v43 }
 0xbbb   : > { %9575 = vmatmul.mubr.msk.bf16.vlgmr.msra.gmra.mxu1 %vm672_vm3, %v3793_v16 }
 0xbbc   : > { %9585 = vmatpush3.bf16.msra.mxu1 %v3997_v56  ;;  %9586 = vmatprep.mubr.msk.bf16.mxu1 %vm10483_vm2, %v12775_v39 }
 0xbbd   : > { %9596 = vmatprep.subr.bf16.mxu1 %v12775_v39 }
 0xbcf   : > { %v3774_v44 = vpop.xlane.xlu0 %3773 }
 0xbd0   : > { %10326 = vrcp.f32 %v3774_v44 }
 0xbd3   : > { %v4364_v54 = vpop.permute.xlu0 %4363 }
 0xbd4   : > { %v4369_v50 = vsel %vm672_vm3, %v4364_v54, 0 }
 0xbd7   : > { %v4462_v33 = vpop.permute.xlu0 %4461 }
 0xbd8   : > { %v4467_v8 = vsel %vm672_vm3, %v4462_v33, 0 }
 0xbdb   : > { %v4560_v32 = vpop.permute.xlu0 %4559 }
 0xbdc   : > { %v4565_v61 = vsel %vm672_vm3, %v4560_v32, 0 }
 0xbdd   : > { %v10327_v31 = vpop.eup %10326  ;;  %v3765_v18 = vpop.xlane.xlu1 %3764 }
 0xbde   : > { %v3790_v41 = vmul.f32 %v10327_v31, %v11486_v29  ;;  %10328 = vrcp.f32 %v3765_v18 }
 0xbdf   : > { %v4658_v16 = vpop.permute.xlu0 %4657 }
 0xbe0   : > { %v3798_v27 = vpack.c.bf16 %v3790_v41, %v3790_v41 }
 0xbe1   : > { %v3771_v28 = vpop.xlane.xlu1 %3770 }
 0xbe2   : > { %10330 = vrcp.f32 %v3771_v28  ;;  %9605 = vmatmul.mubr.msk.bf16.vlgmr.msra.gmra.mxu0 %vm672_vm3, %v3798_v27 }
 0xbe3   : > { %9615 = vmatpush3.bf16.xpose.msra.mxu0 %v4369_v50  ;;  %9616 = vmatprep.mubr.msk.bf16.mxu0 %vm10483_vm2, %v12775_v39  ;;  %v4850_v45 = vpop.permute.xlu0 %4849 }
 0xbe4   : > { %9626 = vmatprep.subr.bf16.mxu0 %v12775_v39  ;;  %v4855_v18 = vsel %vm1163_vm4, %v4850_v45, 0 }
 0xbea   : > { %9617 = vmatmul.mubr.msk.bf16.vlgmr.msra.gmra.mxu0 %vm672_vm3, %v11500_v63 }
 0xbeb   : > { %v10329_v29 = vpop.eup %10328  ;;  %9627 = vmatpush3.bf16.xpose.msra.mxu0 %v4467_v8  ;;  %9628 = vmatprep.mubr.msk.bf16.mxu0 %vm10483_vm2, %v12775_v39 }
 0xbec   : > { %v3787_v36 = vmul.f32 %v10329_v29, %v11490_v60  ;;  %9638 = vmatprep.subr.bf16.mxu0 %v12775_v39  ;;  %v4315_v60 = vpop.permute.xlu1 %4314 }
 0xbed   : > { %v4320_v56 = vsel %vm672_vm3, %v4315_v60, 0 }
 0xbee   : > { %v3795_v24 = vpack.c.bf16 %v3787_v36, %v3787_v36 }
 0xbef   : > { %v10331_v1 = vpop.eup %10330 }
 0xbf0   : > { %9587 = vmatmul.mubr.msk.bf16.vlgmr.msra.gmra.mxu1 %vm672_vm3, %v3795_v24  ;;  %v3789_v42 = vmul.f32 %v10331_v1, %v11494_v52  ;;  %v4663_v52 = vsel %vm672_vm3, %v4658_v16, 0  ;;  %v4413_v44 = vpop.permute.xlu1 %4412 }
 0xbf1   : > { %9597 = vmatpush3.bf16.msra.mxu1 %v4093_v58  ;;  %9598 = vmatprep.mubr.msk.bf16.mxu1 %vm10483_vm2, %v12775_v39  ;;  %v4418_v31 = vsel %vm672_vm3, %v4413_v44, 0 }
 0xbf2   : > { %9629 = vmatmul.mubr.msk.bf16.vlgmr.msra.gmra.mxu0 %vm672_vm3, %v11506_v23  ;;  %9608 = vmatprep.subr.bf16.mxu1 %v12775_v39  ;;  %v3797_v43 = vpack.c.bf16 %v3789_v42, %v3789_v42 }
 0xbf3   : > { %9639 = vmatpush3.bf16.xpose.msra.mxu0 %v4565_v61  ;;  %9640 = vmatprep.mubr.msk.bf16.mxu0 %vm10483_vm2, %v12775_v39 }
 0xbf4   : > { %9650 = vmatprep.subr.bf16.mxu0 %v12775_v39  ;;  %v4511_v41 = vpop.permute.xlu1 %4510 }
 0xbf5   : > { %v4516_v54 = vsel %vm672_vm3, %v4511_v41, 0 }
 0xbf8   : > { %9599 = vmatmul.mubr.msk.bf16.vlgmr.msra.gmra.mxu1 %vm672_vm3, %v3797_v43  ;;  %v4609_v27 = vpop.permute.xlu1 %4608 }
 0xbf9   : > { %9609 = vmatpush3.bf16.xpose.msra.mxu1 %v4320_v56  ;;  %9610 = vmatprep.mubr.msk.bf16.mxu1 %vm10483_vm2, %v12775_v39  ;;  %v4614_v28 = vsel %vm672_vm3, %v4609_v27, 0 }
 0xbfa   : > { %9641 = vmatmul.mubr.msk.bf16.vlgmr.msra.gmra.mxu0 %vm672_vm3, %v11512_v30  ;;  %9620 = vmatprep.subr.bf16.mxu1 %v12775_v39 }
 0xbfb   : > { %9651 = vmatpush3.bf16.xpose.msra.mxu0 %v4663_v52  ;;  %9652 = vmatprep.mubr.msk.bf16.mxu0 %vm10483_vm2, %v12775_v39 }
 0xbfc   : > { %9662 = vmatprep.subr.bf16.mxu0 %v12775_v39  ;;  %v4802_v50 = vpop.permute.xlu1 %4801 }
 0xbfd   : > { %v4807_v33 = vsel %vm1163_vm4, %v4802_v50, 0 }
 0xc00   : > { %9611 = vmatmul.mubr.msk.bf16.vlgmr.msra.gmra.mxu1 %vm672_vm3, %v11522_v35 }
 0xc01   : > { %9621 = vmatpush3.bf16.xpose.msra.mxu1 %v4418_v31  ;;  %9622 = vmatprep.mubr.msk.bf16.mxu1 %vm10483_vm2, %v12775_v39 }
 0xc02   : > { %9653 = vmatmul.mubr.msk.bf16.vlgmr.msra.gmra.mxu0 %vm672_vm3, %v11518_v22  ;;  %9632 = vmatprep.subr.bf16.mxu1 %v12775_v39 }
 0xc03   : > { %9663 = vmatpush3.bf16.msra.mxu0 %v4855_v18  ;;  %9664 = vmatprep.mubr.msk.bf16.mxu0 %vm10483_vm2, %v12775_v39 }
 0xc04   : > { %9674 = vmatprep.subr.bf16.mxu0 %v12775_v39 }
 0xc08   : > { %9623 = vmatmul.mubr.msk.bf16.vlgmr.msra.gmra.mxu1 %vm672_vm3, %v11530_v37 }
 0xc09   : > { %9633 = vmatpush3.bf16.xpose.msra.mxu1 %v4516_v54  ;;  %9634 = vmatprep.mubr.msk.bf16.mxu1 %vm10483_vm2, %v12775_v39 }
 0xc0a   : > { %9644 = vmatprep.subr.bf16.mxu1 %v12775_v39 }
 0xc10   : > { %9635 = vmatmul.mubr.msk.bf16.vlgmr.msra.gmra.mxu1 %vm672_vm3, %v11538_v34 }
 0xc11   : > { %9645 = vmatpush3.bf16.xpose.msra.mxu1 %v4614_v28  ;;  %9646 = vmatprep.mubr.msk.bf16.mxu1 %vm10483_vm2, %v12775_v39 }
 0xc12   : > { %9656 = vmatprep.subr.bf16.mxu1 %v12775_v39 }
 0xc18   : > { %9647 = vmatmul.mubr.msk.bf16.vlgmr.msra.gmra.mxu1 %vm672_vm3, %v11544_v26 }
 0xc19   : > { %9657 = vmatpush3.bf16.msra.mxu1 %v4807_v33  ;;  %9658 = vmatprep.mubr.msk.bf16.mxu1 %vm10483_vm2, %v12775_v39 }
 0xc1a   : > { %9668 = vmatprep.subr.bf16.mxu1 %v12775_v39 }
 0xc38   : > { %v11652_v8 = vpop.f32.mrf.mxu0 }
 0xc3a   : > { %v9570_v29 = vpop.f32.mrf.mxu0 }
 0xc3c   : > { %v3892_v36 = vpop.f32.mrf.mxu0 }
 0xc3e   : > { %v9571_v24 = vpop.f32.mrf.mxu0 }
 0xc65   : > { %v11654_v1 = vpop.f32.mrf.mxu0 }
 0xc67   : > { %v9582_v32 = vpop.f32.mrf.mxu0 }
 0xc69   : > { %v3988_v58 = vpop.f32.mrf.mxu0 }
 0xc6b   : > { %v9583_v61 = vpop.f32.mrf.mxu0 }
 0xc6d   : > { %v11656_v42 = vpop.f32.mrf.mxu0 }
 0xc6e   : > { %12776 = vst [vmem:[#allocation18_spill] sm:$0xff] %v11656_v42 }
 0xc6f   : > { %v9594_v60 = vpop.f32.mrf.mxu0 }
 0xc71   : > { %v4084_v43 = vpop.f32.mrf.mxu0 }
 0xc73   : > { %v11658_v16 = vpop.f32.mrf.mxu1  ;;  %v9595_v56 = vpop.f32.mrf.mxu0 }
 0xc75   : > { %v9564_v44 = vpop.f32.mrf.mxu1 }
 0xc77   : > { %v3844_v45 = vpop.f32.mrf.mxu1 }
 0xc79   : > { %v9565_v31 = vpop.f32.mrf.mxu1 }
 0xc7b   : > { %v11662_v18 = vpop.f32.mrf.mxu1 }
 0xc7d   : > { %v9576_v54 = vpop.f32.mrf.mxu1 }
 0xc7f   : > { %v3940_v27 = vpop.f32.mrf.mxu1 }
 0xc81   : > { %v9577_v28 = vpop.f32.mrf.mxu1 }
 0xca2   : > { %v11666_v50 = vpop.f32.mrf.mxu0 }
 0xca3   : > { %12777 = vst [vmem:[#allocation19_spill] sm:$0xff] %v11666_v50 }
 0xca4   : > { %v9606_v33 = vpop.f32.mrf.mxu0 }
 0xca6   : > { %v4180_v29 = vpop.f32.mrf.mxu0 }
 0xca8   : > { %v9607_v36 = vpop.f32.mrf.mxu0 }
 0xcaa   : > { %v4405_v24 = vpop.f32.mrf.mxu0 }
 0xcab   : > { %v4708_v32 = vsel %vm672_vm3, %v4405_v24, -inf }
 0xcac   : > { %4709 = vmax.xlane.f32.xlu0 %v4708_v32  ;;  %v9618_v58 = vpop.f32.mrf.mxu0 }
 0xcae   : > { %v4408_v61 = vpop.f32.mrf.mxu0 }
 0xcb0   : > { %v11669_v60 = vpop.f32.mrf.mxu1  ;;  %v9619_v43 = vpop.f32.mrf.mxu0 }
 0xcb2   : > { %v9588_v56 = vpop.f32.mrf.mxu1  ;;  %v4503_v44 = vpop.f32.mrf.mxu0 }
 0xcb3   : > { %v4714_v45 = vsel %vm672_vm3, %v4503_v44, -inf }
 0xcb4   : > { %4715 = vmax.xlane.f32.xlu0 %v4714_v45  ;;  %v4036_v31 = vpop.f32.mrf.mxu1  ;;  %v9630_v54 = vpop.f32.mrf.mxu0 }
 0xcb6   : > { %v9589_v27 = vpop.f32.mrf.mxu1  ;;  %v4506_v28 = vpop.f32.mrf.mxu0 }
 0xcb8   : > { %v11672_v33 = vpop.f32.mrf.mxu1  ;;  %v9631_v29 = vpop.f32.mrf.mxu0 }
 0xcb9   : > { %12778 = vst [vmem:[#allocation20_spill] sm:$0xff] %v11672_v33 }
 0xcba   : > { %v9600_v32 = vpop.f32.mrf.mxu1  ;;  %v4601_v58 = vpop.f32.mrf.mxu0 }
 0xcbb   : > { %v4720_v61 = vsel %vm672_vm3, %v4601_v58, -inf }
 0xcbc   : > { %4721 = vmax.xlane.f32.xlu0 %v4720_v61  ;;  %v4132_v43 = vpop.f32.mrf.mxu1  ;;  %v9642_v56 = vpop.f32.mrf.mxu0 }
 0xcbe   : > { %v9601_v41 = vpop.f32.mrf.mxu1  ;;  %v4604_v52 = vpop.f32.mrf.mxu0 }
 0xcc0   : > { %v4356_v45 = vpop.f32.mrf.mxu1  ;;  %v9643_v31 = vpop.f32.mrf.mxu0 }
 0xcc1   : > { %v4705_v54 = vsel %vm672_vm3, %v4356_v45, -inf }
 0xcc2   : > { %v11678_v27 = vpop.f32.mrf.mxu0  ;;  %4706 = vmax.xlane.f32.xlu1 %v4705_v54  ;;  %v9612_v28 = vpop.f32.mrf.mxu1 }
 0xcc3   : > { %v4726_v29 = vsel %vm672_vm3, %v11678_v27, -inf }
 0xcc4   : > { %4727 = vmax.xlane.f32.xlu0 %v4726_v29  ;;  %v4359_v32 = vpop.f32.mrf.mxu1  ;;  %v9654_v36 = vpop.f32.mrf.mxu0 }
 0xcc6   : > { %v9613_v20 = vpop.f32.mrf.mxu1  ;;  %v4702_v61 = vpop.f32.mrf.mxu0 }
 0xcc8   : > { %v4454_v43 = vpop.f32.mrf.mxu1  ;;  %v9655_v56 = vpop.f32.mrf.mxu0 }
 0xcc9   : > { %v4711_v52 = vsel %vm672_vm3, %v4454_v43, -inf }
 0xcca   : > { %4712 = vmax.xlane.f32.xlu0 %v4711_v52  ;;  %v9624_v41 = vpop.f32.mrf.mxu1 }
 0xccc   : > { %v4457_v31 = vpop.f32.mrf.mxu1 }
 0xcce   : > { %v9625_v25 = vpop.f32.mrf.mxu1 }
 0xcd0   : > { %v4552_v14 = vpop.f32.mrf.mxu1 }
 0xcd1   : > { %v4717_v61 = vsel %vm672_vm3, %v4552_v14, -inf }
 0xcd2   : > { %v9636_v12 = vpop.f32.mrf.mxu1 }
 0xcd3   : > { %4993 = vrot.lane.b32.xlu1 %v11538_v34, %s10481_s11 }
 0xcd4   : > { %v4555_v54 = vpop.f32.mrf.mxu1 }
 0xcd6   : > { %v9637_v28 = vpop.f32.mrf.mxu1 }
 0xcd7   : > { %v11694_v28 = vpop.permute.xlu1 %4945 }
 0xcd8   : > { %v11685_v29 = vpop.f32.mrf.mxu1 }
 0xcd9   : > { %v4723_v25 = vsel %vm672_vm3, %v11685_v29, -inf }
 0xcda   : > { %v9648_v36 = vpop.f32.mrf.mxu1 }
 0xcdc   : > { %v4653_v20 = vpop.f32.mrf.mxu1 }
 0xcde   : > { %v9649_v32 = vpop.f32.mrf.mxu1 }
 0xce0   : > { %5041 = vrot.lane.b32.xlu0 %v11512_v30, %s10481_s11 }
 0xcf7   : > { %4718 = vmax.xlane.f32.xlu1 %v4717_v61  ;;  %v11698_v61 = vpop.permute.xlu1 %4897 }
 0xcfb   : > { %4724 = vmax.xlane.f32.xlu1 %v4723_v25 }
 0xd0c   : > { %5089 = vrot.lane.b32.xlu1 %v11544_v26, %s10481_s11 }
 0xd35   : > { %v4710_v12 = vpop.xlane.xlu0 %4709 }
 0xd36   : > { %v4730_v56 = vsub.f32 %v4405_v24, %v4710_v12 }
 0xd38   : > { %v4739_v52 = vmul.f32 1.442695, %v4730_v56 }
 0xd3a   : > { %10332 = vpow2.f32 %v4739_v52 }
 0xd3d   : > { %v4716_v41 = vpop.xlane.xlu0 %4715 }
 0xd3e   : > { %v4732_v31 = vsub.f32 %v4503_v44, %v4716_v41 }
 0xd40   : > { %v4743_v54 = vmul.f32 1.442695, %v4732_v31 }
 0xd42   : > { %10334 = vpow2.f32 %v4743_v54 }
 0xd45   : > { %v4722_v36 = vpop.xlane.xlu0 %4721 }
 0xd46   : > { %v4734_v20 = vsub.f32 %v4601_v58, %v4722_v36 }
 0xd47   : > { %v11696_v32 = vpop.eup %10332 }
 0xd48   : > { %v4747_v25 = vmul.f32 1.442695, %v4734_v20  ;;  %v4756_v11 = vsel %vm672_vm3, %v11696_v32, 0.0 }
 0xd49   : > { %4757 = vadd.xlane.f32.xlu0 %v4756_v11 }
 0xd4a   : > { %10336 = vpow2.f32 %v4747_v25 }
 0xd4b   : > { %v4707_v24 = vpop.xlane.xlu1 %4706 }
 0xd4c   : > { %v4729_v12 = vsub.f32 %v4356_v45, %v4707_v24 }
 0xd4d   : > { %v4728_v52 = vpop.xlane.xlu0 %4727 }
 0xd4e   : > { %v4737_v56 = vmul.f32 1.442695, %v4729_v12 }
 0xd4f   : > { %v11702_v44 = vpop.eup %10334 }
 0xd50   : > { %10338 = vpow2.f32 %v4737_v56  ;;  %v4762_v58 = vsel %vm672_vm3, %v11702_v44, 0.0  ;;  %v11721_v56 = vpop.permute.xlu1 %4993 }
 0xd51   : > { %4763 = vadd.xlane.f32.xlu0 %v4762_v58 }
 0xd53   : > { %v4713_v41 = vpop.xlane.xlu0 %4712 }
 0xd54   : > { %v4731_v31 = vsub.f32 %v4454_v43, %v4713_v41  ;;  %v4736_v43 = vsub.f32 %v11678_v27, %v4728_v52 }
 0xd56   : > { %v4741_v54 = vmul.f32 1.442695, %v4731_v31  ;;  %v4751_v12 = vmul.f32 1.442695, %v4736_v43 }
 0xd57   : > { %v11706_v36 = vpop.eup %10336 }
 0xd58   : > { %10340 = vpow2.f32 %v4741_v54  ;;  %v4768_v11 = vsel %vm672_vm3, %v11706_v36, 0.0 }
 0xd59   : > { %4769 = vadd.xlane.f32.xlu0 %v4768_v11  ;;  %10342 = vpow2.f32 %v4751_v12  ;;  %v5042_v12 = vpop.permute.xlu0 %5041 }
 0xd5d   : > { %v11710_v45 = vpop.eup %10338 }
 0xd5e   : > { %v4753_v20 = vsel %vm672_vm3, %v11710_v45, 0.0 }
 0xd5f   : > { %4754 = vadd.xlane.f32.xlu1 %v4753_v20 }
 0xd65   : > { %v11714_v25 = vpop.eup %10340 }
 0xd66   : > { %v4759_v24 = vsel %vm672_vm3, %v11714_v25, 0.0  ;;  %v11723_v54 = vpop.eup %10342 }
 0xd67   : > { %4760 = vadd.xlane.f32.xlu1 %v4759_v24  ;;  %v4774_v11 = vsel %vm672_vm3, %v11723_v54, 0.0 }
 0xd6f   : > { %5137 = vrot.lane.b32.xlu0 %v11518_v22, %s10481_s11 }
 0xd80   : > { %v4719_v58 = vpop.xlane.xlu1 %4718 }
 0xd81   : > { %v4733_v41 = vsub.f32 %v4552_v14, %v4719_v58 }
 0xd83   : > { %v4745_v31 = vmul.f32 1.442695, %v4733_v41 }
 0xd84   : > { %v4725_v14 = vpop.xlane.xlu1 %4724 }
 0xd85   : > { %10344 = vpow2.f32 %v4745_v31  ;;  %v4735_v27 = vsub.f32 %v11685_v29, %v4725_v14 }
 0xd87   : > { %v4749_v52 = vmul.f32 1.442695, %v4735_v27 }
 0xd88   : > { %v11763_v27 = vpop.permute.xlu1 %5089 }
 0xd89   : > { %10346 = vpow2.f32 %v4749_v52  ;;  %v4951_v52 = vsel %vm1163_vm4, %v11694_v28, 0 }
 0xd8e   : > { %4775 = vadd.xlane.f32.xlu0 %v4774_v11 }
 0xd92   : > { %v11727_v20 = vpop.eup %10344 }
 0xd93   : > { %v4765_v24 = vsel %vm672_vm3, %v11727_v20, 0.0 }
 0xd94   : > { %4766 = vadd.xlane.f32.xlu1 %v4765_v24 }
 0xd96   : > { %v11752_v29 = vpop.eup %10346 }
 0xd97   : > { %v4771_v43 = vsel %vm672_vm3, %v11752_v29, 0.0 }
 0xda4   : > { %5237 = vrot.lane.b32.xlu0 %v11500_v63, %s10484_s6 }
 0xda5   : > { %5187 = vrot.lane.b32.xlu1 %v11522_v35, %s10484_s6 }
 0xda8   : > { %5235 = vrot.lane.b32.xlu0 %v11500_v63, %s10485_s7 }
 0xdac   : > { %5185 = vrot.lane.b32.xlu0 %v11522_v35, %s10485_s7 }
 0xdb0   : > { %5335 = vrot.lane.b32.xlu0 %v11506_v23, %s10485_s7 }
 0xdb4   : > { %5285 = vrot.lane.b32.xlu0 %v11530_v37, %s10485_s7 }
 0xdb8   : > { %5435 = vrot.lane.b32.xlu0 %v11512_v30, %s10485_s7 }
 0xdbc   : > { %5385 = vrot.lane.b32.xlu0 %v11538_v34, %s10485_s7 }
 0xdc0   : > { %5535 = vrot.lane.b32.xlu0 %v11518_v22, %s10485_s7 }
 0xdc4   : > { %5729 = vrot.lane.b32.xlu0 %v11500_v63, %s10486_s8 }
 0xdc9   : > { %4772 = vadd.xlane.f32.xlu1 %v4771_v43 }
 0xdd2   : > { %v4758_v58 = vpop.xlane.xlu0 %4757 }
 0xdd3   : > { %10348 = vrcp.f32 %v4758_v58 }
 0xdda   : > { %v4764_v41 = vpop.xlane.xlu0 %4763  ;;  %5337 = vrot.lane.b32.xlu1 %v11506_v23, %s10484_s6 }
 0xddb   : > { %10350 = vrcp.f32 %v4764_v41  ;;  %v5047_v41 = vsel %vm1163_vm4, %v5042_v12, 0 }
 0xdde   : > { %5287 = vrot.lane.b32.xlu1 %v11530_v37, %s10484_s6 }
 0xde0   : > { %v10349_v31 = vpop.eup %10348 }
 0xde1   : > { %v4786_v11 = vmul.f32 %v10349_v31, %v11696_v32 }
 0xde2   : > { %v4770_v24 = vpop.xlane.xlu0 %4769  ;;  %5437 = vrot.lane.b32.xlu1 %v11512_v30, %s10484_s6 }
 0xde3   : > { %v4794_v14 = vpack.c.bf16 %v4786_v11, %v4786_v11  ;;  %10352 = vrcp.f32 %v4770_v24 }
 0xde5   : > { %9665 = vmatmul.mubr.msk.bf16.vlgmr.msra.gmra.mxu0 %vm672_vm3, %v4794_v14 }
 0xde6   : > { %9675 = vmatpush3.bf16.msra.mxu0 %v4951_v52  ;;  %5387 = vrot.lane.b32.xlu1 %v11538_v34, %s10484_s6  ;;  %v5138_v24 = vpop.permute.xlu0 %5137 }
 0xde7   : > { %9676 = vmatprep.mubr.msk.bf16.mxu0 %vm10483_vm2, %v12775_v39  ;;  %9686 = vmatprep.subr.bf16.mxu0 %v12775_v39  ;;  %v5143_v14 = vsel %vm1163_vm4, %v5138_v24, 0 }
 0xde8   : > { %v10351_v32 = vpop.eup %10350  ;;  %v4755_v43 = vpop.xlane.xlu1 %4754 }
 0xde9   : > { %v4788_v58 = vmul.f32 %v10351_v32, %v11702_v44  ;;  %10354 = vrcp.f32 %v4755_v43  ;;  %v4903_v43 = vsel %vm1163_vm4, %v11698_v61, 0 }
 0xdea   : > { %5537 = vrot.lane.b32.xlu1 %v11518_v22, %s10484_s6 }
 0xdeb   : > { %v4796_v28 = vpack.c.bf16 %v4788_v58, %v4788_v58 }
 0xded   : > { %9677 = vmatmul.mubr.msk.bf16.vlgmr.msra.gmra.mxu0 %vm672_vm3, %v4796_v28 }
 0xdee   : > { %9687 = vmatpush3.bf16.msra.mxu0 %v5047_v41  ;;  %5487 = vrot.lane.b32.xlu1 %v11544_v26, %s10484_s6  ;;  %v4999_v41 = vsel %vm1163_vm4, %v11721_v56, 0 }
 0xdef   : > { %9688 = vmatprep.mubr.msk.bf16.mxu0 %vm10483_vm2, %v12775_v39  ;;  %9698 = vmatprep.subr.bf16.mxu0 %v12775_v39 }
 0xdf0   : > { %v10353_v31 = vpop.eup %10352  ;;  %v4761_v44 = vpop.xlane.xlu1 %4760 }
 0xdf1   : > { %v4790_v11 = vmul.f32 %v10353_v31, %v11706_v36  ;;  %10356 = vrcp.f32 %v4761_v44 }
 0xdf2   : > { %5485 = vrot.lane.b32.xlu1 %v11544_v26, %s10485_s7 }
 0xdf3   : > { %v4798_v12 = vpack.c.bf16 %v4790_v11, %v4790_v11 }
 0xdf5   : > { %9689 = vmatmul.mubr.msk.bf16.vlgmr.msra.gmra.mxu0 %vm672_vm3, %v4798_v12 }
 0xdf6   : > { %v10355_v52 = vpop.eup %10354  ;;  %9699 = vmatpush3.bf16.msra.mxu0 %v5143_v14  ;;  %5681 = vrot.lane.b32.xlu1 %v11522_v35, %s10486_s8 }
 0xdf7   : > { %v4785_v32 = vmul.f32 %v10355_v52, %v11710_v45  ;;  %9700 = vmatprep.mubr.msk.bf16.mxu0 %vm10483_vm2, %v12775_v39  ;;  %9710 = vmatprep.subr.bf16.mxu0 %v12775_v39 }
 0xdf9   : > { %v4793_v36 = vpack.c.bf16 %v4785_v32, %v4785_v32  ;;  %v5095_v32 = vsel %vm1163_vm4, %v11763_v27, 0 }
 0xdfa   : > { %5825 = vrot.lane.b32.xlu1 %v11506_v23, %s10486_s8 }
 0xdfb   : > { %9659 = vmatmul.mubr.msk.bf16.vlgmr.msra.gmra.mxu1 %vm672_vm3, %v4793_v36 }
 0xdfc   : > { %9669 = vmatpush3.bf16.msra.mxu1 %v4903_v43  ;;  %9670 = vmatprep.mubr.msk.bf16.mxu1 %vm10483_vm2, %v12775_v39 }
 0xdfd   : > { %9680 = vmatprep.subr.bf16.mxu1 %v12775_v39 }
 0xdfe   : > { %v10357_v45 = vpop.eup %10356  ;;  %5777 = vrot.lane.b32.xlu1 %v11530_v37, %s10486_s8 }
 0xdff   : > { %v4787_v58 = vmul.f32 %v10357_v45, %v11714_v25 }
 0xe01   : > { %v4795_v28 = vpack.c.bf16 %v4787_v58, %v4787_v58 }
 0xe03   : > { %9671 = vmatmul.mubr.msk.bf16.vlgmr.msra.gmra.mxu1 %vm672_vm3, %v4795_v28 }
 0xe04   : > { %9681 = vmatpush3.bf16.msra.mxu1 %v4999_v41  ;;  %9682 = vmatprep.mubr.msk.bf16.mxu1 %vm10483_vm2, %v12775_v39 }
 0xe05   : > { %9692 = vmatprep.subr.bf16.mxu1 %v12775_v39 }
 0xe17   : > { %v4776_v61 = vpop.xlane.xlu0 %4775 }
 0xe18   : > { %10358 = vrcp.f32 %v4776_v61 }
 0xe1b   : > { %v5238_v25 = vpop.permute.xlu0 %5237 }
 0xe1c   : > { %v5243_v12 = vsel %vm672_vm3, %v5238_v25, 0 }
 0xe1d   : > { %v4767_v31 = vpop.xlane.xlu1 %4766 }
 0xe1e   : > { %10360 = vrcp.f32 %v4767_v31 }
 0xe21   : > { %v5188_v36 = vpop.permute.xlu1 %5187 }
 0xe25   : > { %v10359_v44 = vpop.eup %10358 }
 0xe26   : > { %v4792_v11 = vmul.f32 %v10359_v44, %v11723_v54  ;;  %v5236_v54 = vpop.permute.xlu0 %5235 }
 0xe28   : > { %v4800_v24 = vpack.c.bf16 %v4792_v11, %v4792_v11 }
 0xe2a   : > { %9701 = vmatmul.mubr.msk.bf16.vlgmr.msra.gmra.mxu0 %vm672_vm3, %v4800_v24 }
 0xe2b   : > { %v10361_v56 = vpop.eup %10360  ;;  %9711 = vmatpush3.bf16.xpose.msra.mxu0 %v5243_v12  ;;  %9712 = vmatprep.mubr.msk.bf16.mxu0 %vm10483_vm2, %v12775_v39 }
 0xe2c   : > { %v4789_v14 = vmul.f32 %v10361_v56, %v11727_v20  ;;  %9722 = vmatprep.subr.bf16.mxu0 %v12775_v39  ;;  %v5186_v20 = vpop.permute.xlu0 %5185 }
 0xe2e   : > { %v4797_v52 = vpack.c.bf16 %v4789_v14, %v4789_v14  ;;  %v5193_v14 = vsel %vm672_vm3, %v5188_v36, 0 }
 0xe30   : > { %9683 = vmatmul.mubr.msk.bf16.vlgmr.msra.gmra.mxu1 %vm672_vm3, %v4797_v52  ;;  %v5336_v43 = vpop.permute.xlu0 %5335 }
 0xe31   : > { %9693 = vmatpush3.bf16.msra.mxu1 %v5095_v32  ;;  %9694 = vmatprep.mubr.msk.bf16.mxu1 %vm10483_vm2, %v12775_v39 }
 0xe32   : > { %9713 = vmatmul.mubr.msk.bf16.vlgmr.msra.gmra.mxu0 %vm672_vm3, %v5236_v54  ;;  %9704 = vmatprep.subr.bf16.mxu1 %v12775_v39 }
 0xe33   : > { %9724 = vmatprep.mubr.msk.bf16.mxu0 %vm10483_vm2, %v12775_v39 }
 0xe34   : > { %v5286_v27 = vpop.permute.xlu0 %5285 }
 0xe38   : > { %v5436_v41 = vpop.permute.xlu0 %5435 }
 0xe3c   : > { %v5386_v25 = vpop.permute.xlu0 %5385 }
 0xe40   : > { %v5536_v52 = vpop.permute.xlu0 %5535 }
 0xe52   : > { %v4773_v45 = vpop.xlane.xlu1 %4772 }
 0xe53   : > { %10362 = vrcp.f32 %v4773_v45 }
 0xe56   : > { %v5338_v58 = vpop.permute.xlu1 %5337 }
 0xe57   : > { %v5343_v28 = vsel %vm672_vm3, %v5338_v58, 0 }
 0xe58   : > { %9723 = vmatpush3.bf16.xpose.msra.mxu0 %v5343_v28 }
 0xe59   : > { %9734 = vmatprep.subr.bf16.mxu0 %v12775_v39 }
 0xe5a   : > { %v5288_v61 = vpop.permute.xlu1 %5287 }
 0xe5b   : > { %v5293_v36 = vsel %vm672_vm3, %v5288_v61, 0 }
 0xe5e   : > { %v5438_v31 = vpop.permute.xlu1 %5437 }
 0xe5f   : > { %v5443_v44 = vsel %vm672_vm3, %v5438_v31, 0  ;;  %9725 = vmatmul.mubr.msk.bf16.vlgmr.msra.gmra.mxu0 %vm672_vm3, %v5336_v43 }
 0xe60   : > { %v10363_v11 = vpop.eup %10362  ;;  %9735 = vmatpush3.bf16.xpose.msra.mxu0 %v5443_v44  ;;  %9736 = vmatprep.mubr.msk.bf16.mxu0 %vm10483_vm2, %v12775_v39 }
 0xe61   : > { %v4791_v24 = vmul.f32 %v10363_v11, %v11752_v29  ;;  %9746 = vmatprep.subr.bf16.mxu0 %v12775_v39  ;;  %v5730_v29 = vpop.permute.xlu0 %5729 }
 0xe62   : > { %v5388_v12 = vpop.permute.xlu1 %5387  ;;  %v5735_v43 = vsel %vm1163_vm4, %v5730_v29, 0 }
 0xe63   : > { %v4799_v56 = vpack.c.bf16 %v4791_v24, %v4791_v24  ;;  %v5393_v45 = vsel %vm672_vm3, %v5388_v12, 0 }
 0xe65   : > { %9695 = vmatmul.mubr.msk.bf16.vlgmr.msra.gmra.mxu1 %vm672_vm3, %v4799_v56 }
 0xe66   : > { %9705 = vmatpush3.bf16.xpose.msra.mxu1 %v5193_v14  ;;  %v5538_v32 = vpop.permute.xlu1 %5537  ;;  %9706 = vmatprep.mubr.msk.bf16.mxu1 %vm10483_vm2, %v12775_v39 }
 0xe67   : > { %v5543_v54 = vsel %vm672_vm3, %v5538_v32, 0  ;;  %9737 = vmatmul.mubr.msk.bf16.vlgmr.msra.gmra.mxu0 %vm672_vm3, %v5436_v41  ;;  %9716 = vmatprep.subr.bf16.mxu1 %v12775_v39 }
 0xe68   : > { %9747 = vmatpush3.bf16.xpose.msra.mxu0 %v5543_v54  ;;  %9748 = vmatprep.mubr.msk.bf16.mxu0 %vm10483_vm2, %v12775_v39 }
 0xe69   : > { %9758 = vmatprep.subr.bf16.mxu0 %v12775_v39 }
 0xe6d   : > { %9707 = vmatmul.mubr.msk.bf16.vlgmr.msra.gmra.mxu1 %vm672_vm3, %v5186_v20  ;;  %v5488_v20 = vpop.permute.xlu1 %5487 }
 0xe6e   : > { %9717 = vmatpush3.bf16.xpose.msra.mxu1 %v5293_v36  ;;  %9718 = vmatprep.mubr.msk.bf16.mxu1 %vm10483_vm2, %v12775_v39  ;;  %v5493_v28 = vsel %vm672_vm3, %v5488_v20, 0 }
 0xe6f   : > { %9749 = vmatmul.mubr.msk.bf16.vlgmr.msra.gmra.mxu0 %vm672_vm3, %v5536_v52  ;;  %9728 = vmatprep.subr.bf16.mxu1 %v12775_v39 }
 0xe70   : > { %9759 = vmatpush3.bf16.msra.mxu0 %v5735_v43  ;;  %9760 = vmatprep.mubr.msk.bf16.mxu0 %vm10483_vm2, %v12775_v39 }
 0xe71   : > { %9770 = vmatprep.subr.bf16.mxu0 %v12775_v39  ;;  %v5486_v58 = vpop.permute.xlu1 %5485 }
 0xe75   : > { %9719 = vmatmul.mubr.msk.bf16.vlgmr.msra.gmra.mxu1 %vm672_vm3, %v5286_v27  ;;  %v5682_v41 = vpop.permute.xlu1 %5681 }
 0xe76   : > { %9729 = vmatpush3.bf16.xpose.msra.mxu1 %v5393_v45  ;;  %9730 = vmatprep.mubr.msk.bf16.mxu1 %vm10483_vm2, %v12775_v39  ;;  %v5687_v27 = vsel %vm1163_vm4, %v5682_v41, 0 }
 0xe77   : > { %9740 = vmatprep.subr.bf16.mxu1 %v12775_v39 }
 0xe7d   : > { %9731 = vmatmul.mubr.msk.bf16.vlgmr.msra.gmra.mxu1 %vm672_vm3, %v5386_v25 }
 0xe7e   : > { %9741 = vmatpush3.bf16.xpose.msra.mxu1 %v5493_v28  ;;  %9742 = vmatprep.mubr.msk.bf16.mxu1 %vm10483_vm2, %v12775_v39 }
 0xe7f   : > { %9752 = vmatprep.subr.bf16.mxu1 %v12775_v39 }
 0xe85   : > { %9743 = vmatmul.mubr.msk.bf16.vlgmr.msra.gmra.mxu1 %vm672_vm3, %v5486_v58 }
 0xe86   : > { %9753 = vmatpush3.bf16.msra.mxu1 %v5687_v27  ;;  %9754 = vmatprep.mubr.msk.bf16.mxu1 %vm10483_vm2, %v12775_v39 }
 0xe87   : > { %9764 = vmatprep.subr.bf16.mxu1 %v12775_v39 }
 0xea5   : > { %v11870_v61 = vpop.f32.mrf.mxu0 }
 0xea6   : > { %12779 = vst [vmem:[#allocation21_spill] sm:$0xff] %v11870_v61 }
 0xea7   : > { %v9666_v31 = vpop.f32.mrf.mxu0 }
 0xea9   : > { %v4894_v44 = vpop.f32.mrf.mxu0 }
 0xeab   : > { %v9667_v11 = vpop.f32.mrf.mxu0 }
 0xead   : > { %v11872_v25 = vpop.f32.mrf.mxu0 }
 0xeae   : > { %12780 = vst [vmem:[#allocation22_spill] sm:$0xff] %v11872_v25 }
 0xeaf   : > { %v9678_v24 = vpop.f32.mrf.mxu0 }
 0xeb1   : > { %v4990_v12 = vpop.f32.mrf.mxu0 }
 0xeb3   : > { %v9679_v56 = vpop.f32.mrf.mxu0 }
 0xeb5   : > { %v11874_v14 = vpop.f32.mrf.mxu0 }
 0xeb6   : > { %12781 = vst [vmem:[#allocation23_spill] sm:$0xff] %v11874_v14 }
 0xeb7   : > { %v9690_v52 = vpop.f32.mrf.mxu0 }
 0xeb9   : > { %v5086_v32 = vpop.f32.mrf.mxu0 }
 0xebb   : > { %v11876_v54 = vpop.f32.mrf.mxu1  ;;  %v9691_v29 = vpop.f32.mrf.mxu0 }
 0xebc   : > { %12782 = vst [vmem:[#allocation24_spill] sm:$0xff] %v11876_v54 }
 0xebd   : > { %v9660_v36 = vpop.f32.mrf.mxu1 }
 0xebf   : > { %v4846_v43 = vpop.f32.mrf.mxu1 }
 0xec1   : > { %v9661_v45 = vpop.f32.mrf.mxu1 }
 0xec3   : > { %v11878_v20 = vpop.f32.mrf.mxu1 }
 0xec4   : > { %12783 = vst [vmem:[#allocation25_spill] sm:$0xff] %v11878_v20 }
 0xec5   : > { %v9672_v58 = vpop.f32.mrf.mxu1 }
 0xec7   : > { %v4942_v28 = vpop.f32.mrf.mxu1 }
 0xec9   : > { %v9673_v41 = vpop.f32.mrf.mxu1 }
 0xeea   : > { %v11880_v27 = vpop.f32.mrf.mxu0 }
 0xeeb   : > { %12784 = vst [vmem:[#allocation26_spill] sm:$0xff] %v11880_v27 }
 0xeec   : > { %v9702_v31 = vpop.f32.mrf.mxu0 }
 0xeee   : > { %v5182_v44 = vpop.f32.mrf.mxu0 }
 0xef0   : > { %v11882_v11 = vpop.f32.mrf.mxu1  ;;  %v9703_v24 = vpop.f32.mrf.mxu0 }
 0xef1   : > { %12785 = vst [vmem:[#allocation27_spill] sm:$0xff] %v11882_v11 }
 0xef2   : > { %v9684_v12 = vpop.f32.mrf.mxu1  ;;  %v5279_v56 = vpop.f32.mrf.mxu0 }
 0xef3   : > { %v5588_v52 = vsel %vm672_vm3, %v5279_v56, -inf }
 0xef4   : > { %5589 = vmax.xlane.f32.xlu0 %v5588_v52  ;;  %v5038_v32 = vpop.f32.mrf.mxu1  ;;  %v9714_v29 = vpop.f32.mrf.mxu0 }
 0xef6   : > { %v9685_v36 = vpop.f32.mrf.mxu1  ;;  %v5282_v43 = vpop.f32.mrf.mxu0 }
 0xef8   : > { %v9715_v45 = vpop.f32.mrf.mxu0 }
 0xf1f   : > { %v5379_v58 = vpop.f32.mrf.mxu0 }
 0xf20   : > { %v5594_v28 = vsel %vm672_vm3, %v5379_v58, -inf }
 0xf21   : > { %5595 = vmax.xlane.f32.xlu0 %v5594_v28  ;;  %v9726_v41 = vpop.f32.mrf.mxu0 }
 0xf23   : > { %v5382_v31 = vpop.f32.mrf.mxu0 }
 0xf25   : > { %v11886_v44 = vpop.f32.mrf.mxu1  ;;  %v9727_v9 = vpop.f32.mrf.mxu0 }
 0xf26   : > { %12786 = vst [vmem:[#allocation28_spill] sm:$0xff] %v11886_v44 }
 0xf27   : > { %v9696_v24 = vpop.f32.mrf.mxu1  ;;  %v5479_v12 = vpop.f32.mrf.mxu0 }
 0xf28   : > { %v5600_v10 = vsel %vm672_vm3, %v5479_v12, -inf }
 0xf29   : > { %v5134_v7 = vpop.f32.mrf.mxu1  ;;  %5601 = vmax.xlane.f32.xlu0 %v5600_v10  ;;  %v9738_v52 = vpop.f32.mrf.mxu0 }
 0xf2b   : > { %v9697_v32 = vpop.f32.mrf.mxu1  ;;  %v5482_v29 = vpop.f32.mrf.mxu0 }
 0xf2d   : > { %v5229_v36 = vpop.f32.mrf.mxu1  ;;  %v9739_v43 = vpop.f32.mrf.mxu0 }
 0xf2e   : > { %v5585_v45 = vsel %vm672_vm3, %v5229_v36, -inf }
 0xf2f   : > { %5586 = vmax.xlane.f32.xlu1 %v5585_v45  ;;  %v9708_v28 = vpop.f32.mrf.mxu1  ;;  %v11890_v41 = vpop.f32.mrf.mxu0 }
 0xf30   : > { %v5606_v9 = vsel %vm672_vm3, %v11890_v41, -inf }
 0xf31   : > { %v5232_v31 = vpop.f32.mrf.mxu1  ;;  %5607 = vmax.xlane.f32.xlu0 %v5606_v9  ;;  %v9750_v24 = vpop.f32.mrf.mxu0 }
 0xf33   : > { %v9709_v6 = vpop.f32.mrf.mxu1  ;;  %v5582_v7 = vpop.f32.mrf.mxu0 }
 0xf35   : > { %v5329_v10 = vpop.f32.mrf.mxu1  ;;  %v9751_v52 = vpop.f32.mrf.mxu0 }
 0xf36   : > { %v5591_v32 = vsel %vm672_vm3, %v5329_v10, -inf }
 0xf37   : > { %v9720_v29 = vpop.f32.mrf.mxu1  ;;  %5592 = vmax.xlane.f32.xlu0 %v5591_v32 }
 0xf39   : > { %v5332_v43 = vpop.f32.mrf.mxu1 }
 0xf3b   : > { %v9721_v57 = vpop.f32.mrf.mxu1 }
 0xf3d   : > { %v5429_v45 = vpop.f32.mrf.mxu1 }
 0xf3e   : > { %v5597_v7 = vsel %vm672_vm3, %v5429_v45, -inf }
 0xf3f   : > { %v9732_v28 = vpop.f32.mrf.mxu1 }
 0xf40   : > { %5873 = vrot.lane.b32.xlu1 %v11538_v34, %s10486_s8 }
 0xf41   : > { %v5432_v55 = vpop.f32.mrf.mxu1 }
 0xf43   : > { %v9733_v38 = vpop.f32.mrf.mxu1 }
 0xf45   : > { %v11897_v31 = vpop.f32.mrf.mxu1 }
 0xf46   : > { %v5603_v57 = vsel %vm672_vm3, %v11897_v31, -inf }
 0xf47   : > { %v9744_v9 = vpop.f32.mrf.mxu1 }
 0xf49   : > { %v5532_v6 = vpop.f32.mrf.mxu1 }
 0xf4a   : > { %v5826_v6 = vpop.permute.xlu1 %5825 }
 0xf4b   : > { %v9745_v24 = vpop.f32.mrf.mxu1 }
 0xf4d   : > { %5921 = vrot.lane.b32.xlu0 %v11512_v30, %s10486_s8 }
 0xf64   : > { %5598 = vmax.xlane.f32.xlu1 %v5597_v7 }
 0xf68   : > { %5604 = vmax.xlane.f32.xlu1 %v5603_v57  ;;  %v11910_v57 = vpop.permute.xlu1 %5777 }
 0xf79   : > { %5969 = vrot.lane.b32.xlu1 %v11544_v26, %s10486_s8 }
 0xf7d   : > { %v5590_v55 = vpop.xlane.xlu0 %5589 }
 0xf7e   : > { %v5610_v38 = vsub.f32 %v5279_v56, %v5590_v55 }
 0xf80   : > { %v5619_v52 = vmul.f32 1.442695, %v5610_v38 }
 0xf82   : > { %10364 = vpow2.f32 %v5619_v52 }
 0xf8f   : > { %v11906_v32 = vpop.eup %10364 }
 0xf90   : > { %v5636_v29 = vsel %vm672_vm3, %v11906_v32, 0.0 }
 0xf91   : > { %5637 = vadd.xlane.f32.xlu0 %v5636_v29 }
 0xfaa   : > { %v5596_v43 = vpop.xlane.xlu0 %5595 }
 0xfab   : > { %v5612_v28 = vsub.f32 %v5379_v58, %v5596_v43 }
 0xfad   : > { %v5623_v9 = vmul.f32 1.442695, %v5612_v28 }
 0xfaf   : > { %10366 = vpow2.f32 %v5623_v9 }
 0xfb2   : > { %v5602_v24 = vpop.xlane.xlu0 %5601 }
 0xfb3   : > { %v5614_v7 = vsub.f32 %v5479_v12, %v5602_v24 }
 0xfb5   : > { %v5627_v21 = vmul.f32 1.442695, %v5614_v7 }
 0xfb7   : > { %10368 = vpow2.f32 %v5627_v21 }
 0xfb8   : > { %v5587_v56 = vpop.xlane.xlu1 %5586 }
 0xfb9   : > { %v5609_v55 = vsub.f32 %v5229_v36, %v5587_v56 }
 0xfba   : > { %v5608_v17 = vpop.xlane.xlu0 %5607 }
 0xfbb   : > { %v5617_v38 = vmul.f32 1.442695, %v5609_v55 }
 0xfbc   : > { %v11912_v52 = vpop.eup %10366  ;;  %v11931_v55 = vpop.permute.xlu1 %5873 }
 0xfbd   : > { %10370 = vpow2.f32 %v5617_v38  ;;  %v5642_v29 = vsel %vm672_vm3, %v11912_v52, 0.0 }
 0xfbe   : > { %5643 = vadd.xlane.f32.xlu0 %v5642_v29 }
 0xfc0   : > { %v5593_v58 = vpop.xlane.xlu0 %5592 }
 0xfc1   : > { %v5611_v43 = vsub.f32 %v5329_v10, %v5593_v58  ;;  %v5616_v10 = vsub.f32 %v11890_v41, %v5608_v17 }
 0xfc3   : > { %v5621_v28 = vmul.f32 1.442695, %v5611_v43  ;;  %v5631_v56 = vmul.f32 1.442695, %v5616_v10 }
 0xfc4   : > { %v11916_v9 = vpop.eup %10368  ;;  %v5922_v17 = vpop.permute.xlu0 %5921 }
 0xfc5   : > { %10372 = vpow2.f32 %v5621_v28  ;;  %v5648_v21 = vsel %vm672_vm3, %v11916_v9, 0.0 }
 0xfc6   : > { %5649 = vadd.xlane.f32.xlu0 %v5648_v21  ;;  %10374 = vpow2.f32 %v5631_v56 }
 0xfca   : > { %v11920_v12 = vpop.eup %10370 }
 0xfcb   : > { %v5633_v36 = vsel %vm672_vm3, %v11920_v12, 0.0 }
 0xfcc   : > { %5634 = vadd.xlane.f32.xlu1 %v5633_v36 }
 0xfd2   : > { %v11924_v24 = vpop.eup %10372 }
 0xfd3   : > { %v5639_v7 = vsel %vm672_vm3, %v11924_v24, 0.0  ;;  %v11933_v43 = vpop.eup %10374 }
 0xfd4   : > { %5640 = vadd.xlane.f32.xlu1 %v5639_v7  ;;  %v5654_v28 = vsel %vm672_vm3, %v11933_v43, 0.0 }
 0xfdc   : > { %6017 = vrot.lane.b32.xlu0 %v11518_v22, %s10486_s8 }
 0xfed   : > { %v5599_v38 = vpop.xlane.xlu1 %5598 }
 0xfee   : > { %v5613_v29 = vsub.f32 %v5429_v45, %v5599_v38 }
 0xff0   : > { %v5625_v58 = vmul.f32 1.442695, %v5613_v29 }
 0xff1   : > { %v5605_v41 = vpop.xlane.xlu1 %5604 }
 0xff2   : > { %10376 = vpow2.f32 %v5625_v58  ;;  %v5615_v7 = vsub.f32 %v11897_v31, %v5605_v41  ;;  %v5831_v31 = vsel %vm1163_vm4, %v5826_v6, 0 }
 0xff4   : > { %v5629_v10 = vmul.f32 1.442695, %v5615_v7 }
 0xffb   : > { %5655 = vadd.xlane.f32.xlu0 %v5654_v28 }
 0xfff   : > { %v11937_v21 = vpop.eup %10376 }
0x1000   : > { %v5645_v36 = vsel %vm672_vm3, %v11937_v21, 0.0 }
0x1001   : > { %5646 = vadd.xlane.f32.xlu1 %v5645_v36  ;;  %v5970_v36 = vpop.permute.xlu1 %5969 }
0x1011   : > { %6117 = vrot.lane.b32.xlu0 %v11500_v63, %s10487_s12 }
0x1012   : > { %6067 = vrot.lane.b32.xlu1 %v11522_v35, %s10487_s12 }
0x1015   : > { %6115 = vrot.lane.b32.xlu0 %v11500_v63, %s10488_s13 }
0x1019   : > { %6065 = vrot.lane.b32.xlu0 %v11522_v35, %s10488_s13 }
0x101a   : > { %v5638_v45 = vpop.xlane.xlu0 %5637 }
0x101b   : > { %10378 = vrcp.f32 %v5638_v45 }
0x101c   : > { %10380 = vpow2.f32 %v5629_v10 }
0x101d   : > { %6215 = vrot.lane.b32.xlu0 %v11506_v23, %s10488_s13 }
0x1021   : > { %6165 = vrot.lane.b32.xlu0 %v11530_v37, %s10488_s13 }
0x1025   : > { %6315 = vrot.lane.b32.xlu0 %v11512_v30, %s10488_s13 }
0x1028   : > { %v10379_v56 = vpop.eup %10378 }
0x1029   : > { %v5666_v38 = vmul.f32 %v10379_v56, %v11906_v32  ;;  %6265 = vrot.lane.b32.xlu0 %v11538_v34, %s10488_s13  ;;  %v11968_v32 = vpop.eup %10380  ;;  %v5927_v56 = vsel %vm1163_vm4, %v5922_v17, 0 }
0x102a   : > { %v5651_v58 = vsel %vm672_vm3, %v11968_v32, 0.0 }
0x102b   : > { %v5674_v29 = vpack.c.bf16 %v5666_v38, %v5666_v38 }
0x102d   : > { %6415 = vrot.lane.b32.xlu0 %v11518_v22, %s10488_s13  ;;  %9761 = vmatmul.mubr.msk.bf16.vlgmr.msra.gmra.mxu0 %vm672_vm3, %v5674_v29 }
0x102e   : > { %9771 = vmatpush3.bf16.msra.mxu0 %v5831_v31  ;;  %9772 = vmatprep.mubr.msk.bf16.mxu0 %vm10483_vm2, %v12775_v39 }
0x102f   : > { %9782 = vmatprep.subr.bf16.mxu0 %v12775_v39 }
0x1031   : > { %6609 = vrot.lane.b32.xlu0 %v11500_v63, %s10489_s14 }
0x1036   : > { %5652 = vadd.xlane.f32.xlu1 %v5651_v58 }
0x1047   : > { %v5644_v6 = vpop.xlane.xlu0 %5643  ;;  %6217 = vrot.lane.b32.xlu1 %v11506_v23, %s10487_s12 }
0x1048   : > { %10382 = vrcp.f32 %v5644_v6 }
0x104b   : > { %6167 = vrot.lane.b32.xlu1 %v11530_v37, %s10487_s12 }
0x104f   : > { %v5650_v28 = vpop.xlane.xlu0 %5649  ;;  %6317 = vrot.lane.b32.xlu1 %v11512_v30, %s10487_s12 }
0x1050   : > { %10384 = vrcp.f32 %v5650_v28 }
0x1053   : > { %6267 = vrot.lane.b32.xlu1 %v11538_v34, %s10487_s12  ;;  %v6018_v31 = vpop.permute.xlu0 %6017 }
0x1054   : > { %v6023_v58 = vsel %vm1163_vm4, %v6018_v31, 0 }
0x1055   : > { %v10383_v41 = vpop.eup %10382  ;;  %v5635_v45 = vpop.xlane.xlu1 %5634 }
0x1056   : > { %v5668_v7 = vmul.f32 %v10383_v41, %v11912_v52  ;;  %10386 = vrcp.f32 %v5635_v45  ;;  %v5783_v41 = vsel %vm1163_vm4, %v11910_v57, 0 }
0x1057   : > { %6417 = vrot.lane.b32.xlu1 %v11518_v22, %s10487_s12 }
0x1058   : > { %v5676_v10 = vpack.c.bf16 %v5668_v7, %v5668_v7 }
0x105a   : > { %9773 = vmatmul.mubr.msk.bf16.vlgmr.msra.gmra.mxu0 %vm672_vm3, %v5676_v10  ;;  %v5879_v10 = vsel %vm1163_vm4, %v11931_v55, 0 }
0x105b   : > { %9783 = vmatpush3.bf16.msra.mxu0 %v5927_v56  ;;  %6367 = vrot.lane.b32.xlu1 %v11544_v26, %s10487_s12 }
0x105c   : > { %9784 = vmatprep.mubr.msk.bf16.mxu0 %vm10483_vm2, %v12775_v39  ;;  %9794 = vmatprep.subr.bf16.mxu0 %v12775_v39 }
0x105d   : > { %v10385_v38 = vpop.eup %10384  ;;  %v5641_v52 = vpop.xlane.xlu1 %5640 }
0x105e   : > { %v5670_v29 = vmul.f32 %v10385_v38, %v11916_v9  ;;  %10388 = vrcp.f32 %v5641_v52 }
0x105f   : > { %6365 = vrot.lane.b32.xlu1 %v11544_v26, %s10488_s13 }
0x1060   : > { %v5678_v17 = vpack.c.bf16 %v5670_v29, %v5670_v29 }
0x1062   : > { %9785 = vmatmul.mubr.msk.bf16.vlgmr.msra.gmra.mxu0 %vm672_vm3, %v5678_v17 }
0x1063   : > { %v10387_v6 = vpop.eup %10386  ;;  %9795 = vmatpush3.bf16.msra.mxu0 %v6023_v58  ;;  %6561 = vrot.lane.b32.xlu1 %v11522_v35, %s10489_s14 }
0x1064   : > { %v5665_v28 = vmul.f32 %v10387_v6, %v11920_v12  ;;  %9796 = vmatprep.mubr.msk.bf16.mxu0 %vm10483_vm2, %v12775_v39  ;;  %9806 = vmatprep.subr.bf16.mxu0 %v12775_v39  ;;  %v5975_v6 = vsel %vm1163_vm4, %v5970_v36, 0 }
0x1066   : > { %v5673_v9 = vpack.c.bf16 %v5665_v28, %v5665_v28 }
0x1067   : > { %6705 = vrot.lane.b32.xlu1 %v11506_v23, %s10489_s14 }
0x1068   : > { %9755 = vmatmul.mubr.msk.bf16.vlgmr.msra.gmra.mxu1 %vm672_vm3, %v5673_v9 }
0x1069   : > { %9765 = vmatpush3.bf16.msra.mxu1 %v5783_v41  ;;  %9766 = vmatprep.mubr.msk.bf16.mxu1 %vm10483_vm2, %v12775_v39 }
0x106a   : > { %9776 = vmatprep.subr.bf16.mxu1 %v12775_v39 }
0x106b   : > { %v10389_v12 = vpop.eup %10388  ;;  %6657 = vrot.lane.b32.xlu1 %v11530_v37, %s10489_s14 }
0x106c   : > { %v5667_v45 = vmul.f32 %v10389_v12, %v11924_v24 }
0x106e   : > { %v5675_v7 = vpack.c.bf16 %v5667_v45, %v5667_v45 }
0x1070   : > { %9767 = vmatmul.mubr.msk.bf16.vlgmr.msra.gmra.mxu1 %vm672_vm3, %v5675_v7 }
0x1071   : > { %9777 = vmatpush3.bf16.msra.mxu1 %v5879_v10  ;;  %9778 = vmatprep.mubr.msk.bf16.mxu1 %vm10483_vm2, %v12775_v39 }
0x1072   : > { %9788 = vmatprep.subr.bf16.mxu1 %v12775_v39 }
0x1084   : > { %v5656_v57 = vpop.xlane.xlu0 %5655 }
0x1085   : > { %10390 = vrcp.f32 %v5656_v57 }
0x1088   : > { %v6118_v24 = vpop.permute.xlu0 %6117 }
0x1089   : > { %v6123_v31 = vsel %vm672_vm3, %v6118_v24, 0 }
0x108a   : > { %v5647_v56 = vpop.xlane.xlu1 %5646 }
0x108b   : > { %10392 = vrcp.f32 %v5647_v56 }
0x108e   : > { %v6068_v28 = vpop.permute.xlu1 %6067 }
0x1092   : > { %v10391_v38 = vpop.eup %10390 }
0x1093   : > { %v5672_v52 = vmul.f32 %v10391_v38, %v11933_v43  ;;  %v6116_v43 = vpop.permute.xlu0 %6115 }
0x1095   : > { %v5680_v29 = vpack.c.bf16 %v5672_v52, %v5672_v52 }
0x1097   : > { %9797 = vmatmul.mubr.msk.bf16.vlgmr.msra.gmra.mxu0 %vm672_vm3, %v5680_v29 }
0x1098   : > { %v10393_v55 = vpop.eup %10392  ;;  %9807 = vmatpush3.bf16.xpose.msra.mxu0 %v6123_v31  ;;  %9808 = vmatprep.mubr.msk.bf16.mxu0 %vm10483_vm2, %v12775_v39 }
0x1099   : > { %v5669_v17 = vmul.f32 %v10393_v55, %v11937_v21  ;;  %9818 = vmatprep.subr.bf16.mxu0 %v12775_v39  ;;  %v6066_v21 = vpop.permute.xlu0 %6065  ;;  %v6073_v55 = vsel %vm672_vm3, %v6068_v28, 0 }
0x109b   : > { %v5677_v58 = vpack.c.bf16 %v5669_v17, %v5669_v17 }
0x109d   : > { %9779 = vmatmul.mubr.msk.bf16.vlgmr.msra.gmra.mxu1 %vm672_vm3, %v5677_v58  ;;  %v6216_v9 = vpop.permute.xlu0 %6215 }
0x109e   : > { %9789 = vmatpush3.bf16.msra.mxu1 %v5975_v6  ;;  %9790 = vmatprep.mubr.msk.bf16.mxu1 %vm10483_vm2, %v12775_v39 }
0x109f   : > { %9809 = vmatmul.mubr.msk.bf16.vlgmr.msra.gmra.mxu0 %vm672_vm3, %v6116_v43  ;;  %9800 = vmatprep.subr.bf16.mxu1 %v12775_v39 }
0x10a0   : > { %9820 = vmatprep.mubr.msk.bf16.mxu0 %vm10483_vm2, %v12775_v39 }
0x10a1   : > { %v6166_v36 = vpop.permute.xlu0 %6165 }
0x10a5   : > { %v6316_v7 = vpop.permute.xlu0 %6315 }
0x10a9   : > { %v6266_v52 = vpop.permute.xlu0 %6265 }
0x10ad   : > { %v6416_v17 = vpop.permute.xlu0 %6415 }
0x10bf   : > { %v5653_v41 = vpop.xlane.xlu1 %5652 }
0x10c0   : > { %10394 = vrcp.f32 %v5653_v41 }
0x10c3   : > { %v6218_v12 = vpop.permute.xlu1 %6217 }
0x10c4   : > { %v6223_v45 = vsel %vm672_vm3, %v6218_v12, 0 }
0x10c5   : > { %9819 = vmatpush3.bf16.xpose.msra.mxu0 %v6223_v45 }
0x10c6   : > { %9830 = vmatprep.subr.bf16.mxu0 %v12775_v39 }
0x10c7   : > { %v6168_v10 = vpop.permute.xlu1 %6167 }
0x10c8   : > { %v6173_v43 = vsel %vm672_vm3, %v6168_v10, 0 }
0x10cb   : > { %v6318_v57 = vpop.permute.xlu1 %6317 }
0x10cc   : > { %v6323_v56 = vsel %vm672_vm3, %v6318_v57, 0  ;;  %9821 = vmatmul.mubr.msk.bf16.vlgmr.msra.gmra.mxu0 %vm672_vm3, %v6216_v9 }
0x10cd   : > { %v10395_v38 = vpop.eup %10394  ;;  %9831 = vmatpush3.bf16.xpose.msra.mxu0 %v6323_v56  ;;  %9832 = vmatprep.mubr.msk.bf16.mxu0 %vm10483_vm2, %v12775_v39 }
0x10ce   : > { %v5671_v24 = vmul.f32 %v10395_v38, %v11968_v32  ;;  %9842 = vmatprep.subr.bf16.mxu0 %v12775_v39  ;;  %v6610_v32 = vpop.permute.xlu0 %6609 }
0x10cf   : > { %v6268_v29 = vpop.permute.xlu1 %6267  ;;  %v6615_v28 = vsel %vm1163_vm4, %v6610_v32, 0 }
0x10d0   : > { %v5679_v31 = vpack.c.bf16 %v5671_v24, %v5671_v24  ;;  %v6273_v9 = vsel %vm672_vm3, %v6268_v29, 0 }
0x10d2   : > { %9791 = vmatmul.mubr.msk.bf16.vlgmr.msra.gmra.mxu1 %vm672_vm3, %v5679_v31 }
0x10d3   : > { %9801 = vmatpush3.bf16.xpose.msra.mxu1 %v6073_v55  ;;  %v6418_v58 = vpop.permute.xlu1 %6417  ;;  %9802 = vmatprep.mubr.msk.bf16.mxu1 %vm10483_vm2, %v12775_v39 }
0x10d4   : > { %v6423_v6 = vsel %vm672_vm3, %v6418_v58, 0  ;;  %9833 = vmatmul.mubr.msk.bf16.vlgmr.msra.gmra.mxu0 %vm672_vm3, %v6316_v7  ;;  %9812 = vmatprep.subr.bf16.mxu1 %v12775_v39 }
0x10d5   : > { %9843 = vmatpush3.bf16.xpose.msra.mxu0 %v6423_v6  ;;  %9844 = vmatprep.mubr.msk.bf16.mxu0 %vm10483_vm2, %v12775_v39 }
0x10d6   : > { %9854 = vmatprep.subr.bf16.mxu0 %v12775_v39 }
0x10da   : > { %9803 = vmatmul.mubr.msk.bf16.vlgmr.msra.gmra.mxu1 %vm672_vm3, %v6066_v21  ;;  %v6368_v21 = vpop.permute.xlu1 %6367 }
0x10db   : > { %9813 = vmatpush3.bf16.xpose.msra.mxu1 %v6173_v43  ;;  %9814 = vmatprep.mubr.msk.bf16.mxu1 %vm10483_vm2, %v12775_v39  ;;  %v6373_v12 = vsel %vm672_vm3, %v6368_v21, 0 }
0x10dc   : > { %9845 = vmatmul.mubr.msk.bf16.vlgmr.msra.gmra.mxu0 %vm672_vm3, %v6416_v17  ;;  %9824 = vmatprep.subr.bf16.mxu1 %v12775_v39 }
0x10dd   : > { %9855 = vmatpush3.bf16.msra.mxu0 %v6615_v28  ;;  %9856 = vmatprep.mubr.msk.bf16.mxu0 %vm10483_vm2, %v12775_v39 }
0x10de   : > { %9866 = vmatprep.subr.bf16.mxu0 %v12775_v39  ;;  %v6366_v41 = vpop.permute.xlu1 %6365 }
0x10e2   : > { %9815 = vmatmul.mubr.msk.bf16.vlgmr.msra.gmra.mxu1 %vm672_vm3, %v6166_v36  ;;  %v6562_v36 = vpop.permute.xlu1 %6561 }
0x10e3   : > { %9825 = vmatpush3.bf16.xpose.msra.mxu1 %v6273_v9  ;;  %9826 = vmatprep.mubr.msk.bf16.mxu1 %vm10483_vm2, %v12775_v39  ;;  %v6567_v57 = vsel %vm1163_vm4, %v6562_v36, 0 }
0x10e4   : > { %9836 = vmatprep.subr.bf16.mxu1 %v12775_v39 }
0x10ea   : > { %9827 = vmatmul.mubr.msk.bf16.vlgmr.msra.gmra.mxu1 %vm672_vm3, %v6266_v52 }
0x10eb   : > { %9837 = vmatpush3.bf16.xpose.msra.mxu1 %v6373_v12  ;;  %9838 = vmatprep.mubr.msk.bf16.mxu1 %vm10483_vm2, %v12775_v39 }
0x10ec   : > { %9848 = vmatprep.subr.bf16.mxu1 %v12775_v39 }
0x10ed   : > { %v12071_v45 = vpop.f32.mrf.mxu0 }
0x10ef   : > { %v9762_v7 = vpop.f32.mrf.mxu0 }
0x10f1   : > { %v5774_v10 = vpop.f32.mrf.mxu0 }
0x10f2   : > { %9839 = vmatmul.mubr.msk.bf16.vlgmr.msra.gmra.mxu1 %vm672_vm3, %v6366_v41 }
0x10f3   : > { %9849 = vmatpush3.bf16.msra.mxu1 %v6567_v57  ;;  %v9763_v56 = vpop.f32.mrf.mxu0  ;;  %9850 = vmatprep.mubr.msk.bf16.mxu1 %vm10483_vm2, %v12775_v39 }
0x10f4   : > { %9860 = vmatprep.subr.bf16.mxu1 %v12775_v39 }
0x111a   : > { %v12078_v38 = vpop.f32.mrf.mxu0 }
0x111c   : > { %v9774_v52 = vpop.f32.mrf.mxu0 }
0x111e   : > { %v5870_v24 = vpop.f32.mrf.mxu0 }
0x1120   : > { %v9775_v29 = vpop.f32.mrf.mxu0 }
0x1122   : > { %v12080_v31 = vpop.f32.mrf.mxu0 }
0x1124   : > { %v9786_v55 = vpop.f32.mrf.mxu0 }
0x1126   : > { %v5966_v17 = vpop.f32.mrf.mxu0 }
0x1128   : > { %v12082_v58 = vpop.f32.mrf.mxu1  ;;  %v9787_v6 = vpop.f32.mrf.mxu0 }
0x112a   : > { %v9756_v32 = vpop.f32.mrf.mxu1 }
0x112c   : > { %v5726_v43 = vpop.f32.mrf.mxu1 }
0x112e   : > { %v9757_v28 = vpop.f32.mrf.mxu1 }
0x1130   : > { %v12084_v9 = vpop.f32.mrf.mxu1 }
0x1132   : > { %v9768_v21 = vpop.f32.mrf.mxu1 }
0x1134   : > { %v5822_v41 = vpop.f32.mrf.mxu1 }
0x1136   : > { %v9769_v12 = vpop.f32.mrf.mxu1 }
0x1157   : > { %v12086_v36 = vpop.f32.mrf.mxu0 }
0x1159   : > { %v9798_v7 = vpop.f32.mrf.mxu0 }
0x115b   : > { %v6062_v10 = vpop.f32.mrf.mxu0 }
0x115d   : > { %v12088_v57 = vpop.f32.mrf.mxu1  ;;  %v9799_v56 = vpop.f32.mrf.mxu0 }
0x115f   : > { %v9780_v52 = vpop.f32.mrf.mxu1  ;;  %v6159_v24 = vpop.f32.mrf.mxu0 }
0x1160   : > { %v6468_v29 = vsel %vm672_vm3, %v6159_v24, -inf }
0x1161   : > { %6469 = vmax.xlane.f32.xlu0 %v6468_v29  ;;  %v5918_v55 = vpop.f32.mrf.mxu1  ;;  %v9810_v17 = vpop.f32.mrf.mxu0 }
0x1163   : > { %v9781_v6 = vpop.f32.mrf.mxu1  ;;  %v6162_v32 = vpop.f32.mrf.mxu0 }
0x1165   : > { %v9811_v43 = vpop.f32.mrf.mxu0 }
0x118c   : > { %v6259_v28 = vpop.f32.mrf.mxu0 }
0x118d   : > { %v6474_v21 = vsel %vm672_vm3, %v6259_v28, -inf }
0x118e   : > { %6475 = vmax.xlane.f32.xlu0 %v6474_v21  ;;  %v9822_v41 = vpop.f32.mrf.mxu0 }
0x1190   : > { %v6262_v12 = vpop.f32.mrf.mxu0 }
0x1192   : > { %v12092_v7 = vpop.f32.mrf.mxu1  ;;  %v9823_v10 = vpop.f32.mrf.mxu0 }
0x1194   : > { %v9792_v56 = vpop.f32.mrf.mxu1  ;;  %v6359_v52 = vpop.f32.mrf.mxu0 }
0x1195   : > { %v6480_v3 = vsel %vm672_vm3, %v6359_v52, -inf }
0x1196   : > { %v6014_v33 = vpop.f32.mrf.mxu1  ;;  %6481 = vmax.xlane.f32.xlu0 %v6480_v3  ;;  %v9834_v29 = vpop.f32.mrf.mxu0 }
0x1198   : > { %v9793_v55 = vpop.f32.mrf.mxu1  ;;  %v6362_v17 = vpop.f32.mrf.mxu0 }
0x119a   : > { %v6109_v6 = vpop.f32.mrf.mxu1  ;;  %v9835_v32 = vpop.f32.mrf.mxu0 }
0x119b   : > { %v6465_v43 = vsel %vm672_vm3, %v6109_v6, -inf }
0x119c   : > { %6466 = vmax.xlane.f32.xlu1 %v6465_v43  ;;  %v9804_v21 = vpop.f32.mrf.mxu1  ;;  %v12096_v41 = vpop.f32.mrf.mxu0 }
0x119d   : > { %v6486_v12 = vsel %vm672_vm3, %v12096_v41, -inf }
0x119e   : > { %v6112_v10 = vpop.f32.mrf.mxu1  ;;  %6487 = vmax.xlane.f32.xlu0 %v6486_v12  ;;  %v9846_v56 = vpop.f32.mrf.mxu0 }
0x11a0   : > { %v9805_v50 = vpop.f32.mrf.mxu1  ;;  %v6462_v33 = vpop.f32.mrf.mxu0 }
0x11a2   : > { %v6209_v3 = vpop.f32.mrf.mxu1  ;;  %v9847_v29 = vpop.f32.mrf.mxu0 }
0x11a3   : > { %v6471_v55 = vsel %vm672_vm3, %v6209_v3, -inf }
0x11a4   : > { %v9816_v17 = vpop.f32.mrf.mxu1  ;;  %6472 = vmax.xlane.f32.xlu0 %v6471_v55 }
0x11a6   : > { %v6212_v32 = vpop.f32.mrf.mxu1 }
0x11a8   : > { %v9817_v54 = vpop.f32.mrf.mxu1 }
0x11aa   : > { %v6309_v43 = vpop.f32.mrf.mxu1 }
0x11ab   : > { %v6477_v33 = vsel %vm672_vm3, %v6309_v43, -inf }
0x11ac   : > { %v9828_v21 = vpop.f32.mrf.mxu1 }
0x11ad   : > { %6753 = vrot.lane.b32.xlu1 %v11538_v34, %s10489_s14 }
0x11ae   : > { %v6312_v61 = vpop.f32.mrf.mxu1 }
0x11b0   : > { %v9829_v20 = vpop.f32.mrf.mxu1 }
0x11b2   : > { %v12103_v10 = vpop.f32.mrf.mxu1 }
0x11b3   : > { %v6483_v54 = vsel %vm672_vm3, %v12103_v10, -inf }
0x11b4   : > { %v9840_v12 = vpop.f32.mrf.mxu1 }
0x11b6   : > { %v6412_v50 = vpop.f32.mrf.mxu1 }
0x11b7   : > { %v6706_v50 = vpop.permute.xlu1 %6705 }
0x11b8   : > { %v9841_v56 = vpop.f32.mrf.mxu1 }
0x11ba   : > { %6801 = vrot.lane.b32.xlu0 %v11512_v30, %s10489_s14 }
0x11d1   : > { %6478 = vmax.xlane.f32.xlu1 %v6477_v33 }
0x11d5   : > { %6484 = vmax.xlane.f32.xlu1 %v6483_v54  ;;  %v12116_v54 = vpop.permute.xlu1 %6657 }
0x11e6   : > { %6849 = vrot.lane.b32.xlu1 %v11544_v26, %s10489_s14 }
0x11ea   : > { %v6470_v61 = vpop.xlane.xlu0 %6469 }
0x11eb   : > { %v6490_v20 = vsub.f32 %v6159_v24, %v6470_v61 }
0x11ed   : > { %v6499_v29 = vmul.f32 1.442695, %v6490_v20 }
0x11ef   : > { %10396 = vpow2.f32 %v6499_v29 }
0x11fc   : > { %v12112_v55 = vpop.eup %10396 }
0x11fd   : > { %v6516_v17 = vsel %vm672_vm3, %v12112_v55, 0.0 }
0x11fe   : > { %6517 = vadd.xlane.f32.xlu0 %v6516_v17 }
0x1217   : > { %v6476_v32 = vpop.xlane.xlu0 %6475 }
0x1218   : > { %v6492_v21 = vsub.f32 %v6259_v28, %v6476_v32 }
0x121a   : > { %v6503_v12 = vmul.f32 1.442695, %v6492_v21 }
0x121c   : > { %10398 = vpow2.f32 %v6503_v12 }
0x121f   : > { %v6482_v56 = vpop.xlane.xlu0 %6481 }
0x1220   : > { %v6494_v33 = vsub.f32 %v6359_v52, %v6482_v56 }
0x1222   : > { %v6507_v25 = vmul.f32 1.442695, %v6494_v33 }
0x1224   : > { %10400 = vpow2.f32 %v6507_v25 }
0x1225   : > { %v6467_v24 = vpop.xlane.xlu1 %6466 }
0x1226   : > { %v6489_v61 = vsub.f32 %v6109_v6, %v6467_v24 }
0x1227   : > { %v6488_v11 = vpop.xlane.xlu0 %6487 }
0x1228   : > { %v6497_v20 = vmul.f32 1.442695, %v6489_v61 }
0x1229   : > { %v12118_v29 = vpop.eup %10398  ;;  %v12137_v61 = vpop.permute.xlu1 %6753 }
0x122a   : > { %10402 = vpow2.f32 %v6497_v20  ;;  %v6522_v17 = vsel %vm672_vm3, %v12118_v29, 0.0 }
0x122b   : > { %6523 = vadd.xlane.f32.xlu0 %v6522_v17 }
0x122d   : > { %v6473_v28 = vpop.xlane.xlu0 %6472 }
0x122e   : > { %v6491_v32 = vsub.f32 %v6209_v3, %v6473_v28  ;;  %v6496_v3 = vsub.f32 %v12096_v41, %v6488_v11 }
0x1230   : > { %v6501_v21 = vmul.f32 1.442695, %v6491_v32  ;;  %v6511_v24 = vmul.f32 1.442695, %v6496_v3 }
0x1231   : > { %v12122_v12 = vpop.eup %10400  ;;  %v6802_v11 = vpop.permute.xlu0 %6801 }
0x1232   : > { %10404 = vpow2.f32 %v6501_v21  ;;  %v6528_v25 = vsel %vm672_vm3, %v12122_v12, 0.0 }
0x1233   : > { %6529 = vadd.xlane.f32.xlu0 %v6528_v25  ;;  %10406 = vpow2.f32 %v6511_v24 }
0x1237   : > { %v12126_v52 = vpop.eup %10402 }
0x1238   : > { %v6513_v6 = vsel %vm672_vm3, %v12126_v52, 0.0 }
0x1239   : > { %6514 = vadd.xlane.f32.xlu1 %v6513_v6 }
0x123f   : > { %v12130_v56 = vpop.eup %10404 }
0x1240   : > { %v6519_v33 = vsel %vm672_vm3, %v12130_v56, 0.0  ;;  %v12139_v32 = vpop.eup %10406 }
0x1241   : > { %6520 = vadd.xlane.f32.xlu1 %v6519_v33  ;;  %v6534_v21 = vsel %vm672_vm3, %v12139_v32, 0.0 }
0x1249   : > { %6897 = vrot.lane.b32.xlu0 %v11518_v22, %s10489_s14 }
0x125a   : > { %v6479_v20 = vpop.xlane.xlu1 %6478 }
0x125b   : > { %v6493_v17 = vsub.f32 %v6309_v43, %v6479_v20 }
0x125d   : > { %v6505_v28 = vmul.f32 1.442695, %v6493_v17 }
0x125e   : > { %v6485_v41 = vpop.xlane.xlu1 %6484 }
0x125f   : > { %10408 = vpow2.f32 %v6505_v28  ;;  %v6495_v33 = vsub.f32 %v12103_v10, %v6485_v41  ;;  %v6711_v10 = vsel %vm1163_vm4, %v6706_v50, 0 }
0x1261   : > { %v6509_v3 = vmul.f32 1.442695, %v6495_v33 }
0x1268   : > { %6535 = vadd.xlane.f32.xlu0 %v6534_v21 }
0x126c   : > { %v12143_v25 = vpop.eup %10408 }
0x126d   : > { %v6525_v6 = vsel %vm672_vm3, %v12143_v25, 0.0 }
0x126e   : > { %6526 = vadd.xlane.f32.xlu1 %v6525_v6  ;;  %v6850_v6 = vpop.permute.xlu1 %6849 }
0x127e   : > { %6997 = vrot.lane.b32.xlu0 %v11500_v63, %s10490_s15 }
0x127f   : > { %6947 = vrot.lane.b32.xlu1 %v11522_v35, %s10490_s15 }
0x1282   : > { %6995 = vrot.lane.b32.xlu0 %v11500_v63, %s10491_s16 }
0x1286   : > { %6945 = vrot.lane.b32.xlu0 %v11522_v35, %s10491_s16 }
0x1287   : > { %v6518_v43 = vpop.xlane.xlu0 %6517 }
0x1288   : > { %10410 = vrcp.f32 %v6518_v43 }
0x1289   : > { %10412 = vpow2.f32 %v6509_v3 }
0x128a   : > { %7095 = vrot.lane.b32.xlu0 %v11506_v23, %s10491_s16 }
0x128e   : > { %7045 = vrot.lane.b32.xlu0 %v11530_v37, %s10491_s16 }
0x1292   : > { %7195 = vrot.lane.b32.xlu0 %v11512_v30, %s10491_s16 }
0x1295   : > { %v10411_v24 = vpop.eup %10410 }
0x1296   : > { %v6546_v20 = vmul.f32 %v10411_v24, %v12112_v55  ;;  %7145 = vrot.lane.b32.xlu0 %v11538_v34, %s10491_s16  ;;  %v12172_v28 = vpop.eup %10412  ;;  %v6807_v24 = vsel %vm1163_vm4, %v6802_v11, 0 }
0x1297   : > { %v6531_v55 = vsel %vm672_vm3, %v12172_v28, 0.0 }
0x1298   : > { %v6554_v17 = vpack.c.bf16 %v6546_v20, %v6546_v20 }
0x129a   : > { %7295 = vrot.lane.b32.xlu0 %v11518_v22, %s10491_s16  ;;  %9857 = vmatmul.mubr.msk.bf16.vlgmr.msra.gmra.mxu0 %vm672_vm3, %v6554_v17 }
0x129b   : > { %9867 = vmatpush3.bf16.msra.mxu0 %v6711_v10  ;;  %9868 = vmatprep.mubr.msk.bf16.mxu0 %vm10483_vm2, %v12775_v39 }
0x129c   : > { %9878 = vmatprep.subr.bf16.mxu0 %v12775_v39 }
0x12a3   : > { %6532 = vadd.xlane.f32.xlu1 %v6531_v55 }
0x12b4   : > { %v6524_v21 = vpop.xlane.xlu0 %6523  ;;  %7097 = vrot.lane.b32.xlu1 %v11506_v23, %s10490_s15 }
0x12b5   : > { %10414 = vrcp.f32 %v6524_v21 }
0x12b8   : > { %7047 = vrot.lane.b32.xlu1 %v11530_v37, %s10490_s15 }
0x12bc   : > { %v6530_v50 = vpop.xlane.xlu0 %6529  ;;  %7197 = vrot.lane.b32.xlu1 %v11512_v30, %s10490_s15 }
0x12bd   : > { %10416 = vrcp.f32 %v6530_v50 }
0x12c0   : > { %7147 = vrot.lane.b32.xlu1 %v11538_v34, %s10490_s15  ;;  %v6898_v10 = vpop.permute.xlu0 %6897 }
0x12c1   : > { %v6903_v55 = vsel %vm1163_vm4, %v6898_v10, 0 }
0x12c2   : > { %v10415_v41 = vpop.eup %10414  ;;  %v6515_v43 = vpop.xlane.xlu1 %6514 }
0x12c3   : > { %v6548_v33 = vmul.f32 %v10415_v41, %v12118_v29  ;;  %10418 = vrcp.f32 %v6515_v43  ;;  %v6663_v41 = vsel %vm1163_vm4, %v12116_v54, 0 }
0x12c4   : > { %7297 = vrot.lane.b32.xlu1 %v11518_v22, %s10490_s15 }
0x12c5   : > { %v6556_v3 = vpack.c.bf16 %v6548_v33, %v6548_v33 }
0x12c7   : > { %9869 = vmatmul.mubr.msk.bf16.vlgmr.msra.gmra.mxu0 %vm672_vm3, %v6556_v3 }
0x12c8   : > { %9879 = vmatpush3.bf16.msra.mxu0 %v6807_v24  ;;  %7247 = vrot.lane.b32.xlu1 %v11544_v26, %s10490_s15 }
0x12c9   : > { %9880 = vmatprep.mubr.msk.bf16.mxu0 %vm10483_vm2, %v12775_v39  ;;  %9890 = vmatprep.subr.bf16.mxu0 %v12775_v39 }
0x12ca   : > { %v10417_v20 = vpop.eup %10416  ;;  %v6521_v29 = vpop.xlane.xlu1 %6520 }
0x12cb   : > { %v6550_v17 = vmul.f32 %v10417_v20, %v12122_v12  ;;  %10420 = vrcp.f32 %v6521_v29 }
0x12cc   : > { %7245 = vrot.lane.b32.xlu1 %v11544_v26, %s10491_s16 }
0x12cd   : > { %v6558_v11 = vpack.c.bf16 %v6550_v17, %v6550_v17 }
0x12cf   : > { %9881 = vmatmul.mubr.msk.bf16.vlgmr.msra.gmra.mxu0 %vm672_vm3, %v6558_v11 }
0x12d0   : > { %v10419_v21 = vpop.eup %10418  ;;  %9891 = vmatpush3.bf16.msra.mxu0 %v6903_v55  ;;  %9892 = vmatprep.mubr.msk.bf16.mxu0 %vm10483_vm2, %v12775_v39 }
0x12d1   : > { %v6545_v50 = vmul.f32 %v10419_v21, %v12126_v52  ;;  %9902 = vmatprep.subr.bf16.mxu0 %v12775_v39  ;;  %v6759_v52 = vsel %vm1163_vm4, %v12137_v61, 0  ;;  %v6855_v21 = vsel %vm1163_vm4, %v6850_v6, 0 }
0x12d3   : > { %v6553_v12 = vpack.c.bf16 %v6545_v50, %v6545_v50 }
0x12d5   : > { %9851 = vmatmul.mubr.msk.bf16.vlgmr.msra.gmra.mxu1 %vm672_vm3, %v6553_v12 }
0x12d6   : > { %9861 = vmatpush3.bf16.msra.mxu1 %v6663_v41  ;;  %9862 = vmatprep.mubr.msk.bf16.mxu1 %vm10483_vm2, %v12775_v39 }
0x12d7   : > { %9872 = vmatprep.subr.bf16.mxu1 %v12775_v39 }
0x12d8   : > { %v10421_v43 = vpop.eup %10420 }
0x12d9   : > { %v6547_v33 = vmul.f32 %v10421_v43, %v12130_v56 }
0x12db   : > { %v6555_v3 = vpack.c.bf16 %v6547_v33, %v6547_v33 }
0x12dd   : > { %9863 = vmatmul.mubr.msk.bf16.vlgmr.msra.gmra.mxu1 %vm672_vm3, %v6555_v3 }
0x12de   : > { %9873 = vmatpush3.bf16.msra.mxu1 %v6759_v52  ;;  %9874 = vmatprep.mubr.msk.bf16.mxu1 %vm10483_vm2, %v12775_v39 }
0x12df   : > { %9884 = vmatprep.subr.bf16.mxu1 %v12775_v39 }
0x12f1   : > { %v6536_v54 = vpop.xlane.xlu0 %6535 }
0x12f2   : > { %10422 = vrcp.f32 %v6536_v54 }
0x12f5   : > { %v6998_v56 = vpop.permute.xlu0 %6997 }
0x12f6   : > { %v7003_v10 = vsel %vm672_vm3, %v6998_v56, 0 }
0x12f7   : > { %v6527_v24 = vpop.xlane.xlu1 %6526 }
0x12f8   : > { %10424 = vrcp.f32 %v6527_v24 }
0x12ff   : > { %v10423_v20 = vpop.eup %10422 }
0x1300   : > { %v6552_v29 = vmul.f32 %v10423_v20, %v12139_v32  ;;  %v6996_v32 = vpop.permute.xlu0 %6995 }
0x1302   : > { %v6560_v17 = vpack.c.bf16 %v6552_v29, %v6552_v29 }
0x1304   : > { %9893 = vmatmul.mubr.msk.bf16.vlgmr.msra.gmra.mxu0 %vm672_vm3, %v6560_v17  ;;  %v6946_v50 = vpop.permute.xlu0 %6945 }
0x1305   : > { %v10425_v61 = vpop.eup %10424  ;;  %9903 = vmatpush3.bf16.xpose.msra.mxu0 %v7003_v10  ;;  %9904 = vmatprep.mubr.msk.bf16.mxu0 %vm10483_vm2, %v12775_v39 }
0x1306   : > { %v6549_v11 = vmul.f32 %v10425_v61, %v12143_v25  ;;  %9914 = vmatprep.subr.bf16.mxu0 %v12775_v39  ;;  %v6948_v25 = vpop.permute.xlu1 %6947 }
0x1307   : > { %v6953_v10 = vsel %vm672_vm3, %v6948_v25, 0 }
0x1308   : > { %v6557_v55 = vpack.c.bf16 %v6549_v11, %v6549_v11  ;;  %v7096_v41 = vpop.permute.xlu0 %7095 }
0x130a   : > { %9875 = vmatmul.mubr.msk.bf16.vlgmr.msra.gmra.mxu1 %vm672_vm3, %v6557_v55 }
0x130b   : > { %9885 = vmatpush3.bf16.msra.mxu1 %v6855_v21  ;;  %9886 = vmatprep.mubr.msk.bf16.mxu1 %vm10483_vm2, %v12775_v39 }
0x130c   : > { %9905 = vmatmul.mubr.msk.bf16.vlgmr.msra.gmra.mxu0 %vm672_vm3, %v6996_v32  ;;  %9896 = vmatprep.subr.bf16.mxu1 %v12775_v39  ;;  %v7046_v3 = vpop.permute.xlu0 %7045 }
0x130d   : > { %9916 = vmatprep.mubr.msk.bf16.mxu0 %vm10483_vm2, %v12775_v39 }
0x1310   : > { %v7196_v29 = vpop.permute.xlu0 %7195 }
0x132c   : > { %v6533_v12 = vpop.xlane.xlu1 %6532 }
0x132d   : > { %10426 = vrcp.f32 %v6533_v12 }
0x1330   : > { %v7098_v6 = vpop.permute.xlu1 %7097 }
0x1331   : > { %v7103_v43 = vsel %vm672_vm3, %v7098_v6, 0 }
0x1332   : > { %9915 = vmatpush3.bf16.xpose.msra.mxu0 %v7103_v43 }
0x1333   : > { %9926 = vmatprep.subr.bf16.mxu0 %v12775_v39 }
0x1334   : > { %v7048_v33 = vpop.permute.xlu1 %7047 }
0x1335   : > { %v7053_v55 = vsel %vm672_vm3, %v7048_v33, 0 }
0x1338   : > { %v7198_v52 = vpop.permute.xlu1 %7197 }
0x1339   : > { %v7203_v54 = vsel %vm672_vm3, %v7198_v52, 0  ;;  %9917 = vmatmul.mubr.msk.bf16.vlgmr.msra.gmra.mxu0 %vm672_vm3, %v7096_v41 }
0x133a   : > { %v10427_v24 = vpop.eup %10426  ;;  %9927 = vmatpush3.bf16.xpose.msra.mxu0 %v7203_v54  ;;  %9928 = vmatprep.mubr.msk.bf16.mxu0 %vm10483_vm2, %v12775_v39 }
0x133b   : > { %v6551_v20 = vmul.f32 %v10427_v24, %v12172_v28  ;;  %9938 = vmatprep.subr.bf16.mxu0 %v12775_v39  ;;  %v7146_v28 = vpop.permute.xlu0 %7145 }
0x133c   : > { %v7148_v56 = vpop.permute.xlu1 %7147 }
0x133d   : > { %v6559_v17 = vpack.c.bf16 %v6551_v20, %v6551_v20  ;;  %v7153_v32 = vsel %vm672_vm3, %v7148_v56, 0 }
0x133f   : > { %9887 = vmatmul.mubr.msk.bf16.vlgmr.msra.gmra.mxu1 %vm672_vm3, %v6559_v17  ;;  %v7296_v21 = vpop.permute.xlu0 %7295 }
0x1340   : > { %9897 = vmatpush3.bf16.xpose.msra.mxu1 %v6953_v10  ;;  %v7298_v61 = vpop.permute.xlu1 %7297  ;;  %9898 = vmatprep.mubr.msk.bf16.mxu1 %vm10483_vm2, %v12775_v39 }
0x1341   : > { %v7303_v11 = vsel %vm672_vm3, %v7298_v61, 0  ;;  %9929 = vmatmul.mubr.msk.bf16.vlgmr.msra.gmra.mxu0 %vm672_vm3, %v7196_v29  ;;  %9908 = vmatprep.subr.bf16.mxu1 %v12775_v39 }
0x1342   : > { %9939 = vmatpush3.bf16.xpose.msra.mxu0 %v7303_v11  ;;  %9940 = vmatprep.mubr.msk.bf16.mxu0 %vm10483_vm2, %v12775_v39 }
0x1343   : > { %9950 = vmatprep.subr.bf16.mxu0 %v12775_v39 }
0x1344   : > { %v7248_v25 = vpop.permute.xlu1 %7247 }
0x1347   : > { %9899 = vmatmul.mubr.msk.bf16.vlgmr.msra.gmra.mxu1 %vm672_vm3, %v6946_v50  ;;  %v7253_v50 = vsel %vm672_vm3, %v7248_v25, 0 }
0x1348   : > { %9909 = vmatpush3.bf16.xpose.msra.mxu1 %v7053_v55  ;;  %9910 = vmatprep.mubr.msk.bf16.mxu1 %vm10483_vm2, %v12775_v39  ;;  %v7246_v6 = vpop.permute.xlu1 %7245 }
0x1349   : > { %9941 = vmatmul.mubr.msk.bf16.vlgmr.msra.gmra.mxu0 %vm672_vm3, %v7296_v21  ;;  %9920 = vmatprep.subr.bf16.mxu1 %v12775_v39 }
0x134a   : > { %9952 = vmatprep.mubr.msk.bf16.mxu0 %vm10483_vm2, %v12775_v39 }
0x134f   : > { %9911 = vmatmul.mubr.msk.bf16.vlgmr.msra.gmra.mxu1 %vm672_vm3, %v7046_v3 }
0x1350   : > { %9921 = vmatpush3.bf16.xpose.msra.mxu1 %v7153_v32  ;;  %9922 = vmatprep.mubr.msk.bf16.mxu1 %vm10483_vm2, %v12775_v39 }
0x1351   : > { %9932 = vmatprep.subr.bf16.mxu1 %v12775_v39 }
0x1357   : > { %9923 = vmatmul.mubr.msk.bf16.vlgmr.msra.gmra.mxu1 %vm672_vm3, %v7146_v28 }
0x1358   : > { %9933 = vmatpush3.bf16.xpose.msra.mxu1 %v7253_v50  ;;  %9934 = vmatprep.mubr.msk.bf16.mxu1 %vm10483_vm2, %v12775_v39 }
0x1359   : > { %9944 = vmatprep.subr.bf16.mxu1 %v12775_v39 }
0x135a   : > { %v12267_v12 = vpop.f32.mrf.mxu0 }
0x135c   : > { %v9858_v41 = vpop.f32.mrf.mxu0 }
0x135e   : > { %v6654_v43 = vpop.f32.mrf.mxu0 }
0x135f   : > { %9935 = vmatmul.mubr.msk.bf16.vlgmr.msra.gmra.mxu1 %vm672_vm3, %v7246_v6 }
0x1360   : > { %v9859_v33 = vpop.f32.mrf.mxu0  ;;  %9946 = vmatprep.mubr.msk.bf16.mxu1 %vm10483_vm2, %v12775_v39 }
0x1387   : > { %v12272_v3 = vpop.f32.mrf.mxu0 }
0x1389   : > { %v9870_v52 = vpop.f32.mrf.mxu0 }
0x138b   : > { %v6750_v54 = vpop.f32.mrf.mxu0 }
0x138d   : > { %v9871_v24 = vpop.f32.mrf.mxu0 }
0x138f   : > { %v12274_v20 = vpop.f32.mrf.mxu0 }
0x1391   : > { %v9882_v29 = vpop.f32.mrf.mxu0 }
0x1393   : > { %v6846_v56 = vpop.f32.mrf.mxu0 }
0x1395   : > { %v12276_v17 = vpop.f32.mrf.mxu1  ;;  %v9883_v10 = vpop.f32.mrf.mxu0 }
0x1397   : > { %v9852_v61 = vpop.f32.mrf.mxu1 }
0x1399   : > { %v6606_v11 = vpop.f32.mrf.mxu1 }
0x139b   : > { %v9853_v28 = vpop.f32.mrf.mxu1 }
0x139d   : > { %v12278_v55 = vpop.f32.mrf.mxu1 }
0x139f   : > { %v9864_v21 = vpop.f32.mrf.mxu1 }
0x13a1   : > { %v6702_v32 = vpop.f32.mrf.mxu1 }
0x13a3   : > { %v9865_v25 = vpop.f32.mrf.mxu1 }
0x13c4   : > { %v12280_v50 = vpop.f32.mrf.mxu0 }
0x13c6   : > { %v9894_v41 = vpop.f32.mrf.mxu0 }
0x13c8   : > { %v6942_v6 = vpop.f32.mrf.mxu0 }
0x13ca   : > { %v12282_v43 = vpop.f32.mrf.mxu1  ;;  %v9895_v33 = vpop.f32.mrf.mxu0 }
0x13cc   : > { %v9876_v52 = vpop.f32.mrf.mxu1  ;;  %v7039_v54 = vpop.f32.mrf.mxu0 }
0x13cd   : > { %v7348_v24 = vsel %vm672_vm3, %v7039_v54, -inf }
0x13ce   : > { %7349 = vmax.xlane.f32.xlu0 %v7348_v24  ;;  %v6798_v29 = vpop.f32.mrf.mxu1  ;;  %v9906_v56 = vpop.f32.mrf.mxu0 }
0x13d0   : > { %v9877_v10 = vpop.f32.mrf.mxu1  ;;  %v7042_v61 = vpop.f32.mrf.mxu0 }
0x13d2   : > { %v9907_v11 = vpop.f32.mrf.mxu0 }
0x13f9   : > { %v7139_v28 = vpop.f32.mrf.mxu0 }
0x13fa   : > { %v7354_v21 = vsel %vm672_vm3, %v7139_v28, -inf }
0x13fb   : > { %7355 = vmax.xlane.f32.xlu0 %v7354_v21  ;;  %v9918_v32 = vpop.f32.mrf.mxu0 }
0x13fd   : > { %v7142_v25 = vpop.f32.mrf.mxu0 }
0x13ff   : > { %v12286_v41 = vpop.f32.mrf.mxu1  ;;  %v9919_v6 = vpop.f32.mrf.mxu0 }
0x1401   : > { %v9888_v33 = vpop.f32.mrf.mxu1  ;;  %v12288_v52 = vpop.f32.mrf.mxu0 }
0x1402   : > { %v7360_v24 = vsel %vm672_vm3, %v12288_v52, -inf }
0x1403   : > { %v6894_v29 = vpop.f32.mrf.mxu1  ;;  %7361 = vmax.xlane.f32.xlu0 %v7360_v24  ;;  %v9930_v56 = vpop.f32.mrf.mxu0 }
0x1405   : > { %v9889_v10 = vpop.f32.mrf.mxu1  ;;  %v7242_v61 = vpop.f32.mrf.mxu0 }
0x1407   : > { %v6989_v11 = vpop.f32.mrf.mxu1  ;;  %v9931_v14 = vpop.f32.mrf.mxu0 }
0x1408   : > { %v7345_v21 = vsel %vm672_vm3, %v6989_v11, -inf }
0x1409   : > { %7346 = vmax.xlane.f32.xlu1 %v7345_v21  ;;  %v9900_v32 = vpop.f32.mrf.mxu1  ;;  %v12293_v25 = vpop.f32.mrf.mxu0 }
0x140a   : > { %v7366_v6 = vsel %vm672_vm3, %v12293_v25, -inf }
0x140b   : > { %v6992_v33 = vpop.f32.mrf.mxu1  ;;  %7367 = vmax.xlane.f32.xlu0 %v7366_v6  ;;  %v9942_v44 = vpop.f32.mrf.mxu0 }
0x140d   : > { %v9901_v27 = vpop.f32.mrf.mxu1  ;;  %v7342_v29 = vpop.f32.mrf.mxu0 }
0x140f   : > { %v12297_v24 = vpop.f32.mrf.mxu1  ;;  %v9943_v56 = vpop.f32.mrf.mxu0 }
0x1410   : > { %v7351_v14 = vsel %vm672_vm3, %v12297_v24, -inf }
0x1411   : > { %v9912_v10 = vpop.f32.mrf.mxu1  ;;  %7352 = vmax.xlane.f32.xlu0 %v7351_v14 }
0x1413   : > { %v7092_v61 = vpop.f32.mrf.mxu1 }
0x1415   : > { %v9913_v21 = vpop.f32.mrf.mxu1 }
0x1417   : > { %v12301_v32 = vpop.f32.mrf.mxu1 }
0x1418   : > { %v7357_v14 = vsel %vm672_vm3, %v12301_v32, -inf }
0x1419   : > { %v9924_v42 = vpop.f32.mrf.mxu1 }
0x141a   : > { %7441 = vrot.lane.b32.xlu1 %v11522_v35, %s10492_s17 }
0x141b   : > { %v7192_v6 = vpop.f32.mrf.mxu1 }
0x141d   : > { %v9925_v44 = vpop.f32.mrf.mxu1 }
0x141e   : > { %7585 = vrot.lane.b32.xlu1 %v11506_v23, %s10492_s17 }
0x141f   : > { %v12307_v27 = vpop.f32.mrf.mxu1 }
0x1420   : > { %v7363_v35 = vsel %vm672_vm3, %v12307_v27, -inf }
0x1421   : > { %v9936_v33 = vpop.f32.mrf.mxu1 }
0x1423   : > { %v7292_v29 = vpop.f32.mrf.mxu1 }
0x1425   : > { %v9937_v56 = vpop.f32.mrf.mxu1 }
0x1427   : > { %7489 = vrot.lane.b32.xlu0 %v11500_v63, %s10492_s17 }
0x1442   : > { %7358 = vmax.xlane.f32.xlu1 %v7357_v14 }
0x1446   : > { %7364 = vmax.xlane.f32.xlu1 %v7363_v35 }
0x1457   : > { %v7350_v42 = vpop.xlane.xlu0 %7349  ;;  %7537 = vrot.lane.b32.xlu1 %v11530_v37, %s10492_s17 }
0x1458   : > { %v7370_v23 = vsub.f32 %v7039_v54, %v7350_v42 }
0x145a   : > { %v7379_v10 = vmul.f32 1.442695, %v7370_v23 }
0x145c   : > { %10428 = vpow2.f32 %v7379_v10 }
0x1469   : > { %v12317_v61 = vpop.eup %10428 }
0x146a   : > { %v7396_v63 = vsel %vm672_vm3, %v12317_v61, 0.0 }
0x146b   : > { %7397 = vadd.xlane.f32.xlu0 %v7396_v63 }
0x1484   : > { %v7356_v21 = vpop.xlane.xlu0 %7355 }
0x1485   : > { %v7372_v6 = vsub.f32 %v7139_v28, %v7356_v21 }
0x1487   : > { %v7383_v44 = vmul.f32 1.442695, %v7372_v6 }
0x1489   : > { %10430 = vpow2.f32 %v7383_v44 }
0x148c   : > { %v7362_v33 = vpop.xlane.xlu0 %7361 }
0x148d   : > { %v7374_v6 = vsub.f32 %v12288_v52, %v7362_v33 }
0x148f   : > { %v7387_v44 = vmul.f32 1.442695, %v7374_v6 }
0x1492   : > { %v7347_v29 = vpop.xlane.xlu1 %7346 }
0x1493   : > { %v7369_v56 = vsub.f32 %v6989_v11, %v7347_v29 }
0x1494   : > { %v7368_v37 = vpop.xlane.xlu0 %7367 }
0x1495   : > { %v7377_v14 = vmul.f32 1.442695, %v7369_v56  ;;  %v7376_v29 = vsub.f32 %v12293_v25, %v7368_v37 }
0x1496   : > { %v12321_v35 = vpop.eup %10430  ;;  %v7442_v54 = vpop.permute.xlu1 %7441 }
0x1497   : > { %10432 = vpow2.f32 %v7377_v14  ;;  %v7447_v42 = vsel %vm1163_vm4, %v7442_v54, 0  ;;  %v7402_v23 = vsel %vm672_vm3, %v12321_v35, 0.0  ;;  %v7391_v56 = vmul.f32 1.442695, %v7376_v29 }
0x1498   : > { %7403 = vadd.xlane.f32.xlu0 %v7402_v23  ;;  %9945 = vmatpush3.bf16.msra.mxu1 %v7447_v42  ;;  %10434 = vpow2.f32 %v7387_v44 }
0x1499   : > { %9956 = vmatprep.subr.bf16.mxu1 %v12775_v39  ;;  %10436 = vpow2.f32 %v7391_v56 }
0x149a   : > { %v7353_v28 = vpop.xlane.xlu0 %7352  ;;  %v7586_v42 = vpop.permute.xlu1 %7585 }
0x149b   : > { %v7371_v14 = vsub.f32 %v12297_v24, %v7353_v28 }
0x149d   : > { %v7381_v54 = vmul.f32 1.442695, %v7371_v14 }
0x149e   : > { %v7490_v10 = vpop.permute.xlu0 %7489 }
0x149f   : > { %v7495_v63 = vsel %vm1163_vm4, %v7490_v10, 0  ;;  %10438 = vpow2.f32 %v7381_v54 }
0x14a0   : > { %9951 = vmatpush3.bf16.msra.mxu0 %v7495_v63 }
0x14a1   : > { %9962 = vmatprep.subr.bf16.mxu0 %v12775_v39 }
0x14a4   : > { %v12329_v11 = vpop.eup %10432 }
0x14a5   : > { %v7393_v21 = vsel %vm672_vm3, %v12329_v11, 0.0  ;;  %v12340_v23 = vpop.eup %10434 }
0x14a6   : > { %7394 = vadd.xlane.f32.xlu1 %v7393_v21  ;;  %v7408_v52 = vsel %vm672_vm3, %v12340_v23, 0.0 }
0x14ae   : > { %7681 = vrot.lane.b32.xlu0 %v11512_v30, %s10492_s17 }
0x14b7   : > { %7633 = vrot.lane.b32.xlu1 %v11538_v34, %s10492_s17  ;;  %v12345_v34 = vpop.eup %10436 }
0x14b8   : > { %v7414_v24 = vsel %vm672_vm3, %v12345_v34, 0.0  ;;  %v12350_v63 = vpop.eup %10438 }
0x14cb   : > { %v7359_v10 = vpop.xlane.xlu1 %7358 }
0x14cc   : > { %v7373_v30 = vsub.f32 %v12301_v32, %v7359_v10  ;;  %v7399_v32 = vsel %vm672_vm3, %v12350_v63, 0.0 }
0x14cd   : > { %7409 = vadd.xlane.f32.xlu0 %v7408_v52 }
0x14ce   : > { %v7385_v25 = vmul.f32 1.442695, %v7373_v30 }
0x14cf   : > { %v7365_v33 = vpop.xlane.xlu1 %7364 }
0x14d0   : > { %10440 = vpow2.f32 %v7385_v25  ;;  %v7375_v37 = vsub.f32 %v12307_v27, %v7365_v33 }
0x14d1   : > { %7415 = vadd.xlane.f32.xlu0 %v7414_v24 }
0x14d2   : > { %v7389_v28 = vmul.f32 1.442695, %v7375_v37 }
0x14d4   : > { %10442 = vpow2.f32 %v7389_v28 }
0x14db   : > { %7400 = vadd.xlane.f32.xlu1 %v7399_v32 }
0x14dd   : > { %v12354_v21 = vpop.eup %10440 }
0x14de   : > { %v7405_v6 = vsel %vm672_vm3, %v12354_v21, 0.0 }
0x14df   : > { %7406 = vadd.xlane.f32.xlu1 %v7405_v6 }
0x14e1   : > { %v12358_v44 = vpop.eup %10442 }
0x14e2   : > { %v7411_v27 = vsel %vm672_vm3, %v12358_v44, 0.0 }
0x14e3   : > { %7412 = vadd.xlane.f32.xlu1 %v7411_v27 }
0x14e7   : > { %7777 = vrot.lane.b32.xlu0 %v11518_v22, %s10492_s17 }
0x14eb   : > { %7847 = vrot.lane.b32.xlu0 %v12086_v36, %s10493_s10 }
0x14ef   : > { %7845 = vrot.lane.b32.xlu0 %v12092_v7, %s10493_s10 }
0x14f3   : > { %7877 = vrot.lane.b32.xlu0 %v12286_v41, %s10494_s21 }
0x14f4   : > { %v7398_v29 = vpop.xlane.xlu0 %7397  ;;  %7729 = vrot.lane.b32.xlu1 %v11544_v26, %s10492_s17 }
0x14f5   : > { %10444 = vrcp.f32 %v7398_v29 }
0x14f7   : > { %7841 = vrot.lane.b32.xlu0 %v12088_v57, %s10493_s10  ;;  %v7591_v57 = vsel %vm1163_vm4, %v7586_v42, 0 }
0x14f8   : > { %7879 = vrot.lane.b32.xlu1 %v12280_v50, %s10494_s21 }
0x14fb   : > { %7873 = vrot.lane.b32.xlu0 %v12282_v43, %s10494_s21 }
0x14fc   : > { %7843 = vrot.lane.b32.xlu1 %v12080_v31, %s10493_s10  ;;  %v7538_v31 = vpop.permute.xlu1 %7537 }
0x14fd   : > { %v7543_v41 = vsel %vm1163_vm4, %v7538_v31, 0 }
0x14ff   : > { %7837 = vrot.lane.b32.xlu0 %v12084_v9, %s10493_s10 }
0x1500   : > { %7875 = vrot.lane.b32.xlu1 %v12274_v20, %s10494_s21 }
0x1502   : > { %v10445_v22 = vpop.eup %10444 }
0x1503   : > { %v7426_v26 = vmul.f32 %v10445_v22, %v12317_v61  ;;  %7869 = vrot.lane.b32.xlu0 %v12278_v55, %s10494_s21 }
0x1504   : > { %7839 = vrot.lane.b32.xlu1 %v12078_v38, %s10493_s10 }
0x1505   : > { %v7434_v36 = vpack.c.bf16 %v7426_v26, %v7426_v26 }
0x1507   : > { %7833 = vrot.lane.b32.xlu0 %v12082_v58, %s10493_s10  ;;  %9953 = vmatmul.mubr.msk.bf16.vlgmr.msra.gmra.mxu0 %vm672_vm3, %v7434_v36 }
0x1508   : > { %9963 = vmatpush3.bf16.msra.mxu0 %v7591_v57  ;;  %7871 = vrot.lane.b32.xlu1 %v12272_v3, %s10494_s21 }
0x1509   : > { %9964 = vmatprep.mubr.msk.bf16.mxu0 %vm10483_vm2, %v12775_v39  ;;  %9974 = vmatprep.subr.bf16.mxu0 %v12775_v39 }
0x150b   : > { %7865 = vrot.lane.b32.xlu0 %v12276_v17, %s10494_s21 }
0x1521   : > { %v7404_v38 = vpop.xlane.xlu0 %7403 }
0x1522   : > { %10446 = vrcp.f32 %v7404_v38 }
0x1525   : > { %v7682_v20 = vpop.permute.xlu0 %7681 }
0x1526   : > { %v7687_v3 = vsel %vm1163_vm4, %v7682_v20, 0 }
0x152f   : > { %v10447_v9 = vpop.eup %10446  ;;  %v7395_v7 = vpop.xlane.xlu1 %7394 }
0x1530   : > { %v7428_v58 = vmul.f32 %v10447_v9, %v12321_v35  ;;  %10448 = vrcp.f32 %v7395_v7 }
0x1532   : > { %v7436_v55 = vpack.c.bf16 %v7428_v58, %v7428_v58 }
0x1533   : > { %v7634_v56 = vpop.permute.xlu1 %7633 }
0x1534   : > { %9965 = vmatmul.mubr.msk.bf16.vlgmr.msra.gmra.mxu0 %vm672_vm3, %v7436_v55  ;;  %v7639_v27 = vsel %vm1163_vm4, %v7634_v56, 0 }
0x1535   : > { %9975 = vmatpush3.bf16.msra.mxu0 %v7687_v3  ;;  %9976 = vmatprep.mubr.msk.bf16.mxu0 %vm10483_vm2, %v12775_v39 }
0x1536   : > { %9986 = vmatprep.subr.bf16.mxu0 %v12775_v39 }
0x153d   : > { %v10449_v17 = vpop.eup %10448 }
0x153e   : > { %v7425_v50 = vmul.f32 %v10449_v17, %v12329_v11 }
0x1540   : > { %v7433_v43 = vpack.c.bf16 %v7425_v50, %v7425_v50 }
0x1542   : > { %9947 = vmatmul.mubr.msk.bf16.vlgmr.msra.gmra.mxu1 %vm672_vm3, %v7433_v43 }
0x1543   : > { %9957 = vmatpush3.bf16.msra.mxu1 %v7543_v41  ;;  %9958 = vmatprep.mubr.msk.bf16.mxu1 %vm10483_vm2, %v12775_v39 }
0x1544   : > { %9968 = vmatprep.subr.bf16.mxu1 %v12775_v39 }
0x1556   : > { %v7410_v61 = vpop.xlane.xlu0 %7409 }
0x1557   : > { %10450 = vrcp.f32 %v7410_v61 }
0x155a   : > { %v7416_v35 = vpop.xlane.xlu0 %7415 }
0x155b   : > { %10452 = vrcp.f32 %v7416_v35 }
0x155e   : > { %v7778_v42 = vpop.permute.xlu0 %7777 }
0x155f   : > { %v7783_v25 = vsel %vm1163_vm4, %v7778_v42, 0 }
0x1564   : > { %v10451_v14 = vpop.eup %10450  ;;  %v7401_v54 = vpop.xlane.xlu1 %7400 }
0x1565   : > { %v7430_v11 = vmul.f32 %v10451_v14, %v12340_v23  ;;  %10454 = vrcp.f32 %v7401_v54 }
0x1567   : > { %v7438_v10 = vpack.c.bf16 %v7430_v11, %v7430_v11 }
0x1568   : > { %v10453_v30 = vpop.eup %10452  ;;  %v7407_v52 = vpop.xlane.xlu1 %7406 }
0x1569   : > { %10456 = vrcp.f32 %v7407_v52  ;;  %9977 = vmatmul.mubr.msk.bf16.vlgmr.msra.gmra.mxu0 %vm672_vm3, %v7438_v10  ;;  %v7432_v33 = vmul.f32 %v10453_v30, %v12345_v34 }
0x156a   : > { %9987 = vmatpush3.bf16.msra.mxu0 %v7783_v25  ;;  %9988 = vmatprep.mubr.msk.bf16.mxu0 %vm10483_vm2, %v12775_v39 }
0x156b   : > { %v7440_v24 = vpack.c.bf16 %v7432_v33, %v7432_v33 }
0x156c   : > { %v7413_v37 = vpop.xlane.xlu1 %7412 }
0x156d   : > { %10458 = vrcp.f32 %v7413_v37  ;;  %v12787_v37 = vpack.i.bf16 %v11201_v47, %v11207_v62  ;;  %v12790_v47 = vpack.i.bf16 %v11420_v2, %v11428_v15  ;;  %v12791_v62 = vpack.i.bf16 %v11652_v8, %v11658_v16  ;;  %v10465_v15 = vld [vmem:[%s12745_s4 + $0x18] sm:$0xff]  ;;  %v10468_v8 = vld [vmem:[%s12745_s4 + $0x30] sm:$0xff] }
0x156e   : > { %v12795_v2 = vpack.i.bf16 %v11422_v53, %v11434_v5  ;;  %v10464_v53 = vld [vmem:[%s12745_s4 + $0x10] sm:$0xff]  ;;  %v10467_v5 = vld [vmem:[%s12745_s4 + $0x28] sm:$0xff]  ;;  %v10469_v16 = vld [vmem:[%s12745_s4 + $0x38] sm:$0xff] }
0x1570   : > { %v7730_v29 = vpop.permute.xlu1 %7729 }
0x1571   : > { %9989 = vmatmul.mubr.msk.bf16.vlgmr.msra.gmra.mxu0 %vm672_vm3, %v7440_v24  ;;  %v7735_v36 = vsel %vm1163_vm4, %v7730_v29, 0 }
0x1572   : > { %v10455_v23 = vpop.eup %10454 }
0x1573   : > { %v7427_v28 = vmul.f32 %v10455_v23, %v12350_v63  ;;  %v12788_v23 = vpack.i.bf16 %v11203_v59, %v11211_v49  ;;  %v12792_v59 = vpack.i.bf16 %v11654_v1, %v11662_v18  ;;  %v12793_v49 = vpack.i.bf16 %v11205_v19, %v11217_v51  ;;  %v12797_v51 = vld [vmem:[#allocation18_spill] sm:$0xff] }
0x1574   : > { %v12796_v19 = vpack.i.bf16 %v11432_v13, %v11440_v4  ;;  %v10466_v13 = vld [vmem:[%s12745_s4 + $0x20] sm:$0xff]  ;;  %v7848_v4 = vpop.permute.xlu0 %7847  ;;  %v7880_v1 = vpop.permute.xlu1 %7879 }
0x1575   : > { %v7435_v32 = vpack.c.bf16 %v7427_v28, %v7427_v28 }
0x1576   : > { %v10457_v6 = vpop.eup %10456 }
0x1577   : > { %9959 = vmatmul.mubr.msk.bf16.vlgmr.msra.gmra.mxu1 %vm672_vm3, %v7435_v32  ;;  %v7429_v34 = vmul.f32 %v10457_v6, %v12354_v21  ;;  %v12789_v6 = vpack.i.bf16 %v11413_v46, %v11424_v0  ;;  %v12794_v46 = vpack.i.bf16 %v11215_v40, %v11223_v48  ;;  %v10462_v0 = vld [vmem:[%s12745_s4] sm:$0xff]  ;;  %v10463_v40 = vld [vmem:[%s12745_s4 + $0x8] sm:$0xff]  ;;  %v10152_v48 = vpack.i.bf16 %v12797_v51, %v11669_v60 }
0x1578   : > { %9969 = vmatpush3.bf16.msra.mxu1 %v7639_v27  ;;  %9970 = vmatprep.mubr.msk.bf16.mxu1 %vm10483_vm2, %v12775_v39  ;;  %v7846_v18 = vpop.permute.xlu0 %7845  ;;  %v7844_v60 = vpop.permute.xlu1 %7843 }
0x1579   : > { %9980 = vmatprep.subr.bf16.mxu1 %v12775_v39  ;;  %v7437_v22 = vpack.c.bf16 %v7429_v34, %v7429_v34 }
0x157a   : > { %v10459_v26 = vpop.eup %10458 }
0x157b   : > { %v7431_v63 = vmul.f32 %v10459_v26, %v12358_v44 }
0x157c   : > { %v7878_v27 = vpop.permute.xlu0 %7877  ;;  %v7876_v34 = vpop.permute.xlu1 %7875 }
0x157d   : > { %v7439_v57 = vpack.c.bf16 %v7431_v63, %v7431_v63 }
0x157f   : > { %9971 = vmatmul.mubr.msk.bf16.vlgmr.msra.gmra.mxu1 %vm672_vm3, %v7437_v22 }
0x1580   : > { %9981 = vmatpush3.bf16.msra.mxu1 %v7735_v36  ;;  %9982 = vmatprep.mubr.msk.bf16.mxu1 %vm10483_vm2, %v12775_v39  ;;  %v7842_v29 = vpop.permute.xlu0 %7841  ;;  %v7840_v22 = vpop.permute.xlu1 %7839 }
0x1584   : > { %v7874_v26 = vpop.permute.xlu0 %7873  ;;  %v7872_v36 = vpop.permute.xlu1 %7871 }
0x1587   : > { %9983 = vmatmul.mubr.msk.bf16.vlgmr.msra.gmra.mxu1 %vm672_vm3, %v7439_v57 }
0x1588   : > { %v7838_v63 = vpop.permute.xlu0 %7837 }
0x15c7   : > { %v7531_v38 = vpop.f32.mrf.mxu0 }
0x15c9   : > { %v9954_v21 = vpop.f32.mrf.mxu0 }
0x15ca   : > { %v7870_v21 = vpop.permute.xlu0 %7869 }
0x15cb   : > { %v7534_v31 = vpop.f32.mrf.mxu0 }
0x15cc   : > { %v12798_v31 = vld [vmem:[#allocation26_spill] sm:$0xff] }
0x15cd   : > { %v9955_v9 = vpop.f32.mrf.mxu0 }
0x15ce   : > { %v7928_v9 = vsel %vm672_vm3, %v12798_v31, %v7848_v4 }
0x15f4   : > { %v7627_v7 = vpop.f32.mrf.mxu0 }
0x15f5   : > { %7903 = vrot.lane.b32.xlu1 %v7627_v7, %s10495_s22  ;;  %v7936_v7 = vsel %vm4287_vm5, %v7928_v9, %v7880_v1  ;;  %v10188_v1 = vld [vmem:[%s12743_s2 + $0x58] sm:$0xff]  }
0x15f6   : > { %v9966_v58 = vpop.f32.mrf.mxu0  ;;  %10020 = vmatprep.subr.bf16.mxu0 %v10188_v1 }
0x15f7   : > { %10021 = vmatpush3.bf16.msra.mxu0 %v10188_v1 }
0x15f8   : > { %v7630_v20 = vpop.f32.mrf.mxu0 }
0x15fa   : > { %v9967_v55 = vpop.f32.mrf.mxu0 }
0x15fb   : > { %v7834_v55 = vpop.permute.xlu0 %7833 }
0x1602   : > { %v7483_v3 = vpop.f32.mrf.mxu1 }
0x1604   : > { %v9948_v17 = vpop.f32.mrf.mxu1 }
0x1606   : > { %v7486_v50 = vpop.f32.mrf.mxu1 }
0x1608   : > { %v9949_v39 = vpop.f32.mrf.mxu1 }
0x1629   : > { %v7723_v43 = vpop.f32.mrf.mxu0 }
0x162a   : > { %7907 = vrot.lane.b32.xlu1 %v7723_v43, %s10495_s22 }
0x162b   : > { %v9978_v44 = vpop.f32.mrf.mxu0 }
0x162c   : > { %v12799_v44 = vld [vmem:[#allocation28_spill] sm:$0xff] }
0x162d   : > { %v7726_v41 = vpop.f32.mrf.mxu0 }
0x162e   : > { %v7927_v41 = vsel %vm672_vm3, %v12799_v44, %v7846_v18  ;;  %v10190_v18 = vld [vmem:[%s12743_s2 + $0x48] sm:$0xff]  }
0x162f   : > { %v9979_v61 = vpop.f32.mrf.mxu0 }
0x1630   : > { %v7935_v61 = vsel %vm4287_vm5, %v7927_v41, %v7878_v27  ;;  %v10191_v27 = vld [vmem:[%s12743_s2 + $0x40] sm:$0xff]  }
0x1631   : > { %v7819_v35 = vpop.f32.mrf.mxu0 }
0x1632   : > { %7911 = vrot.lane.b32.xlu1 %v7819_v35, %s10495_s22 }
0x1633   : > { %v9990_v56 = vpop.f32.mrf.mxu0 }
0x1634   : > { %v12800_v56 = vld [vmem:[#allocation23_spill] sm:$0xff] }
0x1635   : > { %v7822_v14 = vpop.f32.mrf.mxu0 }
0x1636   : > { %7835 = vrot.lane.b32.xlu1 %v12071_v45, %s10493_s10  ;;  %v7926_v14 = vsel %vm672_vm3, %v12800_v56, %v7844_v60 }
0x1637   : > { %v7579_v54 = vpop.f32.mrf.mxu1  ;;  %v9991_v11 = vpop.f32.mrf.mxu0 }
0x1638   : > { %7901 = vrot.lane.b32.xlu0 %v7579_v54, %s10495_s22  ;;  %v7934_v11 = vsel %vm4287_vm5, %v7926_v14, %v7876_v34 }
0x1639   : > { %v9960_v42 = vpop.f32.mrf.mxu1 }
0x163a   : > { %7867 = vrot.lane.b32.xlu1 %v12267_v12, %s10494_s21  ;;  %v12801_v42 = vld [vmem:[#allocation27_spill] sm:$0xff] }
0x163b   : > { %v7582_v10 = vpop.f32.mrf.mxu1 }
0x163c   : > { %v7925_v10 = vsel %vm672_vm3, %v12801_v42, %v7842_v29 }
0x163d   : > { %v9961_v30 = vpop.f32.mrf.mxu1 }
0x163e   : > { %7899 = vrot.lane.b32.xlu1 %v7531_v38, %s10495_s22 }
0x163f   : > { %v7675_v52 = vpop.f32.mrf.mxu1 }
0x1640   : > { %7905 = vrot.lane.b32.xlu0 %v7675_v52, %s10495_s22  ;;  %v7933_v52 = vsel %vm4287_vm5, %v7925_v10, %v7874_v26 }
0x1641   : > { %v9972_v25 = vpop.f32.mrf.mxu1 }
0x1642   : > { %7897 = vrot.lane.b32.xlu1 %v7483_v3, %s10495_s22  ;;  %v7866_v3 = vpop.permute.xlu0 %7865 }
0x1643   : > { %v7678_v33 = vpop.f32.mrf.mxu1 }
0x1644   : > { %v12802_v33 = vld [vmem:[#allocation22_spill] sm:$0xff] }
0x1645   : > { %v9973_v45 = vpop.f32.mrf.mxu1 }
0x1646   : > { %10103 = vrot.lane.b32.xlu1 %v12787_v37, %s10493_s10  ;;  %v7924_v45 = vsel %vm672_vm3, %v12802_v33, %v7840_v22 }
0x1647   : > { %v7771_v24 = vpop.f32.mrf.mxu1 }
0x1648   : > { %7909 = vrot.lane.b32.xlu0 %v7771_v24, %s10495_s22  ;;  %v7932_v24 = vsel %vm4287_vm5, %v7924_v45, %v7872_v36  ;;  %v12810_v45 = vld [vmem:[#allocation11_spill] sm:$0xff] }
0x1649   : > { %v9984_v12 = vpop.f32.mrf.mxu1 }
0x164a   : > { %10108 = vrot.lane.b32.xlu1 %v12788_v23, %s10493_s10  ;;  %v12803_v12 = vld [vmem:[#allocation25_spill] sm:$0xff] }
0x164b   : > { %v7774_v28 = vpop.f32.mrf.mxu1  ;;  %v7923_v23 = vsel %vm672_vm3, %v12803_v12, %v7838_v63 }
0x164d   : > { %v9985_v32 = vpop.f32.mrf.mxu1 }
0x164e   : > { %10113 = vrot.lane.b32.xlu1 %v12789_v6, %s10494_s21  ;;  %v7931_v32 = vsel %vm4287_vm5, %v7923_v23, %v7870_v21  ;;  %v12804_v6 = vld [vmem:[#allocation21_spill] sm:$0xff] }
0x1652   : > { %10118 = vrot.lane.b32.xlu1 %v12790_v47, %s10494_s21 }
0x1656   : > { %10123 = vrot.lane.b32.xlu1 %v12791_v62, %s10495_s22 }
0x165a   : > { %10128 = vrot.lane.b32.xlu1 %v12792_v59, %s10495_s22 }
0x165e   : > { %10133 = vrot.lane.b32.xlu1 %v12793_v49, %s10493_s10 }
0x1662   : > { %10138 = vrot.lane.b32.xlu1 %v12794_v46, %s10493_s10  ;;  %v12805_v46 = vld [vmem:[#allocation24_spill] sm:$0xff] }
0x1666   : > { %10143 = vrot.lane.b32.xlu1 %v12795_v2, %s10494_s21  ;;  %7945 = vxpose.xlu0.b32.start [1/8] (short) (narrow) %v10462_v0, 64  ;;  %v7921_v2 = vsel %vm672_vm3, %v12805_v46, %v7834_v55  ;;  %v8854_v55 = vld [vmem:[%s12744_s3 + $0x2] ss:$0 sm:$0xff] }
0x1667   : > { %v7904_v57 = vpop.permute.xlu1 %7903 }
0x1668   : > { %v7940_v28 = vsel %vm4296_vm6, %v7932_v24, %v7904_v57  ;;  %v12806_v57 = vld [vmem:[#allocation19_spill] sm:$0xff] }
0x166a   : > { %10148 = vrot.lane.b32.xlu1 %v12796_v19, %s10494_s21  ;;  %7946 = vxpose.xlu0.b32.cont [2/8] (short) (narrow) %v10463_v40, 64  ;;  %v7929_v19 = vsel %vm4287_vm5, %v7921_v2, %v7866_v3 }
0x166e   : > { %10153 = vrot.lane.b32.xlu1 %v10152_v48, %s10495_s22  ;;  %7947 = vxpose.xlu0.b32.cont [3/8] (short) (narrow) %v10464_v53, 64 }
0x1672   : > { %7948 = vxpose.xlu0.b32.cont [4/8] (short) (narrow) %v10465_v15, 64 }
0x1676   : > { %7949 = vxpose.xlu0.b32.cont [5/8] (short) (narrow) %v10466_v13, 64 }
0x167a   : > { %7950 = vxpose.xlu0.b32.cont [6/8] (short) (narrow) %v10467_v5, 64 }
0x167e   : > { %7951 = vxpose.xlu0.b32.cont [7/8] (short) (narrow) %v10468_v8, 64 }
0x1682   : > { %7952 = vxpose.xlu0.b32.end [8/8] (short) (narrow) %v10469_v16, 64  ;;  %v10189_v16 = vld [vmem:[%s12743_s2 + $0x50] sm:$0xff]  }
0x1683   : > { %10022 = vmatprep.subr.bf16.mxu0 %v10189_v16 }
0x1684   : > { %10023 = vmatpush3.bf16.msra.mxu0 %v10189_v16 }
0x1685   : > { %10024 = vmatprep.subr.bf16.mxu0 %v10190_v18 }
0x1688   : > { %10025 = vmatpush3.bf16.msra.mxu0 %v10190_v18 }
0x1689   : > { %10026 = vmatprep.subr.bf16.mxu0 %v10191_v27 }
0x168c   : > { %10027 = vmatpush3.bf16.msra.mxu0 %v10191_v27 }
0x169c   : > { %v7908_v38 = vpop.permute.xlu1 %7907 }
0x169d   : > { %v7942_v30 = vsel %vm4296_vm6, %v7934_v11, %v7908_v38  ;;  %v12807_v38 = vld [vmem:[#allocation20_spill] sm:$0xff] }
0x169e   : > { %v12808_v21 = vpack.i.bf16 %v12806_v57, %v12807_v38 }
0x16a4   : > { %v7912_v58 = vpop.permute.xlu1 %7911 }
0x16a5   : > { %v7944_v20 = vsel %vm4296_vm6, %v7936_v7, %v7912_v58 }
0x16a6   : > { %9992 = vmatprep.subr.mxu1 %v7944_v20 }
0x16a7   : > { %9993 = vmatpush3.msra.mxu1 %v7944_v20 }
0x16a8   : > { %v7836_v17 = vpop.permute.xlu1 %7835 }
0x16a9   : > { %v7922_v47 = vsel %vm672_vm3, %v12804_v6, %v7836_v17 }
0x16aa   : > { %v7902_v50 = vpop.permute.xlu0 %7901 }
0x16ab   : > { %v7939_v62 = vsel %vm4296_vm6, %v7931_v32, %v7902_v50 }
0x16ac   : > { %v7868_v43 = vpop.permute.xlu1 %7867 }
0x16ad   : > { %v7930_v59 = vsel %vm4287_vm5, %v7922_v47, %v7868_v43 }
0x16b0   : > { %v7900_v25 = vpop.permute.xlu1 %7899 }
0x16b1   : > { %v7938_v0 = vsel %vm4296_vm6, %v7930_v59, %v7900_v25  ;;  %v12809_v25 = vld [vmem:[#allocation10_spill] sm:$0xff] }
0x16b2   : > { %v7906_v39 = vpop.permute.xlu0 %7905 }
0x16b3   : > { %v7941_v37 = vsel %vm4296_vm6, %v7933_v52, %v7906_v39 }
0x16b4   : > { %v7898_v49 = vpop.permute.xlu1 %7897 }
0x16b5   : > { %v7937_v40 = vsel %vm4296_vm6, %v7929_v19, %v7898_v49 }
0x16b8   : > { %v10104_v3 = vpop.permute.xlu1 %10103 }
0x16b9   : > { %v10106_v14 = vunpack.i.h.bf16 %v10104_v3 }
0x16ba   : > { %v7910_v35 = vpop.permute.xlu0 %7909 }
0x16bb   : > { %v7943_v54 = vsel %vm4296_vm6, %v7935_v61, %v7910_v35  ;;  %v4280_v33 = vsel %vm672_vm3, %v12809_v25, %v10106_v14 }
0x16bc   : > { %9994 = vmatprep.subr.mxu1 %v7943_v54  ;;  %v10109_v17 = vpop.permute.xlu1 %10108 }
0x16bd   : > { %9995 = vmatpush3.msra.mxu1 %v7943_v54  ;;  %v10105_v54 = vunpack.i.l.bf16 %v10104_v3  ;;  %v10111_v49 = vunpack.i.h.bf16 %v10109_v17  ;;  %v10110_v46 = vunpack.i.l.bf16 %v10109_v17 }
0x16be   : > { %9996 = vmatprep.subr.mxu1 %v7942_v30 }
0x16bf   : > { %9997 = vmatpush3.msra.mxu1 %v7942_v30 }
0x16c0   : > { %9998 = vmatprep.subr.mxu1 %v7941_v37  ;;  %v10114_v50 = vpop.permute.xlu1 %10113 }
0x16c1   : > { %9999 = vmatpush3.msra.mxu1 %v7941_v37  ;;  %v10116_v42 = vunpack.i.h.bf16 %v10114_v50  ;;  %v10115_v10 = vunpack.i.l.bf16 %v10114_v50  ;;  %v4279_v37 = vsel %vm672_vm3, %v12810_v45, %v10105_v54 }
0x16c2   : > { %10000 = vmatprep.subr.mxu1 %v7940_v28 }
0x16c3   : > { %10001 = vmatpush3.msra.mxu1 %v7940_v28  ;;  %v4288_v12 = vsel %vm4287_vm5, %v4279_v37, %v10115_v10  ;;  %v4289_v23 = vsel %vm4287_vm5, %v4280_v33, %v10116_v42  ;;  %v12816_v33 = vld [vmem:[#allocation17_spill] sm:$0xff] }
0x16c4   : > { %10002 = vmatprep.subr.mxu1 %v7939_v62  ;;  %v10119_v39 = vpop.permute.xlu1 %10118 }
0x16c5   : > { %10003 = vmatpush3.msra.mxu1 %v7939_v62  ;;  %v10120_v19 = vunpack.i.l.bf16 %v10119_v39 }
0x16c6   : > { %10004 = vmatprep.subr.mxu1 %v7938_v0 }
0x16c7   : > { %10005 = vmatpush3.msra.mxu1 %v7938_v0  ;;  %v10121_v0 = vunpack.i.h.bf16 %v10119_v39 }
0x16c8   : > { %10006 = vmatprep.subr.mxu1 %v7937_v40  ;;  %v10124_v43 = vpop.permute.xlu1 %10123 }
0x16c9   : > { %10007 = vmatpush3.msra.mxu1 %v7937_v40  ;;  %v10126_v30 = vunpack.i.h.bf16 %v10124_v43  ;;  %v10125_v52 = vunpack.i.l.bf16 %v10124_v43 }
0x16cb   : > { %v4297_v6 = vsel %vm4296_vm6, %v4288_v12, %v10125_v52  ;;  %v4298_v47 = vsel %vm4296_vm6, %v4289_v23, %v10126_v30  ;;  %v12815_v52 = vld [vmem:[#allocation16_spill] sm:$0xff] }
0x16cc   : > { %v10129_v44 = vpop.permute.xlu1 %10128 }
0x16cd   : > { %v10131_v40 = vunpack.i.h.bf16 %v10129_v44 }
0x16d0   : > { %v10134_v41 = vpop.permute.xlu1 %10133 }
0x16d4   : > { %v12576_v61 = vpop.permute.xlu1 %10138 }
0x16d5   : > { %v10140_v14 = vunpack.i.l.bf16 %v12576_v61 }
0x16d7   : > { %v4285_v45 = vsel %vm672_vm3, %v12816_v33, %v10140_v14  ;;  %v12823_v14 = vld [vmem:[#allocation7_spill] sm:$0xff] }
0x16d8   : > { %v10144_v35 = vpop.permute.xlu1 %10143 }
0x16dc   : > { %v12578_v56 = vpop.permute.xlu1 %10148 }
0x16dd   : > { %v10150_v42 = vunpack.i.l.bf16 %v12578_v56 }
0x16e0   : > { %v10154_v11 = vpop.permute.xlu1 %10153 }
0x16e1   : > { %v10156_v57 = vunpack.i.h.bf16 %v10154_v11  ;;  %v10155_v38 = vunpack.i.l.bf16 %v10154_v11  ;;  %v10151_v11 = vunpack.i.h.bf16 %v12578_v56 }
0x16e2   : > { %v7961_v51 = vpop.trf.xlu0 }
0x16e3   : > { %10008 = vmatprep.mubr.msk.f32.mxu1 %vm531_vm1, %v7961_v51  ;;  %v10130_v51 = vunpack.i.l.bf16 %v10129_v44 }
0x16e6   : > { %v7962_v48 = vpop.trf.xlu0 }
0x16e7   : > { %10009 = vmatmul.mubr.msk.f32.vlgmr.msra.gmra.mxu1 %vm531_vm1, %v7962_v48  ;;  %v12811_v48 = vld [vmem:[#allocation12_spill] sm:$0xff] }
0x16ea   : > { %v7963_v53 = vpop.trf.xlu0 }
0x16eb   : > { %10011 = vmatprep.mubr.msk.f32.mxu1 %vm531_vm1, %v7963_v53  ;;  %v4282_v53 = vsel %vm672_vm3, %v12811_v48, %v10111_v49  ;;  %v10194_v49 = vld [vmem:[%s12743_s2 + $0x38] sm:$0xff]  }
0x16ec   : > { %10048 = vmatprep.subr.bf16.mxu0 %v10194_v49 }
0x16ee   : > { %v7964_v15 = vpop.trf.xlu0 }
0x16ef   : > { %10012 = vmatmul.mubr.msk.f32.gmra.mxu1 %vm531_vm1, %v7964_v15  ;;  %v12812_v15 = vld [vmem:[#allocation14_spill] sm:$0xff] }
0x16f2   : > { %v7965_v13 = vpop.trf.xlu0 }
0x16f3   : > { %10014 = vmatprep.mubr.msk.f32.mxu1 %vm531_vm1, %v7965_v13  ;;  %v4281_v13 = vsel %vm672_vm3, %v12812_v15, %v10110_v46  ;;  %v10195_v46 = vld [vmem:[%s12743_s2 + $0x30] sm:$0xff]  }
0x16f6   : > { %v7966_v5 = vpop.trf.xlu0 }
0x16f7   : > { %10015 = vmatmul.mubr.msk.f32.gmra.mxu1 %vm531_vm1, %v7966_v5 }
0x16fa   : > { %v7967_v4 = vpop.trf.xlu0 }
0x16fb   : > { %10017 = vmatprep.mubr.msk.f32.mxu1 %vm531_vm1, %v7967_v4  ;;  %v4290_v4 = vsel %vm4287_vm5, %v4281_v13, %v10120_v19  ;;  %v10198_v19 = vld [vmem:[%s12743_s2 + $0x18] sm:$0xff]  }
0x16fc   : > { %v4299_v18 = vsel %vm4296_vm6, %v4290_v4, %v10130_v51  ;;  %v12817_v4 = vld [vmem:[#allocation3_spill] sm:$0xff] }
0x16fe   : > { %v7968_v8 = vpop.trf.xlu0 }
0x16ff   : > { %10018 = vmatmul.mubr.msk.f32.gmra.mxu1 %vm531_vm1, %v7968_v8  ;;  %v4291_v8 = vsel %vm4287_vm5, %v4282_v53, %v10121_v0  ;;  %v10197_v0 = vld [vmem:[%s12743_s2 + $0x20] sm:$0xff]  }
0x17a7   : > { %v10010_v60 = vpop.f32.mrf.mxu1 }
0x17a9   : > { %v8067_v34 = vpop.f32.mrf.mxu1 }
0x17aa   : > { %v10157_v29 = vpack.i.bf16 %v10010_v60, %v8067_v34  ;;  %v4300_v60 = vsel %vm4296_vm6, %v4291_v8, %v10131_v40 }
0x17ac   : > { %10158 = vrot.lane.b32.xlu1 %v10157_v29, %s10479_s9  ;;  %v10136_v29 = vunpack.i.h.bf16 %v10134_v41 }
0x17af   : > { %v10013_v22 = vpop.f32.mrf.mxu1 }
0x17b1   : > { %v8077_v26 = vpop.f32.mrf.mxu1 }
0x17b2   : > { %v10162_v36 = vpack.i.bf16 %v10013_v22, %v8077_v26  ;;  %v10135_v22 = vunpack.i.l.bf16 %v10134_v41 }
0x17b4   : > { %10163 = vrot.lane.b32.xlu1 %v10162_v36, %s10479_s9  ;;  %v10146_v36 = vunpack.i.h.bf16 %v10144_v35 }
0x17b7   : > { %v10016_v63 = vpop.f32.mrf.mxu1 }
0x17b8   : > { %10168 = vrot.lane.b32.xlu1 %v12808_v21, %s10495_s22  ;;  %v12813_v21 = vld [vmem:[#allocation13_spill] sm:$0xff]  ;;  %s224_s22 = scalar_lea.vmem %s12746_s5, %s8880_s20 }
0x17b9   : > { %v8087_v31 = vpop.f32.mrf.mxu1 }
0x17ba   : > { %v10172_v9 = vpack.i.bf16 %v10016_v63, %v8087_v31  ;;  %v10145_v63 = vunpack.i.l.bf16 %v10144_v35  ;;  %v4284_v31 = vsel %vm672_vm3, %v12813_v21, %v10136_v29  ;;  %v10141_v35 = vunpack.i.h.bf16 %v12576_v61 }
0x17bc   : > { %10173 = vrot.lane.b32.xlu0 %v10172_v9, %s10479_s9  ;;  %v12814_v9 = vld [vmem:[#allocation15_spill] sm:$0xff]  ;;  %v4286_v25 = vsel %vm672_vm3, %v12815_v52, %v10141_v35 }
0x17bd   : > { %v4295_v61 = vsel %vm4287_vm5, %v4286_v25, %v10151_v11 }
0x17bf   : > { %v10019_v7 = vpop.f32.mrf.mxu1 }
0x17c1   : > { %v8097_v58 = vpop.f32.mrf.mxu1 }
0x17c2   : > { %v10177_v20 = vpack.i.bf16 %v10019_v7, %v8097_v58  ;;  %v4283_v7 = vsel %vm672_vm3, %v12814_v9, %v10135_v22 }
0x17c4   : > { %10178 = vrot.lane.b32.xlu1 %v10177_v20, %s10479_s9  ;;  %v4292_v20 = vsel %vm4287_vm5, %v4283_v7, %v10145_v63 }
0x17c5   : > { %v4301_v50 = vsel %vm4296_vm6, %v4292_v20, %v10155_v38  ;;  %v12820_v38 = vld [vmem:[#allocation5_spill] sm:$0xff]  ;;  %v12821_v20 = vld [vmem:[#allocation6_spill] sm:$0xff] }
0x17c8   : > { %8188 = vrot.lane.b32.xlu1 %v8854_v55, %s10481_s11 }
0x17cc   : > { %8526 = vrot.lane.b32.xlu1 %v8854_v55, %s10479_s9  ;;  %v4293_v55 = vsel %vm4287_vm5, %v4284_v31, %v10146_v36 }
0x17cd   : > { %v4302_v39 = vsel %vm4296_vm6, %v4293_v55, %v10156_v57 }
0x181e   : > { %v10159_v24 = vpop.permute.xlu1 %10158 }
0x181f   : > { %v10161_v28 = vunpack.i.h.bf16 %v10159_v24  ;;  %v10160_v32 = vunpack.i.l.bf16 %v10159_v24  ;;  %v4294_v24 = vsel %vm4287_vm5, %v4285_v45, %v10150_v42  ;;  %v12824_v42 = vld [vmem:[#allocation9_spill] sm:$0xff] }
0x1821   : > { %v8147_v62 = vsel %vm270_vm0, %v4297_v6, %v10160_v32  ;;  %v8148_v59 = vsel %vm270_vm0, %v4298_v47, %v10161_v28 }
0x1822   : > { %v8155_v2 = vpack.c.bf16 %v8148_v59, %v8147_v62  ;;  %v10192_v62 = vld [vmem:[%s12742_s1 + $0x18] ss:$12 sps:$4 sm:$0xff]   ;;  %v10193_v59 = vld [vmem:[%s12742_s1] ss:$12 sps:$4 sm:$0xff]  }
0x1823   : > { %10036 = vmatprep.subr.bf16.mxu1 %v10192_v62 }
0x1824   : > { %10028 = vmatprep.mubr.msk.bf16.mxu0 %vm531_vm1, %v8155_v2  ;;  %10037 = vmatpush3.bf16.msra.mxu1 %v10192_v62  ;;  %v10196_v2 = vld [vmem:[%s12743_s2 + $0x28] sm:$0xff]  }
0x1825   : > { %10038 = vmatprep.subr.bf16.mxu1 %v10193_v59 }
0x1826   : > { %v10164_v5 = vpop.permute.xlu1 %10163 }
0x1827   : > { %v10166_v1 = vunpack.i.h.bf16 %v10164_v5  ;;  %v10165_v16 = vunpack.i.l.bf16 %v10164_v5 }
0x1828   : > { %10039 = vmatpush3.bf16.msra.mxu1 %v10193_v59 }
0x1829   : > { %v8149_v27 = vsel %vm270_vm0, %v4299_v18, %v10165_v16  ;;  %v8150_v34 = vsel %vm270_vm0, %v4300_v60, %v10166_v1  ;;  %v12818_v16 = vld [vmem:[#allocation2_spill] sm:$0xff] }
0x182a   : > { %v8156_v26 = vpack.c.bf16 %v8150_v34, %v8149_v27  ;;  %v10169_v43 = vpop.permute.xlu1 %10168  ;;  %v12819_v27 = vld [vmem:[#allocation4_spill] sm:$0xff] }
0x182b   : > { %v10171_v10 = vunpack.i.h.bf16 %v10169_v43  ;;  %v10170_v30 = vunpack.i.l.bf16 %v10169_v43 }
0x182c   : > { %10029 = vmatmul.mubr.msk.bf16.vlgmr.msra.gmra.mxu0 %vm531_vm1, %v8156_v26 }
0x182d   : > { %v4303_v28 = vsel %vm4296_vm6, %v4294_v24, %v10170_v30  ;;  %v4304_v56 = vsel %vm4296_vm6, %v4295_v61, %v10171_v10  ;;  %10049 = vmatpush3.bf16.msra.mxu0 %v10194_v49 }
0x182e   : > { %v10174_v58 = vpop.permute.xlu0 %10173  ;;  %10050 = vmatprep.subr.bf16.mxu0 %v10195_v46 }
0x182f   : > { %v10176_v3 = vunpack.i.h.bf16 %v10174_v58  ;;  %v10175_v17 = vunpack.i.l.bf16 %v10174_v58 }
0x1831   : > { %v8151_v44 = vsel %vm270_vm0, %v4301_v50, %v10175_v17  ;;  %v8152_v41 = vsel %vm270_vm0, %v4302_v39, %v10176_v3  ;;  %10051 = vmatpush3.bf16.msra.mxu0 %v10195_v46 }
0x1832   : > { %v8157_v54 = vpack.c.bf16 %v8152_v41, %v8151_v44  ;;  %10052 = vmatprep.subr.bf16.mxu0 %v10196_v2  ;;  %v12822_v41 = vld [vmem:[#allocation8_spill] sm:$0xff] }
0x1834   : > { %10032 = vmatprep.mubr.msk.bf16.mxu0 %vm531_vm1, %v8157_v54 }
0x1835   : > { %10053 = vmatpush3.bf16.msra.mxu0 %v10196_v2 }
0x1836   : > { %v10179_v37 = vpop.permute.xlu1 %10178  ;;  %10054 = vmatprep.subr.bf16.mxu0 %v10197_v0 }
0x1837   : > { %v10181_v12 = vunpack.i.h.bf16 %v10179_v37  ;;  %v10180_v23 = vunpack.i.l.bf16 %v10179_v37 }
0x1839   : > { %v8153_v32 = vsel %vm270_vm0, %v4303_v28, %v10180_v23  ;;  %v8154_v6 = vsel %vm270_vm0, %v4304_v56, %v10181_v12  ;;  %10055 = vmatpush3.bf16.msra.mxu0 %v10197_v0 }
0x183a   : > { %v8158_v47 = vpack.c.bf16 %v8154_v6, %v8153_v32  ;;  %10056 = vmatprep.subr.bf16.mxu0 %v10198_v19  ;;  %v8189_v53 = vpop.permute.xlu1 %8188 }
0x183c   : > { %10033 = vmatmul.mubr.msk.bf16.gmra.mxu0 %vm531_vm1, %v8158_v47 }
0x183d   : > { %10057 = vmatpush3.bf16.msra.mxu0 %v10198_v19 }
0x18ec   : > { %v10030_v40 = vpop.f32.mrf.mxu0 }
0x18ed   : > { %v8246_v1 = vadd.f32 %v10030_v40, %v8189_v53 }
0x18ee   : > { %v8237_v51 = vpop.f32.mrf.mxu0 }
0x18ef   : > { %v8238_v13 = vadd.f32 %v8237_v51, %v8189_v53  ;;  %v12658_v34 = vadd.f32 %v8246_v1, %v12819_v27 }
0x18f0   : > { %v10031_v48 = vpop.f32.mrf.mxu0 }
0x18f1   : > { %v12653_v18 = vadd.f32 %v8238_v13, %v12818_v16  ;;  %v8249_v22 = vadd.f32 %v10031_v48, %v8189_v53  ;;  %v8279_v57 = vsel %vm270_vm0, %v12658_v34, 0.0 }
0x18f2   : > { %v8240_v15 = vpop.f32.mrf.mxu0 }
0x18f3   : > { %v8241_v5 = vadd.f32 %v8240_v15, %v8189_v53  ;;  %v8276_v29 = vsel %vm270_vm0, %v12653_v18, 0.0  ;;  %v12665_v21 = vadd.f32 %v8249_v22, %v12820_v38 }
0x18f5   : > { %v12650_v8 = vadd.f32 %v8241_v5, %v12817_v4  ;;  %v8281_v17 = vsel %vm270_vm0, %v12665_v21, 0.0 }
0x18f7   : > { %v8277_v60 = vsel %vm270_vm0, %v12650_v8, 0.0 }
0x18f8   : > { %v8278_v26 = vadd.f32 %v8277_v60, %v8276_v29 }
0x18fa   : > { %v8280_v9 = vadd.f32 %v8279_v57, %v8278_v26 }
0x18fc   : > { %v10034_v36 = vpop.f32.mrf.mxu0  ;;  %v8282_v44 = vadd.f32 %v8281_v17, %v8280_v9 }
0x18fd   : > { %v8262_v58 = vadd.f32 %v10034_v36, %v8189_v53 }
0x18fe   : > { %v8253_v63 = vpop.f32.mrf.mxu0 }
0x18ff   : > { %v8254_v31 = vadd.f32 %v8253_v63, %v8189_v53  ;;  %v12675_v35 = vadd.f32 %v8262_v58, %v12822_v41 }
0x1900   : > { %v10035_v7 = vpop.f32.mrf.mxu0 }
0x1901   : > { %v12668_v55 = vadd.f32 %v8254_v31, %v12821_v20  ;;  %v8265_v39 = vadd.f32 %v10035_v7, %v8189_v53  ;;  %v8287_v25 = vsel %vm270_vm0, %v12675_v35, 0.0 }
0x1902   : > { %v8256_v3 = vpop.f32.mrf.mxu0 }
0x1903   : > { %v8283_v50 = vsel %vm270_vm0, %v12668_v55, 0.0  ;;  %v8257_v43 = vadd.f32 %v8256_v3, %v8189_v53  ;;  %v12681_v10 = vadd.f32 %v8265_v39, %v12824_v42 }
0x1904   : > { %v8284_v11 = vadd.f32 %v8283_v50, %v8282_v44 }
0x1905   : > { %v12678_v54 = vadd.f32 %v8257_v43, %v12823_v14  ;;  %v8289_v45 = vsel %vm270_vm0, %v12681_v10, 0.0 }
0x1907   : > { %v8285_v30 = vsel %vm270_vm0, %v12678_v54, 0.0 }
0x1908   : > { %v8286_v52 = vadd.f32 %v8285_v30, %v8284_v11 }
0x190a   : > { %v8288_v33 = vadd.f32 %v8287_v25, %v8286_v52 }
0x190c   : > { %v8290_v37 = vadd.f32 %v8289_v45, %v8288_v33 }
0x190e   : > { %v8291_v24 = vrot.slane %v8290_v37, 4 }
0x1910   : > { %v8292_v61 = vadd.f32 %v8291_v24, %v8290_v37 }
0x1912   : > { %v8293_v12 = vrot.slane %v8292_v61, 2 }
0x1914   : > { %v8294_v23 = vadd.f32 %v8293_v12, %v8292_v61 }
0x1916   : > { %v8295_v28 = vrot.slane %v8294_v23, 1 }
0x1918   : > { %v8296_v56 = vadd.f32 %v8295_v28, %v8294_v23  ;;  %v10199_v23 = vld [vmem:[%s12743_s2 + $0x10] sm:$0xff]   ;;  %v10200_v28 = vld [vmem:[%s12743_s2 + $0x8] sm:$0xff]  }
0x1919   : > { %10058 = vmatprep.subr.bf16.mxu0 %v10199_v23 }
0x191a   : > { %v8297_v32 = vmul.f32 0.015625, %v8296_v56  ;;  %10059 = vmatpush3.bf16.msra.mxu0 %v10199_v23  ;;  %v10201_v56 = vld [vmem:[%s12743_s2] sm:$0xff]  }
0x191b   : > { %10060 = vmatprep.subr.bf16.mxu0 %v10200_v28 }
0x191c   : > { %v8298_v6 = vsub.f32 %v12653_v18, %v8297_v32  ;;  %v8299_v47 = vsub.f32 %v12650_v8, %v8297_v32  ;;  %v8300_v62 = vsub.f32 %v12658_v34, %v8297_v32  ;;  %v8301_v59 = vsub.f32 %v12665_v21, %v8297_v32 }
0x191d   : > { %v8302_v49 = vsub.f32 %v12668_v55, %v8297_v32  ;;  %v8303_v19 = vsub.f32 %v12678_v54, %v8297_v32  ;;  %v8304_v15 = vsub.f32 %v12675_v35, %v8297_v32  ;;  %v8305_v1 = vsub.f32 %v12681_v10, %v8297_v32 }
0x191e   : > { %v8306_v46 = vmul.f32 %v8298_v6, %v8298_v6  ;;  %v8307_v2 = vmul.f32 %v8299_v47, %v8299_v47  ;;  %v8308_v0 = vmul.f32 %v8300_v62, %v8300_v62  ;;  %v8309_v40 = vmul.f32 %v8301_v59, %v8301_v59  ;;  %10061 = vmatpush3.bf16.msra.mxu0 %v10200_v28 }
0x191f   : > { %v8310_v13 = vmul.f32 %v8302_v49, %v8302_v49  ;;  %v8311_v16 = vmul.f32 %v8303_v19, %v8303_v19  ;;  %v8312_v29 = vmul.f32 %v8304_v15, %v8304_v15  ;;  %v8313_v36 = vmul.f32 %v8305_v1, %v8305_v1  ;;  %10062 = vmatprep.subr.bf16.mxu0 %v10201_v56 }
0x1920   : > { %v8314_v51 = vsel %vm270_vm0, %v8306_v46, 0.0  ;;  %v8315_v48 = vsel %vm270_vm0, %v8307_v2, 0.0  ;;  %v8317_v5 = vsel %vm270_vm0, %v8308_v0, 0.0  ;;  %v8319_v60 = vsel %vm270_vm0, %v8309_v40, 0.0 }
0x1921   : > { %v8316_v53 = vadd.f32 %v8315_v48, %v8314_v51  ;;  %v8321_v22 = vsel %vm270_vm0, %v8310_v13, 0.0  ;;  %v8323_v63 = vsel %vm270_vm0, %v8311_v16, 0.0  ;;  %v8325_v38 = vsel %vm270_vm0, %v8312_v29, 0.0 }
0x1922   : > { %v8327_v9 = vsel %vm270_vm0, %v8313_v36, 0.0  ;;  %10063 = vmatpush3.bf16.msra.mxu0 %v10201_v56 }
0x1923   : > { %v8318_v4 = vadd.f32 %v8317_v5, %v8316_v53 }
0x1925   : > { %v8320_v27 = vadd.f32 %v8319_v60, %v8318_v4 }
0x1927   : > { %v8322_v26 = vadd.f32 %v8321_v22, %v8320_v27 }
0x1929   : > { %v8324_v57 = vadd.f32 %v8323_v63, %v8322_v26 }
0x192b   : > { %v8326_v31 = vadd.f32 %v8325_v38, %v8324_v57 }
0x192d   : > { %v8328_v7 = vadd.f32 %v8327_v9, %v8326_v31  ;;  %v8527_v9 = vpop.permute.xlu1 %8526 }
0x192f   : > { %v8329_v58 = vrot.slane %v8328_v7, 4 }
0x1931   : > { %v8330_v20 = vadd.f32 %v8329_v58, %v8328_v7 }
0x1933   : > { %v8331_v3 = vrot.slane %v8330_v20, 2 }
0x1935   : > { %v8332_v17 = vadd.f32 %v8331_v3, %v8330_v20 }
0x1937   : > { %v8333_v50 = vrot.slane %v8332_v17, 1 }
0x1939   : > { %v8334_v39 = vadd.f32 %v8333_v50, %v8332_v17 }
0x193b   : > { %v8335_v43 = vmul.f32 0.015625, %v8334_v39 }
0x193d   : > { %v8336_v44 = vadd.f32 1e-05, %v8335_v43 }
0x193f   : > { %10460 = vrsqrt.f32 %v8336_v44 }
0x194c   : > { %v10461_v41 = vpop.eup %10460 }
0x194d   : > { %v8340_v14 = vmul.f32 %v10461_v41, %v8300_v62  ;;  %v8341_v11 = vmul.f32 %v10461_v41, %v8301_v59  ;;  %v8338_v42 = vmul.f32 %v10461_v41, %v8298_v6  ;;  %v8343_v30 = vmul.f32 %v10461_v41, %v8303_v19 }
0x194e   : > { %v8339_v52 = vmul.f32 %v10461_v41, %v8299_v47  ;;  %v8342_v25 = vmul.f32 %v10461_v41, %v8302_v49  ;;  %v8344_v24 = vmul.f32 %v10461_v41, %v8304_v15  ;;  %v8345_v61 = vmul.f32 %v10461_v41, %v8305_v1  ;;  %v8863_v47 = vld [vmem:[%s12744_s3] ss:$0 sm:$0xff] }
0x194f   : > { %v8347_v33 = vpack.c.bf16 %v8341_v11, %v8340_v14 }
0x1950   : > { %v8346_v45 = vpack.c.bf16 %v8339_v52, %v8338_v42  ;;  %v8348_v37 = vpack.c.bf16 %v8343_v30, %v8342_v25  ;;  %v8349_v12 = vpack.c.bf16 %v8345_v61, %v8344_v24 }
0x1952   : > { %10040 = vmatprep.mubr.msk.bf16.mxu1 %vm270_vm0, %v8346_v45 }
0x1953   : > { %10041 = vmatmul.mubr.msk.bf16.vlgmr.msra.gmra.mxu1 %vm270_vm0, %v8347_v33 }
0x1954   : > { %10044 = vmatprep.mubr.msk.bf16.mxu1 %vm270_vm0, %v8348_v37 }
0x195b   : > { %10045 = vmatmul.mubr.msk.bf16.gmra.mxu1 %vm270_vm0, %v8349_v12 }
0x1a13   : > { %v10042_v32 = vpop.f32.mrf.mxu1 }
0x1a14   : > { %v8428_v46 = vadd.f32 %v10042_v32, %v8863_v47 }
0x1a15   : > { %v8419_v6 = vpop.f32.mrf.mxu1 }
0x1a16   : > { %v8420_v59 = vadd.f32 %v8863_v47, %v8419_v6  ;;  %v8452_v53 = vmax.f32 %v8428_v46, 0.0 }
0x1a17   : > { %v10043_v62 = vpop.f32.mrf.mxu1 }
0x1a18   : > { %v8431_v49 = vadd.f32 %v10043_v62, %v8863_v47  ;;  %v8450_v51 = vmax.f32 %v8420_v59, 0.0 }
0x1a19   : > { %v8422_v2 = vpop.f32.mrf.mxu1 }
0x1a1a   : > { %v8423_v0 = vadd.f32 %v8863_v47, %v8422_v2  ;;  %v8453_v19 = vmax.f32 %v8431_v49, 0.0 }
0x1a1b   : > { %v10046_v40 = vpop.f32.mrf.mxu1 }
0x1a1c   : > { %v8451_v48 = vmax.f32 %v8423_v0, 0.0  ;;  %v8459_v5 = vpack.c.bf16 %v8453_v19, %v8452_v53  ;;  %v8444_v60 = vadd.f32 %v10046_v40, %v8863_v47 }
0x1a1d   : > { %v8435_v15 = vpop.f32.mrf.mxu1 }
0x1a1e   : > { %v8458_v13 = vpack.c.bf16 %v8451_v48, %v8450_v51  ;;  %v8436_v1 = vadd.f32 %v8863_v47, %v8435_v15  ;;  %v8456_v63 = vmax.f32 %v8444_v60, 0.0 }
0x1a1f   : > { %v10047_v4 = vpop.f32.mrf.mxu1 }
0x1a20   : > { %v8447_v16 = vadd.f32 %v10047_v4, %v8863_v47  ;;  %10064 = vmatprep.mubr.bf16.mxu0 %v8458_v13  ;;  %v8454_v26 = vmax.f32 %v8436_v1, 0.0 }
0x1a21   : > { %v8438_v27 = vpop.f32.mrf.mxu1  ;;  %10065 = vmatmul.mubr.bf16.vlgmr.msra.gmra.mxu0 %v8459_v5 }
0x1a22   : > { %v8439_v29 = vadd.f32 %v8863_v47, %v8438_v27  ;;  %v8457_v22 = vmax.f32 %v8447_v16, 0.0 }
0x1a24   : > { %v8455_v36 = vmax.f32 %v8439_v29, 0.0  ;;  %v8461_v38 = vpack.c.bf16 %v8457_v22, %v8456_v63 }
0x1a26   : > { %v8460_v57 = vpack.c.bf16 %v8455_v36, %v8454_v26 }
0x1a28   : > { %10068 = vmatprep.mubr.bf16.mxu0 %v8460_v57 }
0x1a29   : > { %10069 = vmatmul.mubr.bf16.gmra.mxu0 %v8461_v38 }
0x1ae1   : > { %v10066_v31 = vpop.f32.mrf.mxu0 }
0x1ae2   : > { %v8572_v43 = vadd.f32 %v10066_v31, %v8527_v9 }
0x1ae3   : > { %v8563_v7 = vpop.f32.mrf.mxu0 }
0x1ae4   : > { %v8564_v58 = vadd.f32 %v8563_v7, %v8527_v9  ;;  %v8596_v14 = vadd.f32 %v8572_v43, %v12658_v34 }
0x1ae5   : > { %v10067_v20 = vpop.f32.mrf.mxu0 }
0x1ae6   : > { %v8594_v3 = vadd.f32 %v8564_v58, %v12653_v18  ;;  %v8575_v11 = vadd.f32 %v10067_v20, %v8527_v9 }
0x1ae7   : > { %v8566_v17 = vpop.f32.mrf.mxu0 }
0x1ae8   : > { %v8567_v50 = vadd.f32 %v8566_v17, %v8527_v9  ;;  %8602 = vxpose.xlu1.b32.start [1/8] (short) (narrow) %v8594_v3, 32  ;;  %v8597_v30 = vadd.f32 %v8575_v11, %v12665_v21 }
0x1ae9   : > { %v10070_v39 = vpop.f32.mrf.mxu0 }
0x1aea   : > { %v8595_v44 = vadd.f32 %v8567_v50, %v12650_v8  ;;  %v8588_v45 = vadd.f32 %v10070_v39, %v8527_v9 }
0x1aeb   : > { %v8579_v41 = vpop.f32.mrf.mxu0 }
0x1aec   : > { %8603 = vxpose.xlu1.b32.cont [2/8] (short) (narrow) %v8595_v44, 32  ;;  %v8580_v52 = vadd.f32 %v8579_v41, %v8527_v9  ;;  %v8600_v37 = vadd.f32 %v8588_v45, %v12675_v35 }
0x1aed   : > { %v10071_v42 = vpop.f32.mrf.mxu0 }
0x1aee   : > { %v8598_v18 = vadd.f32 %v8580_v52, %v12668_v55  ;;  %v8591_v34 = vadd.f32 %v10071_v42, %v8527_v9 }
0x1aef   : > { %v8582_v25 = vpop.f32.mrf.mxu0 }
0x1af0   : > { %8604 = vxpose.xlu1.b32.cont [3/8] (short) (narrow) %v8596_v14, 32  ;;  %v8583_v33 = vadd.f32 %v8582_v25, %v8527_v9  ;;  %v8601_v24 = vadd.f32 %v8591_v34, %v12681_v10 }
0x1af2   : > { %v8599_v8 = vadd.f32 %v8583_v33, %v12678_v54 }
0x1af4   : > { %8605 = vxpose.xlu1.b32.cont [4/8] (short) (narrow) %v8597_v30, 32 }
0x1af8   : > { %8606 = vxpose.xlu1.b32.cont [5/8] (short) (narrow) %v8598_v18, 32 }
0x1afc   : > { %8607 = vxpose.xlu1.b32.cont [6/8] (short) (narrow) %v8599_v8, 32 }
0x1b00   : > { %8608 = vxpose.xlu1.b32.cont [7/8] (short) (narrow) %v8600_v37, 32 }
0x1b04   : > { %8609 = vxpose.xlu1.b32.end [8/8] (short) (narrow) %v8601_v24, 32 }
0x1b64   : > { %v8618_v21 = vpop.trf.xlu1 }
0x1b65   : > { %8634 = vst.msk [vmem:[%s224_s22] sm:$0xff] %vm531_vm1, %v8618_v21 }
0x1b68   : > { %v8619_v55 = vpop.trf.xlu1 }
0x1b69   : > { %8635 = vst.msk [vmem:[%s224_s22 + $0x8] sm:$0xff] %vm531_vm1, %v8619_v55 }
0x1b6c   : > { %v8620_v54 = vpop.trf.xlu1 }
0x1b6d   : > { %8636 = vst.msk [vmem:[%s224_s22 + $0x10] sm:$0xff] %vm531_vm1, %v8620_v54 }
0x1b70   : > { %v8621_v35 = vpop.trf.xlu1 }
0x1b71   : > { %8637 = vst.msk [vmem:[%s224_s22 + $0x18] sm:$0xff] %vm531_vm1, %v8621_v35 }
0x1b72 PF: > { %s15_s18 = sadd.s32 1, %s10476_s18  }
0x1b73   : > { %p12_p4 = scmp.ge.s32.totalorder %s15_s18, 4  }
0x1b75   :  { %14 = sbr.rel (!%p12_p4) target bundleno = 1 (0x1), region = 70 }

</bundles_post_ra>
